<compile_context>
chip_gen: v5e
topology: v5e:2x2
jax: 0.10.0
libtpu: 0.0.40
codegen_flags: <defaults>
</compile_context>

<pallas_src>
import jax
import jax.numpy as jnp
from jax.experimental import pallas as pl
from jax.experimental.pallas import tpu as pltpu

BN_EPS = 1e-4  # scn.BatchNormReLU default eps (eval-mode running stats)

_MODULI = (32, 16, 8, 4, 2)


def _deepsdf_head_kernel(locs_ref, feats_ref, scale_ref, shift_ref,
                         w0f_ref, w0l_ref, b0_ref,
                         w1_ref, b1_ref, w2_ref, b2_ref,
                         wo_ref, bo_ref, out_ref):
    cd = w0f_ref.dtype  # matmul operand dtype (f32 or bf16); accumulate in f32

    # ---- p3: BatchNormReLU folded into scale/shift --------------------------
    f = feats_ref[...]                                        # [C, tn]
    bn = jnp.maximum(f * scale_ref[...] + shift_ref[...], 0.0)

    # ---- fc_0: split matmul (backbone half + 5 loc-mod halves) --------------
    h = jnp.dot(w0f_ref[...], bn.astype(cd),
                preferred_element_type=jnp.float32)           # [2H, tn]
    # loc mods: powers of two on non-negative integer voxel coords == bit AND
    li = locs_ref[...].astype(jnp.int32)                      # [3, tn]
    for idx, m in enumerate(_MODULI):
        mod = (li & (m - 1)).astype(cd)                       # [3, tn]
        h = h + jnp.dot(w0l_ref[idx], mod,                    # w0l_ref[idx]: [2H, 3]
                        preferred_element_type=jnp.float32)
    h = jnp.maximum(h + b0_ref[...], 0.0)                     # [2H, tn]

    # ---- fc_1 / fc_2 (ReLU) --------------------------------------------------
    h = jnp.maximum(jnp.dot(w1_ref[...], h.astype(cd),
                            preferred_element_type=jnp.float32) + b1_ref[...], 0.0)
    h = jnp.maximum(jnp.dot(w2_ref[...], h.astype(cd),
                            preferred_element_type=jnp.float32) + b2_ref[...], 0.0)

    # ---- fc_out -> lane-dense [1, tn] output block ---------------------------
    out_ref[...] = jnp.dot(wo_ref[...], h.astype(cd),
                           preferred_element_type=jnp.float32) + bo_ref[...]


def deepsdf_head(locs, feats, params, *, tn=512, compute_dtype=jnp.float32):
    """DeepSDFHead dense head.

    locs  : [N, 3]  float32 non-negative integer voxel coordinates.
    feats : [N, C]  float32 per-point backbone (p0..p2) output, C = nf * 3.
    params (torch layout):
        gamma, beta, mean, var : [C]          (scn.BatchNormReLU, eval mode)
        w0 : [2H, C + 15], b0 : [2H]          (fc_0, Conv1d k=1 weight squeezed)
        w1 : [H, 2H],      b1 : [H]           (fc_1)
        w2 : [H, H],       b2 : [H]           (fc_2)
        wo : [1, H],       bo : [1]           (fc_out)
    Returns [N, 1] float32 (torch returns ([], []) for empty input; here we
    return a consistent (0, 1) array instead).
    """
    N = locs.shape[0]
    if N == 0:
        return jnp.zeros((0, 1), jnp.float32)
    assert tn % 128 == 0, "tn must be a multiple of 128 (lane axis)"

    C = feats.shape[1]
    gamma, beta, mean, var, w0, b0, w1, b1, w2, b2, wo, bo = params
    two_h = w0.shape[0]

    # Fold BatchNorm (eval) into a single scale/shift, as column vectors.
    scale = (gamma * jax.lax.rsqrt(var + BN_EPS)).astype(jnp.float32)
    shift = (beta - mean * scale).astype(jnp.float32)
    scale = scale.reshape(C, 1)
    shift = shift.reshape(C, 1)

    # Split fc_0: backbone-feature half [2H, C]; loc half pre-split to [5, 2H, 3].
    w0f = w0[:, :C].astype(compute_dtype)
    w0l = (w0[:, C:].reshape(two_h, len(_MODULI), 3)
           .transpose(1, 0, 2).astype(compute_dtype))          # [5, 2H, 3]
    w1c = w1.astype(compute_dtype)
    w2c = w2.astype(compute_dtype)
    woc = wo.astype(compute_dtype)
    b0c = b0.reshape(-1, 1).astype(jnp.float32)
    b1c = b1.reshape(-1, 1).astype(jnp.float32)
    b2c = b2.reshape(-1, 1).astype(jnp.float32)
    boc = bo.reshape(1, 1).astype(jnp.float32)

    # Channel-major, point-padded layout (points on the lane axis).
    n_tiles = pl.cdiv(N, tn)
    n_pad = n_tiles * tn
    pad = n_pad - N
    locs_t = jnp.pad(locs.astype(jnp.float32), ((0, pad), (0, 0))).T   # [3, Np]
    feats_t = jnp.pad(feats.astype(jnp.float32), ((0, pad), (0, 0))).T  # [C, Np]

    kparams = (scale, shift, w0f, w0l, b0c, w1c, b1c, w2c, b2c, woc, boc)

    def point_spec(c):
        return pl.BlockSpec((c, tn), lambda i: (0, i))

    def full_spec(a):
        # whole-array block, resident across all grid steps
        return pl.BlockSpec(a.shape, lambda i, _nd=a.ndim: (0,) * _nd)

    out = pl.pallas_call(
        _deepsdf_head_kernel,
        out_shape=jax.ShapeDtypeStruct((1, n_pad), jnp.float32),
        grid=(n_tiles,),
        in_specs=[point_spec(3), point_spec(C)] + [full_spec(a) for a in kparams],
        out_specs=pl.BlockSpec((1, tn), lambda i: (0, i)),
        compiler_params=pltpu.CompilerParams(
            dimension_semantics=("parallel",)),
    )(locs_t, feats_t, *kparams)

    return out[0, :N].reshape(N, 1)


if __name__ == "__main__":
    key = jax.random.PRNGKey(0)
    nf = 16                      # nPlanes=[nf, nf, nf] -> backbone output nf*3
    C = nf * 3                   # 48
    feature_size = C + 3 * 5     # 63
    hidden = 96
    N = 300                      # not a multiple of tn -> exercises padding path
    tn = 256

    ks = jax.random.split(key, 16)

    # integer voxel coordinates, cast to float (as the torch module does)
    locs = jax.random.randint(ks[0], (N, 3), 0, 32).astype(jnp.float32)
    # stand-in for the sparse backbone (p0..p2) per-point output features
    feats = jax.random.normal(ks[1], (N, C), jnp.float32)

    def init_w(k, shape, fan_in):
        bound = 1.0 / jnp.sqrt(jnp.float32(fan_in))
        return jax.random.uniform(k, shape, jnp.float32, -bound, bound)

    # p3 BatchNormReLU params (eval-mode running stats)
    gamma = jax.random.uniform(ks[2], (C,), jnp.float32, 0.5, 1.5)
    beta = 0.1 * jax.random.normal(ks[3], (C,), jnp.float32)
    mean = 0.1 * jax.random.normal(ks[4], (C,), jnp.float32)
    var = jax.random.uniform(ks[5], (C,), jnp.float32, 0.5, 1.5)

    # Conv1d(k=1) weights kept in torch layout [Cout, Cin]
    w0 = init_w(ks[6], (2 * hidden, feature_size), feature_size)
    b0 = init_w(ks[7], (2 * hidden,), feature_size)
    w1 = init_w(ks[8], (hidden, 2 * hidden), 2 * hidden)
    b1 = init_w(ks[9], (hidden,), 2 * hidden)
    w2 = init_w(ks[10], (hidden, hidden), hidden)
    b2 = init_w(ks[11], (hidden,), hidden)
    wo = init_w(ks[12], (1, hidden), hidden)
    bo = init_w(ks[13], (1,), hidden)

    params = (gamma, beta, mean, var, w0, b0, w1, b1, w2, b2, wo, bo)

    out = deepsdf_head(locs, feats, params, tn=tn)
    out = jax.block_until_ready(out)
    assert out.shape == (N, 1)

    # plain-JAX reference of the same math (torch points-major layout)
    loc_feats = jnp.concatenate(
        [jnp.mod(locs, m) for m in (32.0, 16.0, 8.0, 4.0, 2.0)], axis=1)
    bn = jnp.maximum((feats - mean) * jax.lax.rsqrt(var + BN_EPS) * gamma + beta, 0.0)
    x = jnp.concatenate([bn, loc_feats], axis=1)
    r = jnp.maximum(x @ w0.T + b0, 0.0)
    r = jnp.maximum(r @ w1.T + b1, 0.0)
    r = jnp.maximum(r @ w2.T + b2, 0.0)
    r = (r @ wo.T + bo).reshape(N, 1)
    assert jnp.allclose(out, r, atol=1e-3, rtol=1e-3), "mismatch vs reference"

    print("KERNEL_OK")
</pallas_src>

<mosaic_0001>
module attributes {stable_mosaic.version = 11 : i64} {
  func.func @_deepsdf_head_kernel(%arg0: i32, %arg1: memref<3x256xf32, #tpu.memory_space<vmem>>, %arg2: memref<48x256xf32, #tpu.memory_space<vmem>>, %arg3: memref<48x1xf32, #tpu.memory_space<vmem>>, %arg4: memref<48x1xf32, #tpu.memory_space<vmem>>, %arg5: memref<192x48xf32, #tpu.memory_space<vmem>>, %arg6: memref<5x192x3xf32, #tpu.memory_space<vmem>>, %arg7: memref<192x1xf32, #tpu.memory_space<vmem>>, %arg8: memref<96x192xf32, #tpu.memory_space<vmem>>, %arg9: memref<96x1xf32, #tpu.memory_space<vmem>>, %arg10: memref<96x96xf32, #tpu.memory_space<vmem>>, %arg11: memref<96x1xf32, #tpu.memory_space<vmem>>, %arg12: memref<1x96xf32, #tpu.memory_space<vmem>>, %arg13: memref<1x1xf32, #tpu.memory_space<vmem>>, %arg14: memref<1x256xf32, #tpu.memory_space<vmem>>) attributes {dimension_semantics = [#tpu.dimension_semantics<parallel>], iteration_bounds = array<i64: 2>, scalar_prefetch = 0 : i64, scratch_operands = 0 : i64, tpu.core_type = #tpu.core_type<tc>, window_params = [{transform_indices = @transform_0, window_bounds = array<i64: 3, 256>}, {transform_indices = @transform_1, window_bounds = array<i64: 48, 256>}, {pipeline_mode = #tpu.pipeline_mode<synchronous>, transform_indices = @transform_2, window_bounds = array<i64: 48, 1>}, {pipeline_mode = #tpu.pipeline_mode<synchronous>, transform_indices = @transform_3, window_bounds = array<i64: 48, 1>}, {pipeline_mode = #tpu.pipeline_mode<synchronous>, transform_indices = @transform_4, window_bounds = array<i64: 192, 48>}, {pipeline_mode = #tpu.pipeline_mode<synchronous>, transform_indices = @transform_5, window_bounds = array<i64: 5, 192, 3>}, {pipeline_mode = #tpu.pipeline_mode<synchronous>, transform_indices = @transform_6, window_bounds = array<i64: 192, 1>}, {pipeline_mode = #tpu.pipeline_mode<synchronous>, transform_indices = @transform_7, window_bounds = array<i64: 96, 192>}, {pipeline_mode = #tpu.pipeline_mode<synchronous>, transform_indices = @transform_8, window_bounds = array<i64: 96, 1>}, {pipeline_mode = #tpu.pipeline_mode<synchronous>, transform_indices = @transform_9, window_bounds = array<i64: 96, 96>}, {pipeline_mode = #tpu.pipeline_mode<synchronous>, transform_indices = @transform_10, window_bounds = array<i64: 96, 1>}, {pipeline_mode = #tpu.pipeline_mode<synchronous>, transform_indices = @transform_11, window_bounds = array<i64: 1, 96>}, {pipeline_mode = #tpu.pipeline_mode<synchronous>, transform_indices = @transform_12, window_bounds = array<i64: 1, 1>}, {transform_indices = @transform_13, window_bounds = array<i64: 1, 256>}]} {
    %c0 = arith.constant 0 : index
    %c0_0 = arith.constant 0 : index
    %0 = vector.load %arg2[%c0, %c0_0] : memref<48x256xf32, #tpu.memory_space<vmem>>, vector<48x256xf32>
    %c0_1 = arith.constant 0 : index
    %c0_2 = arith.constant 0 : index
    %1 = vector.load %arg3[%c0_1, %c0_2] : memref<48x1xf32, #tpu.memory_space<vmem>>, vector<48x1xf32>
    %2 = vector.broadcast %1 : vector<48x1xf32> to vector<48x256xf32>
    %3 = arith.mulf %0, %2 : vector<48x256xf32>
    %c0_3 = arith.constant 0 : index
    %c0_4 = arith.constant 0 : index
    %4 = vector.load %arg4[%c0_3, %c0_4] : memref<48x1xf32, #tpu.memory_space<vmem>>, vector<48x1xf32>
    %5 = vector.broadcast %4 : vector<48x1xf32> to vector<48x256xf32>
    %6 = arith.addf %3, %5 : vector<48x256xf32>
    %cst = arith.constant 0.000000e+00 : f32
    %7 = vector.broadcast %cst : f32 to vector<48x256xf32>
    %8 = arith.maximumf %6, %7 : vector<48x256xf32>
    %c0_5 = arith.constant 0 : index
    %c0_6 = arith.constant 0 : index
    %9 = vector.load %arg5[%c0_5, %c0_6] : memref<192x48xf32, #tpu.memory_space<vmem>>, vector<192x48xf32>
    %cst_7 = arith.constant dense<0.000000e+00> : vector<192x256xf32>
    %10 = tpu.matmul %9, %8, %cst_7 {dimension_numbers = #tpu.dot_dimension_numbers<[1], [0], [0], [1], [0, 0, 1, 1], [], []>} : vector<192x48xf32>, vector<48x256xf32>, vector<192x256xf32> -> vector<192x256xf32>
    %c0_8 = arith.constant 0 : index
    %c0_9 = arith.constant 0 : index
    %11 = vector.load %arg1[%c0_8, %c0_9] : memref<3x256xf32, #tpu.memory_space<vmem>>, vector<3x256xf32>
    %12 = arith.fptosi %11 : vector<3x256xf32> to vector<3x256xi32>
    %c31_i32 = arith.constant 31 : i32
    %13 = vector.broadcast %c31_i32 : i32 to vector<3x256xi32>
    %14 = arith.andi %12, %13 : vector<3x256xi32>
    %15 = arith.sitofp %14 : vector<3x256xi32> to vector<3x256xf32>
    %c0_10 = arith.constant 0 : index
    %c0_11 = arith.constant 0 : index
    %c0_12 = arith.constant 0 : index
    %16 = vector.load %arg6[%c0_10, %c0_11, %c0_12] : memref<5x192x3xf32, #tpu.memory_space<vmem>>, vector<1x192x3xf32>
    %17 = vector.shape_cast %16 : vector<1x192x3xf32> to vector<192x3xf32>
    %cst_13 = arith.constant dense<0.000000e+00> : vector<192x256xf32>
    %18 = tpu.matmul %17, %15, %cst_13 {dimension_numbers = #tpu.dot_dimension_numbers<[1], [0], [0], [1], [0, 0, 1, 1], [], []>} : vector<192x3xf32>, vector<3x256xf32>, vector<192x256xf32> -> vector<192x256xf32>
    %19 = arith.addf %10, %18 : vector<192x256xf32>
    %c15_i32 = arith.constant 15 : i32
    %20 = vector.broadcast %c15_i32 : i32 to vector<3x256xi32>
    %21 = arith.andi %12, %20 : vector<3x256xi32>
    %22 = arith.sitofp %21 : vector<3x256xi32> to vector<3x256xf32>
    %c1 = arith.constant 1 : index
    %c0_14 = arith.constant 0 : index
    %c0_15 = arith.constant 0 : index
    %23 = vector.load %arg6[%c1, %c0_14, %c0_15] : memref<5x192x3xf32, #tpu.memory_space<vmem>>, vector<1x192x3xf32>
    %24 = vector.shape_cast %23 : vector<1x192x3xf32> to vector<192x3xf32>
    %cst_16 = arith.constant dense<0.000000e+00> : vector<192x256xf32>
    %25 = tpu.matmul %24, %22, %cst_16 {dimension_numbers = #tpu.dot_dimension_numbers<[1], [0], [0], [1], [0, 0, 1, 1], [], []>} : vector<192x3xf32>, vector<3x256xf32>, vector<192x256xf32> -> vector<192x256xf32>
    %26 = arith.addf %19, %25 : vector<192x256xf32>
    %c7_i32 = arith.constant 7 : i32
    %27 = vector.broadcast %c7_i32 : i32 to vector<3x256xi32>
    %28 = arith.andi %12, %27 : vector<3x256xi32>
    %29 = arith.sitofp %28 : vector<3x256xi32> to vector<3x256xf32>
    %c2 = arith.constant 2 : index
    %c0_17 = arith.constant 0 : index
    %c0_18 = arith.constant 0 : index
    %30 = vector.load %arg6[%c2, %c0_17, %c0_18] : memref<5x192x3xf32, #tpu.memory_space<vmem>>, vector<1x192x3xf32>
    %31 = vector.shape_cast %30 : vector<1x192x3xf32> to vector<192x3xf32>
    %cst_19 = arith.constant dense<0.000000e+00> : vector<192x256xf32>
    %32 = tpu.matmul %31, %29, %cst_19 {dimension_numbers = #tpu.dot_dimension_numbers<[1], [0], [0], [1], [0, 0, 1, 1], [], []>} : vector<192x3xf32>, vector<3x256xf32>, vector<192x256xf32> -> vector<192x256xf32>
    %33 = arith.addf %26, %32 : vector<192x256xf32>
    %c3_i32 = arith.constant 3 : i32
    %34 = vector.broadcast %c3_i32 : i32 to vector<3x256xi32>
    %35 = arith.andi %12, %34 : vector<3x256xi32>
    %36 = arith.sitofp %35 : vector<3x256xi32> to vector<3x256xf32>
    %c3 = arith.constant 3 : index
    %c0_20 = arith.constant 0 : index
    %c0_21 = arith.constant 0 : index
    %37 = vector.load %arg6[%c3, %c0_20, %c0_21] : memref<5x192x3xf32, #tpu.memory_space<vmem>>, vector<1x192x3xf32>
    %38 = vector.shape_cast %37 : vector<1x192x3xf32> to vector<192x3xf32>
    %cst_22 = arith.constant dense<0.000000e+00> : vector<192x256xf32>
    %39 = tpu.matmul %38, %36, %cst_22 {dimension_numbers = #tpu.dot_dimension_numbers<[1], [0], [0], [1], [0, 0, 1, 1], [], []>} : vector<192x3xf32>, vector<3x256xf32>, vector<192x256xf32> -> vector<192x256xf32>
    %40 = arith.addf %33, %39 : vector<192x256xf32>
    %c1_i32 = arith.constant 1 : i32
    %41 = vector.broadcast %c1_i32 : i32 to vector<3x256xi32>
    %42 = arith.andi %12, %41 : vector<3x256xi32>
    %43 = arith.sitofp %42 : vector<3x256xi32> to vector<3x256xf32>
    %c4 = arith.constant 4 : index
    %c0_23 = arith.constant 0 : index
    %c0_24 = arith.constant 0 : index
    %44 = vector.load %arg6[%c4, %c0_23, %c0_24] : memref<5x192x3xf32, #tpu.memory_space<vmem>>, vector<1x192x3xf32>
    %45 = vector.shape_cast %44 : vector<1x192x3xf32> to vector<192x3xf32>
    %cst_25 = arith.constant dense<0.000000e+00> : vector<192x256xf32>
    %46 = tpu.matmul %45, %43, %cst_25 {dimension_numbers = #tpu.dot_dimension_numbers<[1], [0], [0], [1], [0, 0, 1, 1], [], []>} : vector<192x3xf32>, vector<3x256xf32>, vector<192x256xf32> -> vector<192x256xf32>
    %47 = arith.addf %40, %46 : vector<192x256xf32>
    %c0_26 = arith.constant 0 : index
    %c0_27 = arith.constant 0 : index
    %48 = vector.load %arg7[%c0_26, %c0_27] : memref<192x1xf32, #tpu.memory_space<vmem>>, vector<192x1xf32>
    %49 = vector.broadcast %48 : vector<192x1xf32> to vector<192x256xf32>
    %50 = arith.addf %47, %49 : vector<192x256xf32>
    %cst_28 = arith.constant 0.000000e+00 : f32
    %51 = vector.broadcast %cst_28 : f32 to vector<192x256xf32>
    %52 = arith.maximumf %50, %51 : vector<192x256xf32>
    %c0_29 = arith.constant 0 : index
    %c0_30 = arith.constant 0 : index
    %53 = vector.load %arg8[%c0_29, %c0_30] : memref<96x192xf32, #tpu.memory_space<vmem>>, vector<96x192xf32>
    %cst_31 = arith.constant dense<0.000000e+00> : vector<96x256xf32>
    %54 = tpu.matmul %53, %52, %cst_31 {dimension_numbers = #tpu.dot_dimension_numbers<[1], [0], [0], [1], [0, 0, 1, 1], [], []>} : vector<96x192xf32>, vector<192x256xf32>, vector<96x256xf32> -> vector<96x256xf32>
    %c0_32 = arith.constant 0 : index
    %c0_33 = arith.constant 0 : index
    %55 = vector.load %arg9[%c0_32, %c0_33] : memref<96x1xf32, #tpu.memory_space<vmem>>, vector<96x1xf32>
    %56 = vector.broadcast %55 : vector<96x1xf32> to vector<96x256xf32>
    %57 = arith.addf %54, %56 : vector<96x256xf32>
    %cst_34 = arith.constant 0.000000e+00 : f32
    %58 = vector.broadcast %cst_34 : f32 to vector<96x256xf32>
    %59 = arith.maximumf %57, %58 : vector<96x256xf32>
    %c0_35 = arith.constant 0 : index
    %c0_36 = arith.constant 0 : index
    %60 = vector.load %arg10[%c0_35, %c0_36] : memref<96x96xf32, #tpu.memory_space<vmem>>, vector<96x96xf32>
    %cst_37 = arith.constant dense<0.000000e+00> : vector<96x256xf32>
    %61 = tpu.matmul %60, %59, %cst_37 {dimension_numbers = #tpu.dot_dimension_numbers<[1], [0], [0], [1], [0, 0, 1, 1], [], []>} : vector<96x96xf32>, vector<96x256xf32>, vector<96x256xf32> -> vector<96x256xf32>
    %c0_38 = arith.constant 0 : index
    %c0_39 = arith.constant 0 : index
    %62 = vector.load %arg11[%c0_38, %c0_39] : memref<96x1xf32, #tpu.memory_space<vmem>>, vector<96x1xf32>
    %63 = vector.broadcast %62 : vector<96x1xf32> to vector<96x256xf32>
    %64 = arith.addf %61, %63 : vector<96x256xf32>
    %cst_40 = arith.constant 0.000000e+00 : f32
    %65 = vector.broadcast %cst_40 : f32 to vector<96x256xf32>
    %66 = arith.maximumf %64, %65 : vector<96x256xf32>
    %c0_41 = arith.constant 0 : index
    %c0_42 = arith.constant 0 : index
    %67 = vector.load %arg12[%c0_41, %c0_42] : memref<1x96xf32, #tpu.memory_space<vmem>>, vector<1x96xf32>
    %cst_43 = arith.constant dense<0.000000e+00> : vector<1x256xf32>
    %68 = tpu.matmul %67, %66, %cst_43 {dimension_numbers = #tpu.dot_dimension_numbers<[1], [0], [0], [1], [0, 0, 1, 1], [], []>} : vector<1x96xf32>, vector<96x256xf32>, vector<1x256xf32> -> vector<1x256xf32>
    %c0_44 = arith.constant 0 : index
    %c0_45 = arith.constant 0 : index
    %69 = vector.load %arg13[%c0_44, %c0_45] : memref<1x1xf32, #tpu.memory_space<vmem>>, vector<1x1xf32>
    %70 = vector.broadcast %69 : vector<1x1xf32> to vector<1x256xf32>
    %71 = arith.addf %68, %70 : vector<1x256xf32>
    %c0_46 = arith.constant 0 : index
    %c0_47 = arith.constant 0 : index
    %72 = vector.load %arg14[%c0_46, %c0_47] : memref<1x256xf32, #tpu.memory_space<vmem>>, vector<1x256xf32>
    tpu.vector_store %arg14[%c0_46, %c0_47], %71 {strides = array<i32>} : memref<1x256xf32, #tpu.memory_space<vmem>>, vector<1x256xf32>,
    return
  }
  func.func @transform_0(%arg0: i32) -> (i32, i32) {
    %c0_i32 = arith.constant 0 : i32
    %c0_i32_0 = arith.constant 0 : i32
    return %c0_i32, %arg0 : i32, i32
  }
  func.func @transform_1(%arg0: i32) -> (i32, i32) {
    %c0_i32 = arith.constant 0 : i32
    %c0_i32_0 = arith.constant 0 : i32
    return %c0_i32, %arg0 : i32, i32
  }
  func.func @transform_2(%arg0: i32) -> (i32, i32) {
    %c0_i32 = arith.constant 0 : i32
    %c0_i32_0 = arith.constant 0 : i32
    %c0_i32_1 = arith.constant 0 : i32
    return %c0_i32, %c0_i32_0 : i32, i32
  }
  func.func @transform_3(%arg0: i32) -> (i32, i32) {
    %c0_i32 = arith.constant 0 : i32
    %c0_i32_0 = arith.constant 0 : i32
    %c0_i32_1 = arith.constant 0 : i32
    return %c0_i32, %c0_i32_0 : i32, i32
  }
  func.func @transform_4(%arg0: i32) -> (i32, i32) {
    %c0_i32 = arith.constant 0 : i32
    %c0_i32_0 = arith.constant 0 : i32
    %c0_i32_1 = arith.constant 0 : i32
    return %c0_i32, %c0_i32_0 : i32, i32
  }
  func.func @transform_5(%arg0: i32) -> (i32, i32, i32) {
    %c0_i32 = arith.constant 0 : i32
    %c0_i32_0 = arith.constant 0 : i32
    %c0_i32_1 = arith.constant 0 : i32
    %c0_i32_2 = arith.constant 0 : i32
    return %c0_i32, %c0_i32_0, %c0_i32_1 : i32, i32, i32
  }
  func.func @transform_6(%arg0: i32) -> (i32, i32) {
    %c0_i32 = arith.constant 0 : i32
    %c0_i32_0 = arith.constant 0 : i32
    %c0_i32_1 = arith.constant 0 : i32
    return %c0_i32, %c0_i32_0 : i32, i32
  }
  func.func @transform_7(%arg0: i32) -> (i32, i32) {
    %c0_i32 = arith.constant 0 : i32
    %c0_i32_0 = arith.constant 0 : i32
    %c0_i32_1 = arith.constant 0 : i32
    return %c0_i32, %c0_i32_0 : i32, i32
  }
  func.func @transform_8(%arg0: i32) -> (i32, i32) {
    %c0_i32 = arith.constant 0 : i32
    %c0_i32_0 = arith.constant 0 : i32
    %c0_i32_1 = arith.constant 0 : i32
    return %c0_i32, %c0_i32_0 : i32, i32
  }
  func.func @transform_9(%arg0: i32) -> (i32, i32) {
    %c0_i32 = arith.constant 0 : i32
    %c0_i32_0 = arith.constant 0 : i32
    %c0_i32_1 = arith.constant 0 : i32
    return %c0_i32, %c0_i32_0 : i32, i32
  }
  func.func @transform_10(%arg0: i32) -> (i32, i32) {
    %c0_i32 = arith.constant 0 : i32
    %c0_i32_0 = arith.constant 0 : i32
    %c0_i32_1 = arith.constant 0 : i32
    return %c0_i32, %c0_i32_0 : i32, i32
  }
  func.func @transform_11(%arg0: i32) -> (i32, i32) {
    %c0_i32 = arith.constant 0 : i32
    %c0_i32_0 = arith.constant 0 : i32
    %c0_i32_1 = arith.constant 0 : i32
    return %c0_i32, %c0_i32_0 : i32, i32
  }
  func.func @transform_12(%arg0: i32) -> (i32, i32) {
    %c0_i32 = arith.constant 0 : i32
    %c0_i32_0 = arith.constant 0 : i32
    %c0_i32_1 = arith.constant 0 : i32
    return %c0_i32, %c0_i32_0 : i32, i32
  }
  func.func @transform_13(%arg0: i32) -> (i32, i32) {
    %c0_i32 = arith.constant 0 : i32
    %c0_i32_0 = arith.constant 0 : i32
    return %c0_i32, %arg0 : i32, i32
  }
}

</mosaic_0001>

<bundles_post_ra>
// kernel: tpu_custom_call.1
= control target key start
LH: loop header
LB: loop body
LE: loop exit
PB: predicated region body
PF: predicated region fallthrough
CT: control target
= control target key end

     0   :  { %s6289_s0 = inlined_call_operand.vmem [shape: f32[3,512], index: 0, kind: input, shape index: {}]   ;;  %s6290_s1 = inlined_call_operand.vmem [shape: f32[48,512], index: 1, kind: input, shape index: {}]   ;;  %s6291_s2 = inlined_call_operand.vmem [shape: f32[48,1], index: 2, kind: input, shape index: {}]   ;;  %s6292_s3 = inlined_call_operand.vmem [shape: f32[48,1], index: 3, kind: input, shape index: {}]   ;;  %s6293_s4 = inlined_call_operand.vmem [shape: f32[192,48], index: 4, kind: input, shape index: {}]   ;;  %s6294_s5 = inlined_call_operand.vmem [shape: f32[5,192,3], index: 5, kind: input, shape index: {}]   ;;  %s6295_s6 = inlined_call_operand.vmem [shape: f32[192,1], index: 6, kind: input, shape index: {}]   ;;  %s6296_s7 = inlined_call_operand.vmem [shape: f32[96,192], index: 7, kind: input, shape index: {}]   ;;  %s6297_s8 = inlined_call_operand.vmem [shape: f32[96,1], index: 8, kind: input, shape index: {}]   ;;  %s6298_s9 = inlined_call_operand.vmem [shape: f32[96,96], index: 9, kind: input, shape index: {}]   ;;  %s6299_s10 = inlined_call_operand.vmem [shape: f32[96,1], index: 10, kind: input, shape index: {}]   ;;  %s6300_s11 = inlined_call_operand.vmem [shape: f32[1,96], index: 11, kind: input, shape index: {}]   ;;  %s6301_s12 = inlined_call_operand.<no memory space> [shape: f32[1,1], index: 12, kind: input, shape index: {}]   ;;  %s6302_s13 = inlined_call_operand.hbm [shape: f32[1,512], index: 13, kind: output, shape index: {}]  }
   0x1   :  { %6309 = sst [smem:[#allocation94_spill]] %s6290_s1  ;;  %v18_v0 = vstv %s6301_s12 }
   0x2   :  { %19 = vst [vmem:[#allocation2] sm:$0x1] %v18_v0 }
   0x3   :  { %20 = vsyncpa [#allocation5], 0 }
   0x4   :  { %22 = vsyncpa [#allocation5 + $0x1], 0  ;;  %s4185_s27 = smov 0   ;;  %s4187_s28 = smov 0  }
   0x5   :  { %s4189_s29 = smov 0   ;;  %s4191_s30 = smov 0  }
   0x6 LB: > { %s3536_s12 = sadd.s32 4294967295, %s4109_s30   ;;  %s3537_s14 = sadd.s32 4294967294, %s4109_s30   ;;  %s4109_s30 = sphi %s4191_s30, %s6596_s30   ;;  %s4105_s29 = sphi %s4189_s29, %s6595_s29   ;;  %s4101_s28 = sphi %s4187_s28, %s6594_s28   ;;  %s4097_s27 = sphi %s4185_s27, %s6593_s27  }
   0x7   : > { %s4208_s15 = sadd.s32 1, %s4109_s30   ;;  %s61_s16 = sadd.s32 1, %s4105_s29 }
   0x8   : > { %s58_s17 = ssub.s32 %s4109_s30, %s4208_s15  ;;  %p68_p0 = scmp.ne.s32.totalorder %s4105_s29, %s4101_s28 }
   0x9   : > { %p59_p1 = scmp.eq.s32.totalorder %s58_s17, 0  ;;  %p69_p2 = scmp.eq.s32.totalorder %s4109_s30, 0 }
   0xa   : > { %p329_p3 = scmp.eq.s32.totalorder %s3536_s12, 1  ;;  %p334_p4 = scmp.ne.s32.totalorder %s4101_s28, %s4097_s27 }
   0xb   : > { %s4221_s18 = scalar_select %p59_p1, %s4105_s29, %s61_s16  }
   0xc   : > { %p70_p5 = por %p69_p2, %p68_p0  ;;  %p4223_p6 = por %p329_p3, %p68_p0 }
   0xd   : > { %6310 = sst [smem:[#allocation7_spill]] %s4221_s18  ;;  %p335_p7 = scmp.eq.s32.totalorder %s3537_s14, 1 }
   0xe   : > { %p3539_p9 = scmp.ge.s32.totalorder %s4109_s30, 2 }
   0xf   : > { %p4227_p8 = por %p335_p7, %p334_p4 }
  0x10   : > { %384 = sbr.rel (%p3539_p9) target bundleno = 43 (0x2b), region = 60 }
  0x15   : > { %396 = sbr.rel (!%p70_p5) target bundleno = 43 (0x2b), region = 68  ;;  %s398_s21 = sand.u32 (%p70_p5), 1, %s4105_s29  }
  0x16   : > { %s3994_s22 = sshll.u32 (%p70_p5), %s4109_s30, 4  ;;  %s3997_s23 = smul.u32 (%p70_p5), 96, %s398_s21 }
  0x17   : > { %s6313_s1 = sld [smem:[#allocation94_spill]] (%p70_p5) }
  0x18   : > { %s400_s14 = scalar_lea.vmem (%p70_p5), [#allocation3], %s3997_s23 }
  0x1d   : > { %s403_s26 = scalar_lea.vmem %s6313_s1, %s3994_s22 }
  0x1e   : > { %v416_v1 = vld [vmem:[%s403_s26] sm:$0xff]  ;;  %v418_v2 = vld [vmem:[%s403_s26 + $0x8] sm:$0xff] }
  0x1f   : > { %v420_v3 = vld [vmem:[%s403_s26 + $0x20] sm:$0xff]  ;;  %417 = vst [vmem:[%s400_s14] sm:$0xff] %v416_v1  ;;  %v422_v4 = vld [vmem:[%s403_s26 + $0x28] sm:$0xff] }
  0x20   : > { %419 = vst [vmem:[%s400_s14 + $0x8] sm:$0xff] %v418_v2  ;;  %v424_v5 = vld [vmem:[%s403_s26 + $0x40] sm:$0xff]  ;;  %v426_v6 = vld [vmem:[%s403_s26 + $0x48] sm:$0xff] }
  0x21   : > { %421 = vst [vmem:[%s400_s14 + $0x10] sm:$0xff] %v420_v3  ;;  %v428_v7 = vld [vmem:[%s403_s26 + $0x60] sm:$0xff]  ;;  %v430_v8 = vld [vmem:[%s403_s26 + $0x68] sm:$0xff] }
  0x22   : > { %423 = vst [vmem:[%s400_s14 + $0x18] sm:$0xff] %v422_v4  ;;  %v432_v9 = vld [vmem:[%s403_s26 + $0x80] sm:$0xff]  ;;  %v434_v10 = vld [vmem:[%s403_s26 + $0x88] sm:$0xff] }
  0x23   : > { %425 = vst [vmem:[%s400_s14 + $0x20] sm:$0xff] %v424_v5  ;;  %v436_v11 = vld [vmem:[%s403_s26 + $0xa0] sm:$0xff]  ;;  %v438_v12 = vld [vmem:[%s403_s26 + $0xa8] sm:$0xff] }
  0x24   : > { %427 = vst [vmem:[%s400_s14 + $0x28] sm:$0xff] %v426_v6 }
  0x25   : > { %429 = vst [vmem:[%s400_s14 + $0x30] sm:$0xff] %v428_v7 }
  0x26   : > { %431 = vst [vmem:[%s400_s14 + $0x38] sm:$0xff] %v430_v8 }
  0x27   : > { %433 = vst [vmem:[%s400_s14 + $0x40] sm:$0xff] %v432_v9 }
  0x28   : > { %435 = vst [vmem:[%s400_s14 + $0x48] sm:$0xff] %v434_v10 }
  0x29   : > { %437 = vst [vmem:[%s400_s14 + $0x50] sm:$0xff] %v436_v11 }
  0x2a   : > { %439 = vst [vmem:[%s400_s14 + $0x58] sm:$0xff] %v438_v12 }
  0x2b PF: > { %p3542_p10 = scmp.ge.s32.totalorder %s4109_s30, 1  ;;  %p444_p11 = scmp.lt.s32.totalorder %s4109_s30, 3 }
  0x2d   : > { %p445_p12 = pnand %p3542_p10, %p444_p11 }
  0x2f   : > { %448 = sbr.rel (%p445_p12) target bundleno = 1553 (0x611), region = 91 }
  0x34   : > { %v571_v13 = vld [vmem:[%s6292_s3 + $0x20] sm:$0xff]  ;;  %v572_v14 = vld [vmem:[%s6292_s3 + $0x28] sm:$0xff]  ;;  %s4252_s25 = sshll.u32 %s3536_s12, 1  ;;  %v4111_v16 = vmov 0   ;;  %v521_v17 = vld [vmem:[%s6291_s2 + $0x10] sm:$0xff]  ;;  %vm756_vm1 = vcmask 1042432  }
  0x35   : > { %v524_v15 = vld [vmem:[%s6291_s2 + $0x28] sm:$0xff]  ;;  %4046 = vset.pattern.permute.xlu2 %v4111_v16  ;;  %4045 = vset.pattern.permute.xlu1 %v4111_v16  ;;  %p500_p13 = scmp.lt.s32.totalorder %s4252_s25, 3  ;;  %v523_v19 = vld [vmem:[%s6291_s2 + $0x20] sm:$0xff]  ;;  %v522_v20 = vld [vmem:[%s6291_s2 + $0x18] sm:$0xff]  ;;  %vm683_vm2 = vcmask 23552   ;;  %s4458_s17 = sand.u32 1, %s4101_s28  }
  0x36   : > { %4044 = vset.pattern.permute.xlu0 %v4111_v16  ;;  %595 = vperm.xlu2 %4046, %v571_v13   ;;  %v569_v26 = vld [vmem:[%s6292_s3 + $0x10] sm:$0xff]  ;;  %v570_v28 = vld [vmem:[%s6292_s3 + $0x18] sm:$0xff]  ;;  %v520_v29 = vld [vmem:[%s6291_s2 + $0x8] sm:$0xff]  ;;  %s3998_s1 = smul.u32 96, %s4458_s17  ;;  %vm939_vm3 = vcmask 392192   ;;  %vm2858_vm4 = vcmask 523264   ;;  %s3455_s24 = scalar_lea.hbm %s6302_s13, %s4252_s25 }
  0x37   : > { %600 = vperm.xlu1 %4045, %v572_v14   ;;  %552 = vperm.xlu0 %4044, %v524_v15   ;;  %s501_s26 = scalar_select %p500_p13, %s4252_s25, 3  ;;  %v567_v32 = vld [vmem:[%s6292_s3] sm:$0xff]  ;;  %v568_v33 = vld [vmem:[%s6292_s3 + $0x8] sm:$0xff]  ;;  %v2536_v40 = vld [vmem:[%s6295_s6 + $0x70] sm:$0xff]  ;;  %vm3215_vm5 = vcmask 785408   ;;  %vm3436_vm6 = vcmask 1040384  }
  0x38   : > { %v519_v34 = vld [vmem:[%s6291_s2] sm:$0xff]  ;;  %v2535_v38 = vld [vmem:[%s6295_s6 + $0x68] sm:$0xff]  ;;  %v2537_v41 = vld [vmem:[%s6295_s6 + $0x78] sm:$0xff]  ;;  %s3543_s22 = sshll.u32 %s4458_s17, 1  ;;  %s4067_s23 = scalar_lea.hbm %s6302_s13, 4 }
  0x39   : > { %s3545_s14 = sshll.u32 %s501_s26, 2  ;;  %v655_v35 = vld [vmem:[%s6294_s5] sm:$0xff]  ;;  %v656_v39 = vld [vmem:[%s6294_s5 + $0x8] sm:$0xff]  ;;  %v2532_v42 = vld [vmem:[%s6295_s6 + $0x50] sm:$0xff] }
  0x3a   : > { %s503_s21 = scalar_lea.vmem %s6289_s0, %s3545_s14  ;;  %v657_v43 = vld [vmem:[%s6294_s5 + $0x10] sm:$0xff]  ;;  %v2533_v44 = vld [vmem:[%s6295_s6 + $0x58] sm:$0xff]  ;;  %v2534_v45 = vld [vmem:[%s6295_s6 + $0x60] sm:$0xff]  ;;  %s3445_s14 = scalar_lea.sflag [#allocation5], %s4458_s17 }
  0x3b   : > { %v651_v18 = vld [vmem:[%s503_s21] sm:$0x77]  ;;  %v2529_v46 = vld [vmem:[%s6295_s6 + $0x38] sm:$0xff]  ;;  %v2531_v49 = vld [vmem:[%s6295_s6 + $0x48] sm:$0xff]  ;;  %s4481_s21 = scalar_lea.vmem [#allocation3], %s3998_s1  ;;  %s498_s1 = scalar_lea.vmem [#allocation4], %s3543_s22 }
  0x3c   : > { %vm3999_vm0 = vcmp.lt.s32.totalorder %v651_v18, 0  ;;  %v4000_v21 = vceil.f32 %v651_v18  ;;  %v4001_v22 = vfloor.f32 %v651_v18  ;;  %v658_v47 = vld [vmem:[%s6294_s5 + $0x18] sm:$0xff]  ;;  %v2530_v48 = vld [vmem:[%s6295_s6 + $0x40] sm:$0xff]  ;;  %v2527_v50 = vld [vmem:[%s6295_s6 + $0x28] sm:$0xff]  ;;  %s3457_s26 = sshll.u32 %s498_s1, 4  ;;  %s3458_s26 = int_to_ptr.vmem [resolvable:$true] %s3457_s26 }
  0x3d   : > { %v659_v51 = vld [vmem:[%s6294_s5 + $0x20] sm:$0xff]  ;;  %v2545_v52 = vld [vmem:[%s6295_s6 + $0xb8] sm:$0xff]  ;;  %v2528_v53 = vld [vmem:[%s6295_s6 + $0x30] sm:$0xff] }
  0x3e   : > { %537 = vperm.xlu2 %4046, %v521_v17   ;;  %v4002_v23 = vsel %vm3999_vm0, %v4000_v21, %v4001_v22  ;;  %v2543_v54 = vld [vmem:[%s6295_s6 + $0xa8] sm:$0xff]  ;;  %v2526_v56 = vld [vmem:[%s6295_s6 + $0x20] sm:$0xff]  ;;  %v2544_v57 = vld [vmem:[%s6295_s6 + $0xb0] sm:$0xff] }
  0x3f   : > { %547 = vperm.xlu0 %4044, %v523_v19   ;;  %542 = vperm.xlu1 %4045, %v522_v20   ;;  %v4268_v24 = vcvt.f32.s32 %v4002_v23  ;;  %v660_v55 = vld [vmem:[%s6294_s5 + $0x28] sm:$0xff]  ;;  %v2524_v58 = vld [vmem:[%s6295_s6 + $0x10] sm:$0xff]  ;;  %v2542_v60 = vld [vmem:[%s6295_s6 + $0xa0] sm:$0xff] }
  0x40   : > { %v661_v59 = vld [vmem:[%s6294_s5 + $0x30] sm:$0xff]  ;;  %v2525_v61 = vld [vmem:[%s6295_s6 + $0x18] sm:$0xff]  ;;  %v2523_v1 = vld [vmem:[%s6295_s6 + $0x8] sm:$0xff] }
  0x41   : > { %v653_v25 = vand.u32 31, %v4268_v24  ;;  %v1190_v30 = vand.u32 15, %v4268_v24  ;;  %v674_v62 = vld [vmem:[%s6294_s5 + $0x98] sm:$0xff]  ;;  %v2540_v63 = vld [vmem:[%s6295_s6 + $0x90] sm:$0xff]  ;;  %v675_v3 = vld [vmem:[%s6294_s5 + $0xa0] sm:$0xff] }
  0x42   : > { %v662_v0 = vld [vmem:[%s6294_s5 + $0x38] sm:$0xff]  ;;  %v2538_v4 = vld [vmem:[%s6295_s6 + $0x80] sm:$0xff]  ;;  %v2539_v6 = vld [vmem:[%s6295_s6 + $0x88] sm:$0xff] }
  0x43   : > { %v654_v27 = vcvt.s32.f32 %v653_v25  ;;  %v1191_v31 = vcvt.s32.f32 %v1190_v30  ;;  %v2541_v2 = vld [vmem:[%s6295_s6 + $0x98] sm:$0xff]  ;;  %v663_v5 = vld [vmem:[%s6294_s5 + $0x40] sm:$0xff]  ;;  %v676_v8 = vld [vmem:[%s6294_s5 + $0xa8] sm:$0xff] }
  0x44   : > { %v2522_v7 = vld [vmem:[%s6295_s6] sm:$0xff]  ;;  %v2795_v9 = vld [vmem:[%s6297_s8 + $0x48] sm:$0xff]  ;;  %v2796_v11 = vld [vmem:[%s6297_s8 + $0x50] sm:$0xff] }
  0x45   : > { %680 = vst [vmem:[#allocation1] ss:$2 sm:$0xff] %v654_v27  ;;  %v664_v10 = vld [vmem:[%s6294_s5 + $0x48] sm:$0xff]  ;;  %v2797_v12 = vld [vmem:[%s6297_s8 + $0x58] sm:$0xff]  ;;  %v677_v13 = vld [vmem:[%s6294_s5 + $0xb0] sm:$0xff] }
  0x46   : > { %585 = vperm.xlu2 %4046, %v569_v26   ;;  %v2792_v14 = vld [vmem:[%s6297_s8 + $0x30] sm:$0xff]  ;;  %v2793_v16 = vld [vmem:[%s6297_s8 + $0x38] sm:$0xff]  ;;  %v2794_v17 = vld [vmem:[%s6297_s8 + $0x40] sm:$0xff] }
  0x47   : > { %590 = vperm.xlu0 %4044, %v570_v28   ;;  %532 = vperm.xlu1 %4045, %v520_v29   ;;  %v665_v15 = vld [vmem:[%s6294_s5 + $0x50] sm:$0xff]  ;;  %v678_v18 = vld [vmem:[%s6294_s5 + $0xb8] sm:$0xff]  ;;  %v2790_v22 = vld [vmem:[%s6297_s8 + $0x20] sm:$0xff] }
  0x48   : > { %v2789_v19 = vld [vmem:[%s6297_s8 + $0x18] sm:$0xff]  ;;  %v2791_v23 = vld [vmem:[%s6297_s8 + $0x28] sm:$0xff] }
  0x49   : > { %v666_v20 = vld [vmem:[%s6294_s5 + $0x58] sm:$0xff]  ;;  %v518_v26 = vld [vmem:[%s4481_s21 + $0x58] sm:$0xff] }
  0x4a   : > { %v517_v25 = vld [vmem:[%s4481_s21 + $0x50] sm:$0xff] }
  0x4c   : > { %v681_v36 = vld.sshfl [vmem:[#allocation1] sm:$0xff pattern:$0x75316420]  ;;  %v682_v37 = vld.sshfl [vmem:[#allocation1 + $0x8] sm:$0xff pattern:$0x75316420] }
  0x4d   : > { %3546 = vmatpush.msk.msra.mxu0 %vm756_vm1, %v681_v36  ;;  %3571 = vmatpush.msk.msra.mxu1 %vm756_vm1, %v682_v37  ;;  %1218 = vst [vmem:[#allocation1] ss:$2 sm:$0xff] %v1191_v31  ;;  %v2786_v31 = vld [vmem:[%s6297_s8] sm:$0xff] }
  0x4e   : > { %575 = vperm.xlu2 %4046, %v567_v32   ;;  %3547 = vmatmul.msk.f32.vlgmr.msra.gmra.mxu0 %vm683_vm2, %v655_v35  ;;  %v667_v32 = vld [vmem:[%s6294_s5 + $0x60] sm:$0xff] }
  0x4f   : > { %580 = vperm.xlu1 %4045, %v568_v33   ;;  %527 = vperm.xlu0 %4044, %v519_v34   ;;  %v2787_v33 = vld [vmem:[%s6297_s8 + $0x8] sm:$0xff]  ;;  %v2788_v34 = vld [vmem:[%s6297_s8 + $0x10] sm:$0xff] }
  0x50   : > { %3572 = vmatmul.msk.f32.vlgmr.msra.gmra.mxu1 %vm683_vm2, %v655_v35  ;;  %3995 = vmatpush.msk.msra.mxu2 %vm756_vm1, %v681_v36 }
  0x51   : > { %3996 = vmatpush.msk.msra.mxu3 %vm756_vm1, %v682_v37  ;;  %3566 = vmatmul.msk.f32.vlgmr.msra.gmra.mxu2 %vm683_vm2, %v674_v62 }
  0x52   : > { %3591 = vmatmul.msk.f32.vlgmr.msra.gmra.mxu3 %vm683_vm2, %v674_v62 }
  0x56   : > { %2613 = vperm.xlu2 %4046, %v2535_v38   ;;  %3548 = vmatmul.msk.f32.gmra.mxu0 %vm683_vm2, %v656_v39 }
  0x57   : > { %2618 = vperm.xlu1 %4045, %v2536_v40   ;;  %2623 = vperm.xlu0 %4044, %v2537_v41   ;;  %v515_v40 = vld [vmem:[%s4481_s21 + $0x40] sm:$0xff]  ;;  %v516_v41 = vld [vmem:[%s4481_s21 + $0x48] sm:$0xff] }
  0x58   : > { %3573 = vmatmul.msk.f32.gmra.mxu1 %vm683_vm2, %v656_v39 }
  0x59   : > { %3567 = vmatmul.msk.f32.gmra.mxu2 %vm683_vm2, %v675_v3 }
  0x5a   : > { %3592 = vmatmul.msk.f32.gmra.mxu3 %vm683_vm2, %v675_v3 }
  0x5e   : > { %2598 = vperm.xlu2 %4046, %v2532_v42   ;;  %3549 = vmatmul.msk.f32.gmra.mxu0 %vm683_vm2, %v657_v43 }
  0x5f   : > { %2603 = vperm.xlu1 %4045, %v2533_v44   ;;  %2608 = vperm.xlu0 %4044, %v2534_v45  }
  0x60   : > { %3574 = vmatmul.msk.f32.gmra.mxu1 %vm683_vm2, %v657_v43 }
  0x61   : > { %3568 = vmatmul.msk.f32.gmra.mxu2 %vm683_vm2, %v676_v8 }
  0x62   : > { %3593 = vmatmul.msk.f32.gmra.mxu3 %vm683_vm2, %v676_v8  ;;  %v3149_v8 = vld [vmem:[%s6299_s10 + $0x30] sm:$0xff] }
  0x66   : > { %2583 = vperm.xlu2 %4046, %v2529_v46   ;;  %3550 = vmatmul.msk.f32.gmra.mxu0 %vm683_vm2, %v658_v47  ;;  %v3152_v46 = vld [vmem:[%s6299_s10 + $0x48] sm:$0xff] }
  0x67   : > { %2588 = vperm.xlu1 %4045, %v2530_v48   ;;  %2593 = vperm.xlu0 %4044, %v2531_v49   ;;  %v511_v48 = vld [vmem:[%s4481_s21 + $0x20] sm:$0xff] }
  0x68   : > { %3575 = vmatmul.msk.f32.gmra.mxu1 %vm683_vm2, %v658_v47  ;;  %v668_v47 = vld [vmem:[%s6294_s5 + $0x68] sm:$0xff]  ;;  %v3153_v49 = vld [vmem:[%s6299_s10 + $0x50] sm:$0xff] }
  0x69   : > { %3569 = vmatmul.msk.f32.gmra.mxu2 %vm683_vm2, %v677_v13 }
  0x6a   : > { %3594 = vmatmul.msk.f32.gmra.mxu3 %vm683_vm2, %v677_v13 }
  0x6e   : > { %2573 = vperm.xlu2 %4046, %v2527_v50   ;;  %3551 = vmatmul.msk.f32.gmra.mxu0 %vm683_vm2, %v659_v51  ;;  %v3154_v50 = vld [vmem:[%s6299_s10 + $0x58] sm:$0xff] }
  0x6f   : > { %2663 = vperm.xlu1 %4045, %v2545_v52   ;;  %2578 = vperm.xlu0 %4044, %v2528_v53   ;;  %v512_v53 = vld [vmem:[%s4481_s21 + $0x28] sm:$0xff] }
  0x70   : > { %3576 = vmatmul.msk.f32.gmra.mxu1 %vm683_vm2, %v659_v51 }
  0x71   : > { %3570 = vmatmul.msk.f32.gmra.mxu2 %vm683_vm2, %v678_v18 }
  0x72   : > { %3595 = vmatmul.msk.f32.gmra.mxu3 %vm683_vm2, %v678_v18 }
  0x76   : > { %2653 = vperm.xlu2 %4046, %v2543_v54   ;;  %3552 = vmatmul.msk.f32.gmra.mxu0 %vm683_vm2, %v660_v55  ;;  %v513_v54 = vld [vmem:[%s4481_s21 + $0x30] sm:$0xff] }
  0x77   : > { %2568 = vperm.xlu1 %4045, %v2526_v56   ;;  %2658 = vperm.xlu0 %4044, %v2544_v57  }
  0x78   : > { %3577 = vmatmul.msk.f32.gmra.mxu1 %vm683_vm2, %v660_v55  ;;  %v514_v55 = vld [vmem:[%s4481_s21 + $0x38] sm:$0xff] }
  0x7e   : > { %2558 = vperm.xlu2 %4046, %v2524_v58   ;;  %3553 = vmatmul.msk.f32.gmra.mxu0 %vm683_vm2, %v661_v59 }
  0x7f   : > { %2648 = vperm.xlu1 %4045, %v2542_v60   ;;  %2563 = vperm.xlu0 %4044, %v2525_v61  }
  0x80   : > { %3578 = vmatmul.msk.f32.gmra.mxu1 %vm683_vm2, %v661_v59 }
  0x86   : > { %2638 = vperm.xlu2 %4046, %v2540_v63   ;;  %3554 = vmatmul.msk.f32.gmra.mxu0 %vm683_vm2, %v662_v0 }
  0x87   : > { %2553 = vperm.xlu1 %4045, %v2523_v1   ;;  %2643 = vperm.xlu0 %4044, %v2541_v2  }
  0x88   : > { %3579 = vmatmul.msk.f32.gmra.mxu1 %vm683_vm2, %v662_v0 }
  0x8e   : > { %2628 = vperm.xlu2 %4046, %v2538_v4   ;;  %3555 = vmatmul.msk.f32.gmra.mxu0 %vm683_vm2, %v663_v5 }
  0x8f   : > { %2633 = vperm.xlu1 %4045, %v2539_v6   ;;  %2548 = vperm.xlu0 %4044, %v2522_v7  }
  0x90   : > { %3580 = vmatmul.msk.f32.gmra.mxu1 %vm683_vm2, %v663_v5  ;;  %v596_v21 = vpop.permute.xlu2 %595  ;;  %v509_v5 = vld [vmem:[%s4481_s21 + $0x10] sm:$0xff] }
  0x96   : > { %2845 = vperm.xlu2 %4046, %v2795_v9   ;;  %3556 = vmatmul.msk.f32.gmra.mxu0 %vm683_vm2, %v664_v10  ;;  %v3150_v9 = vld [vmem:[%s6299_s10 + $0x38] sm:$0xff] }
  0x97   : > { %2850 = vperm.xlu1 %4045, %v2796_v11   ;;  %2855 = vperm.xlu0 %4044, %v2797_v12   ;;  %v3151_v11 = vld [vmem:[%s6299_s10 + $0x40] sm:$0xff]  ;;  %v669_v12 = vld [vmem:[%s6294_s5 + $0x70] sm:$0xff] }
  0x98   : > { %3581 = vmatmul.msk.f32.gmra.mxu1 %vm683_vm2, %v664_v10  ;;  %v538_v37 = vpop.permute.xlu2 %537  ;;  %v510_v10 = vld [vmem:[%s4481_s21 + $0x18] sm:$0xff] }
  0x99   : > { %v559_v58 = vmul.f32 %v538_v37, %v511_v48  ;;  %v560_v59 = vmul.f32 %v538_v37, %v512_v53  ;;  %v1523_v37 = vand.u32 7, %v4268_v24  ;;  %v628_v48 = vld [vmem:[%s6293_s4 + $0x8] sm:$0xff]  ;;  %v629_v53 = vld [vmem:[%s6293_s4 + $0x10] sm:$0xff] }
  0x9e   : > { %2830 = vperm.xlu2 %4046, %v2792_v14   ;;  %3557 = vmatmul.msk.f32.gmra.mxu0 %vm683_vm2, %v665_v15  ;;  %v507_v14 = vld [vmem:[%s4481_s21] sm:$0xff] }
  0x9f   : > { %2835 = vperm.xlu1 %4045, %v2793_v16   ;;  %2840 = vperm.xlu0 %4044, %v2794_v17  }
  0xa0   : > { %3582 = vmatmul.msk.f32.gmra.mxu1 %vm683_vm2, %v665_v15  ;;  %v586_v60 = vpop.permute.xlu2 %585  ;;  %v508_v15 = vld [vmem:[%s4481_s21 + $0x8] sm:$0xff]  ;;  %s3459_s21 = sshll.u32 %s3455_s24, 4  ;;  %s3460_s21 = int_to_ptr.hbm [resolvable:$true] %s3459_s21 }
  0xa1   : > { %v607_v3 = vadd.f32 %v586_v60, %v559_v58  ;;  %v608_v4 = vadd.f32 %v586_v60, %v560_v59  ;;  %v3644_v60 = vld [vmem:[%s6294_s5 + $0xc0] sm:$0xff]  ;;  %s4061_s25 = sshra.s32 %s3460_s21, 4  ;;  %s4062_s25 = int_to_ptr.hbm [resolvable:$true] %s4061_s25 }
  0xa2   : > { %s4063_s16 = scalar_lea.hbm %s4062_s25, 2  ;;  %p4068_p3 = scmp.lt.s32.totalorder %s4062_s25, %s6302_s13 }
  0xa3   : > { %v619_v13 = vmax.f32 %v607_v3, 0.0  ;;  %v620_v18 = vmax.f32 %v608_v4, 0.0  ;;  %v3646_v4 = vld [vmem:[%s6294_s5 + $0xd0] sm:$0xff]  ;;  %p4064_p0 = scmp.ne.s32.totalorder %s4062_s25, %s4063_s16  ;;  %p4069_p4 = scmp.lt.s32.totalorder %s4067_s23, %s4063_s16 }
  0xa5   : > { %p4065_p1 = pnand %p4064_p0, %p4223_p6  ;;  %p4070_p5 = por %p4069_p4, %p4068_p3 }
  0xa6   : > { %2815 = vperm.xlu2 %4046, %v2789_v19   ;;  %3558 = vmatmul.msk.f32.gmra.mxu0 %vm683_vm2, %v666_v20 }
  0xa7   : > { %2820 = vperm.xlu1 %4045, %v2790_v22   ;;  %2825 = vperm.xlu0 %4044, %v2791_v23   ;;  %p4066_p2 = pneg %p4065_p1 }
  0xa8   : > { %3583 = vmatmul.msk.f32.gmra.mxu1 %vm683_vm2, %v666_v20 }
  0xa9   : > { %v601_v27 = vpop.permute.xlu1 %600  ;;  %v553_v28 = vpop.permute.xlu0 %552  ;;  %p4071_p7 = pnand %p4070_p5, %p4066_p2 }
  0xaa   : > { %v565_v29 = vmul.f32 %v553_v28, %v517_v25  ;;  %v566_v30 = vmul.f32 %v553_v28, %v518_v26  ;;  %v576_v26 = vpop.permute.xlu2 %575 }
  0xac   : > { %v613_v35 = vadd.f32 %v601_v27, %v565_v29  ;;  %v614_v36 = vadd.f32 %v601_v27, %v566_v30  ;;  %v3146_v29 = vld [vmem:[%s6299_s10 + $0x18] sm:$0xff]  ;;  %v3147_v30 = vld [vmem:[%s6299_s10 + $0x20] sm:$0xff] }
  0xae   : > { %2800 = vperm.xlu2 %4046, %v2786_v31   ;;  %3559 = vmatmul.msk.f32.gmra.mxu0 %vm683_vm2, %v667_v32  ;;  %v625_v38 = vmax.f32 %v613_v35, 0.0  ;;  %v626_v39 = vmax.f32 %v614_v36, 0.0 }
  0xaf   : > { %2805 = vperm.xlu1 %4045, %v2787_v33   ;;  %2810 = vperm.xlu0 %4044, %v2788_v34   ;;  %v3148_v33 = vld [vmem:[%s6299_s10 + $0x28] sm:$0xff]  ;;  %v670_v34 = vld [vmem:[%s6294_s5 + $0x78] sm:$0xff] }
  0xb0   : > { %3584 = vmatmul.msk.f32.gmra.mxu1 %vm683_vm2, %v667_v32  ;;  %1022 = vmatpush.msrb.mxu2 %v625_v38  ;;  %v627_v38 = vld [vmem:[%s6293_s4] sm:$0xff] }
  0xb1   : > { %1111 = vmatpush.msrb.mxu3 %v626_v39  ;;  %v548_v42 = vpop.permute.xlu0 %547  ;;  %v543_v43 = vpop.permute.xlu1 %542  ;;  %v1219_v39 = vld.sshfl [vmem:[#allocation1] sm:$0xff pattern:$0x75316420] }
  0xb2   : > { %v563_v44 = vmul.f32 %v548_v42, %v515_v40  ;;  %v564_v45 = vmul.f32 %v548_v42, %v516_v41  ;;  %v561_v61 = vmul.f32 %v543_v43, %v513_v54  ;;  %v562_v62 = vmul.f32 %v543_v43, %v514_v55  ;;  %v1220_v41 = vld.sshfl [vmem:[#allocation1 + $0x8] sm:$0xff pattern:$0x75316420]  ;;  %3668 = vmatpush.msk.msrb.mxu0 %vm756_vm1, %v1219_v39  ;;  %v3143_v43 = vld [vmem:[%s6299_s10] sm:$0xff] }
  0xb3   : > { %v1524_v40 = vcvt.s32.f32 %v1523_v37  ;;  %3693 = vmatpush.msk.msrb.mxu1 %vm756_vm1, %v1220_v41  ;;  %v3654_v41 = vld [vmem:[%s6294_s5 + $0x110] sm:$0xff] }
  0xb4   : > { %v611_v51 = vadd.f32 %v596_v21, %v563_v44  ;;  %v612_v52 = vadd.f32 %v596_v21, %v564_v45  ;;  %v3144_v44 = vld [vmem:[%s6299_s10 + $0x8] sm:$0xff] }
  0xb5   : > { %1551 = vst [vmem:[#allocation1] ss:$2 sm:$0xff] %v1524_v40 }
  0xb6   : > { %3202 = vperm.xlu2 %4046, %v3152_v46   ;;  %3560 = vmatmul.msk.f32.gmra.mxu0 %vm683_vm2, %v668_v47  ;;  %v623_v56 = vmax.f32 %v611_v51, 0.0  ;;  %v624_v57 = vmax.f32 %v612_v52, 0.0  ;;  %v3145_v46 = vld [vmem:[%s6299_s10 + $0x10] sm:$0xff]  ;;  %v3383_v51 = vld [vmem:[#allocation2] sm:$0x1] }
  0xb7   : > { %3207 = vperm.xlu1 %4045, %v3153_v49   ;;  %3212 = vperm.xlu0 %4044, %v3154_v50   ;;  %v672_v52 = vld [vmem:[%s6294_s5 + $0x88] sm:$0xff] }
  0xb8   : > { %3585 = vmatmul.msk.f32.gmra.mxu1 %vm683_vm2, %v668_v47  ;;  %1023 = vmatpush.msrb.mxu2 %v623_v56  ;;  %v671_v47 = vld [vmem:[%s6294_s5 + $0x80] sm:$0xff]  ;;  %v673_v56 = vld [vmem:[%s6294_s5 + $0x90] sm:$0xff] }
  0xb9   : > { %1112 = vmatpush.msrb.mxu3 %v624_v57  ;;  %v591_v63 = vpop.permute.xlu0 %590  ;;  %v533_v0 = vpop.permute.xlu1 %532  ;;  %v630_v57 = vld [vmem:[%s6293_s4 + $0x18] sm:$0xff] }
  0xba   : > { %v609_v1 = vadd.f32 %v591_v63, %v561_v61  ;;  %v610_v2 = vadd.f32 %v591_v63, %v562_v62  ;;  %v557_v16 = vmul.f32 %v533_v0, %v509_v5  ;;  %v558_v17 = vmul.f32 %v533_v0, %v510_v10  ;;  %v631_v61 = vld [vmem:[%s6293_s4 + $0x20] sm:$0xff]  ;;  %v3645_v0 = vld [vmem:[%s6294_s5 + $0xc8] sm:$0xff]  ;;  %v633_v5 = vld [vmem:[%s6293_s4 + $0x30] sm:$0xff] }
  0xbc   : > { %v621_v6 = vmax.f32 %v609_v1, 0.0  ;;  %v622_v7 = vmax.f32 %v610_v2, 0.0  ;;  %v632_v1 = vld [vmem:[%s6293_s4 + $0x28] sm:$0xff] }
  0xbe   : > { %1024 = vmatpush.msrb.mxu2 %v621_v6  ;;  %1113 = vmatpush.msrb.mxu3 %v622_v7 }
  0xbf   : > { %3187 = vperm.xlu2 %4046, %v3149_v8   ;;  %3192 = vperm.xlu1 %4045, %v3150_v9   ;;  %v3647_v8 = vld [vmem:[%s6294_s5 + $0xd8] sm:$0xff] }
  0xc0   : > { %3197 = vperm.xlu0 %4044, %v3151_v11   ;;  %3561 = vmatmul.msk.f32.gmra.mxu0 %vm683_vm2, %v669_v12  ;;  %v634_v9 = vld [vmem:[%s6293_s4 + $0x38] sm:$0xff] }
  0xc1   : > { %3586 = vmatmul.msk.f32.gmra.mxu1 %vm683_vm2, %v669_v12  ;;  %1025 = vmatpush.msrb.mxu2 %v619_v13  ;;  %v581_v19 = vpop.permute.xlu1 %580  ;;  %v528_v20 = vpop.permute.xlu0 %527  ;;  %v3648_v12 = vld [vmem:[%s6294_s5 + $0xe0] sm:$0xff] }
  0xc2   : > { %1114 = vmatpush.msrb.mxu3 %v620_v18  ;;  %v605_v21 = vadd.f32 %v581_v19, %v557_v16  ;;  %v606_v22 = vadd.f32 %v581_v19, %v558_v17  ;;  %v555_v23 = vmul.f32 %v528_v20, %v507_v14  ;;  %v556_v25 = vmul.f32 %v528_v20, %v508_v15  ;;  %v635_v13 = vld [vmem:[%s6293_s4 + $0x40] sm:$0xff]  ;;  %v3649_v16 = vld [vmem:[%s6294_s5 + $0xe8] sm:$0xff]  ;;  %v3650_v18 = vld [vmem:[%s6294_s5 + $0xf0] sm:$0xff] }
  0xc3   : > { %v636_v17 = vld [vmem:[%s6293_s4 + $0x48] sm:$0xff] }
  0xc4   : > { %v617_v27 = vmax.f32 %v605_v21, 0.0  ;;  %v618_v28 = vmax.f32 %v606_v22, 0.0  ;;  %v603_v31 = vadd.f32 %v576_v26, %v555_v23  ;;  %v604_v32 = vadd.f32 %v576_v26, %v556_v25  ;;  %v637_v21 = vld [vmem:[%s6293_s4 + $0x50] sm:$0xff]  ;;  %v3651_v25 = vld [vmem:[%s6294_s5 + $0xf8] sm:$0xff] }
  0xc5   : > { %v638_v26 = vld [vmem:[%s6293_s4 + $0x58] sm:$0xff] }
  0xc6   : > { %1026 = vmatpush.msrb.mxu2 %v617_v27  ;;  %1115 = vmatpush.msrb.mxu3 %v618_v28  ;;  %v615_v35 = vmax.f32 %v603_v31, 0.0  ;;  %v616_v36 = vmax.f32 %v604_v32, 0.0  ;;  %v639_v32 = vld [vmem:[%s6293_s4 + $0x60] sm:$0xff] }
  0xc7   : > { %3172 = vperm.xlu2 %4046, %v3146_v29   ;;  %3177 = vperm.xlu1 %4045, %v3147_v30   ;;  %v3652_v29 = vld [vmem:[%s6294_s5 + $0x100] sm:$0xff] }
  0xc8   : > { %3182 = vperm.xlu0 %4044, %v3148_v33   ;;  %3562 = vmatmul.msk.f32.gmra.mxu0 %vm683_vm2, %v670_v34 }
  0xc9   : > { %3587 = vmatmul.msk.f32.gmra.mxu1 %vm683_vm2, %v670_v34  ;;  %1027 = vmatpush.msrb.mxu2 %v615_v35  ;;  %v3653_v35 = vld [vmem:[%s6294_s5 + $0x108] sm:$0xff] }
  0xca   : > { %1116 = vmatpush.msrb.mxu3 %v616_v36  ;;  %3596 = vmatmul.msk.f32.vlgmr.msrb.gmra.mxu2 %vm939_vm3, %v627_v38  ;;  %v640_v36 = vld [vmem:[%s6293_s4 + $0x68] sm:$0xff] }
  0xcb   : > { %3620 = vmatmul.msk.f32.vlgmr.msrb.gmra.mxu3 %vm939_vm3, %v627_v38  ;;  %v4558_v42 = vpop.f32.mrf.mxu0 }
  0xcd   : > { %v4568_v45 = vpop.f32.mrf.mxu1 }
  0xcf   : > { %3157 = vperm.xlu2 %4046, %v3143_v43   ;;  %3162 = vperm.xlu1 %4045, %v3144_v44   ;;  %v641_v43 = vld [vmem:[%s6293_s4 + $0x70] sm:$0xff] }
  0xd0   : > { %3167 = vperm.xlu0 %4044, %v3145_v46   ;;  %3563 = vmatmul.msk.f32.gmra.mxu0 %vm683_vm2, %v671_v47 }
  0xd1   : > { %3588 = vmatmul.msk.f32.gmra.mxu1 %vm683_vm2, %v671_v47  ;;  %v3655_v47 = vld [vmem:[%s6294_s5 + $0x118] sm:$0xff] }
  0xd2   : > { %3597 = vmatmul.msk.f32.gmra.mxu2 %vm939_vm3, %v628_v48 }
  0xd3   : > { %3621 = vmatmul.msk.f32.gmra.mxu3 %vm939_vm3, %v628_v48  ;;  %v4583_v49 = vpop.f32.mrf.mxu0 }
  0xd4   : > { %v4709_v22 = vpop.f32.mrf.mxu2 }
  0xd5   : > { %v4585_v50 = vpop.f32.mrf.mxu1  ;;  %6315 = vst [vmem:[#allocation9_spill] sm:$0xff] %v4709_v22  ;;  %v4711_v23 = vpop.f32.mrf.mxu3 }
  0xd6   : > { %6316 = vst [vmem:[#allocation10_spill] sm:$0xff] %v4711_v23  ;;  %v3664_v23 = vld [vmem:[%s6294_s5 + $0x160] sm:$0xff] }
  0xd8   : > { %3386 = vperm.xlu0 %4044, %v3383_v51   ;;  %3564 = vmatmul.msk.f32.gmra.mxu0 %vm683_vm2, %v672_v52 }
  0xd9   : > { %3589 = vmatmul.msk.f32.gmra.mxu1 %vm683_vm2, %v672_v52  ;;  %v642_v52 = vld [vmem:[%s6293_s4 + $0x78] sm:$0xff] }
  0xda   : > { %3598 = vmatmul.msk.f32.gmra.mxu2 %vm939_vm3, %v629_v53 }
  0xdb   : > { %3622 = vmatmul.msk.f32.gmra.mxu3 %vm939_vm3, %v629_v53  ;;  %v4597_v54 = vpop.f32.mrf.mxu0 }
  0xdc   : > { %v4730_v30 = vpop.f32.mrf.mxu2 }
  0xdd   : > { %v4599_v55 = vpop.f32.mrf.mxu1  ;;  %6319 = vst [vmem:[#allocation13_spill] sm:$0xff] %v4730_v30  ;;  %v4732_v31 = vpop.f32.mrf.mxu3 }
  0xde   : > { %6320 = vst [vmem:[#allocation14_spill] sm:$0xff] %v4732_v31 }
  0xe0   : > { %3565 = vmatmul.msk.f32.gmra.mxu0 %vm683_vm2, %v673_v56 }
  0xe1   : > { %3590 = vmatmul.msk.f32.gmra.mxu1 %vm683_vm2, %v673_v56 }
  0xe2   : > { %3599 = vmatmul.msk.f32.gmra.mxu2 %vm939_vm3, %v630_v57 }
  0xe3   : > { %3623 = vmatmul.msk.f32.gmra.mxu3 %vm939_vm3, %v630_v57  ;;  %v4611_v58 = vpop.f32.mrf.mxu0  ;;  %v3656_v57 = vld [vmem:[%s6294_s5 + $0x120] sm:$0xff] }
  0xe4   : > { %v4751_v37 = vpop.f32.mrf.mxu2 }
  0xe5   : > { %v4613_v59 = vpop.f32.mrf.mxu1  ;;  %6323 = vst [vmem:[#allocation17_spill] sm:$0xff] %v4751_v37  ;;  %v4754_v38 = vpop.f32.mrf.mxu3 }
  0xe6   : > { %6324 = vst [vmem:[#allocation18_spill] sm:$0xff] %v4754_v38  ;;  %v2189_v38 = vand.u32 1, %v4268_v24 }
  0xe8   : > { %3669 = vmatmul.msk.f32.vlgmr.msrb.gmra.mxu0 %vm683_vm2, %v3644_v60 }
  0xe9   : > { %3694 = vmatmul.msk.f32.vlgmr.msrb.gmra.mxu1 %vm683_vm2, %v3644_v60  ;;  %v643_v60 = vld [vmem:[%s6293_s4 + $0x80] sm:$0xff] }
  0xea   : > { %3600 = vmatmul.msk.f32.gmra.mxu2 %vm939_vm3, %v631_v61 }
  0xeb   : > { %3624 = vmatmul.msk.f32.gmra.mxu3 %vm939_vm3, %v631_v61  ;;  %v4625_v62 = vpop.f32.mrf.mxu0 }
  0xec   : > { %v4771_v44 = vpop.f32.mrf.mxu2 }
  0xed   : > { %v4627_v63 = vpop.f32.mrf.mxu1  ;;  %6327 = vst [vmem:[#allocation21_spill] sm:$0xff] %v4771_v44  ;;  %v4774_v46 = vpop.f32.mrf.mxu3 }
  0xee   : > { %6328 = vst [vmem:[#allocation22_spill] sm:$0xff] %v4774_v46  ;;  %v3663_v46 = vld [vmem:[%s6294_s5 + $0x158] sm:$0xff] }
  0xf0   : > { %3670 = vmatmul.msk.f32.gmra.mxu0 %vm683_vm2, %v3645_v0 }
  0xf1   : > { %3695 = vmatmul.msk.f32.gmra.mxu1 %vm683_vm2, %v3645_v0 }
  0xf2   : > { %3601 = vmatmul.msk.f32.gmra.mxu2 %vm939_vm3, %v632_v1 }
  0xf3   : > { %3625 = vmatmul.msk.f32.gmra.mxu3 %vm939_vm3, %v632_v1  ;;  %v4639_v2 = vpop.f32.mrf.mxu0 }
  0xf4   : > { %v4791_v53 = vpop.f32.mrf.mxu2 }
  0xf5   : > { %v4641_v3 = vpop.f32.mrf.mxu1  ;;  %6331 = vst [vmem:[#allocation25_spill] sm:$0xff] %v4791_v53  ;;  %v4793_v56 = vpop.f32.mrf.mxu3 }
  0xf6   : > { %6332 = vst [vmem:[#allocation26_spill] sm:$0xff] %v4793_v56  ;;  %v649_v56 = vld [vmem:[%s6293_s4 + $0xb0] sm:$0xff] }
  0xf8   : > { %3671 = vmatmul.msk.f32.gmra.mxu0 %vm683_vm2, %v3646_v4 }
  0xf9   : > { %3696 = vmatmul.msk.f32.gmra.mxu1 %vm683_vm2, %v3646_v4  ;;  %v3657_v4 = vld [vmem:[%s6294_s5 + $0x128] sm:$0xff] }
  0xfa   : > { %3602 = vmatmul.msk.f32.gmra.mxu2 %vm939_vm3, %v633_v5 }
  0xfb   : > { %3626 = vmatmul.msk.f32.gmra.mxu3 %vm939_vm3, %v633_v5  ;;  %v4653_v6 = vpop.f32.mrf.mxu0 }
  0xfd   : > { %v4655_v7 = vpop.f32.mrf.mxu1 }
 0x100   : > { %3672 = vmatmul.msk.f32.gmra.mxu0 %vm683_vm2, %v3647_v8 }
 0x101   : > { %3697 = vmatmul.msk.f32.gmra.mxu1 %vm683_vm2, %v3647_v8  ;;  %v644_v8 = vld [vmem:[%s6293_s4 + $0x88] sm:$0xff] }
 0x102   : > { %3603 = vmatmul.msk.f32.gmra.mxu2 %vm939_vm3, %v634_v9 }
 0x103   : > { %3627 = vmatmul.msk.f32.gmra.mxu3 %vm939_vm3, %v634_v9  ;;  %v4667_v10 = vpop.f32.mrf.mxu0 }
 0x105   : > { %v4669_v11 = vpop.f32.mrf.mxu1 }
 0x108   : > { %3673 = vmatmul.msk.f32.gmra.mxu0 %vm683_vm2, %v3648_v12 }
 0x109   : > { %3698 = vmatmul.msk.f32.gmra.mxu1 %vm683_vm2, %v3648_v12 }
 0x10a   : > { %3604 = vmatmul.msk.f32.gmra.mxu2 %vm939_vm3, %v635_v13 }
 0x10b   : > { %3628 = vmatmul.msk.f32.gmra.mxu3 %vm939_vm3, %v635_v13  ;;  %v4681_v14 = vpop.f32.mrf.mxu0 }
 0x10d   : > { %v4683_v15 = vpop.f32.mrf.mxu1 }
 0x110   : > { %3674 = vmatmul.msk.f32.gmra.mxu0 %vm683_vm2, %v3649_v16 }
 0x111   : > { %3699 = vmatmul.msk.f32.gmra.mxu1 %vm683_vm2, %v3649_v16  ;;  %v3658_v16 = vld [vmem:[%s6294_s5 + $0x130] sm:$0xff] }
 0x112   : > { %3605 = vmatmul.msk.f32.gmra.mxu2 %vm939_vm3, %v636_v17 }
 0x113   : > { %3629 = vmatmul.msk.f32.gmra.mxu3 %vm939_vm3, %v636_v17  ;;  %v4698_v19 = vpop.f32.mrf.mxu0 }
 0x115   : > { %v4700_v20 = vpop.f32.mrf.mxu1 }
 0x116   : > { %6314 = vst [vmem:[#allocation8_spill] sm:$0xff] %v4700_v20  ;;  %v3805_v20 = vld [vmem:[%s6294_s5 + $0x2a8] sm:$0xff] }
 0x118   : > { %3675 = vmatmul.msk.f32.gmra.mxu0 %vm683_vm2, %v3650_v18 }
 0x119   : > { %3700 = vmatmul.msk.f32.gmra.mxu1 %vm683_vm2, %v3650_v18  ;;  %v645_v18 = vld [vmem:[%s6293_s4 + $0x90] sm:$0xff] }
 0x11a   : > { %3606 = vmatmul.msk.f32.gmra.mxu2 %vm939_vm3, %v637_v21 }
 0x11b   : > { %3630 = vmatmul.msk.f32.gmra.mxu3 %vm939_vm3, %v637_v21  ;;  %v4719_v27 = vpop.f32.mrf.mxu0  ;;  %v1553_v21 = vld.sshfl [vmem:[#allocation1 + $0x8] sm:$0xff pattern:$0x75316420] }
 0x11c   : > { %6317 = vst [vmem:[#allocation11_spill] sm:$0xff] %v4719_v27  ;;  %3767 = vmatpush.msk.msra.mxu3 %vm756_vm1, %v1553_v21  ;;  %v3661_v21 = vld [vmem:[%s6294_s5 + $0x148] sm:$0xff] }
 0x11d   : > { %v4722_v28 = vpop.f32.mrf.mxu1 }
 0x11e   : > { %6318 = vst [vmem:[#allocation12_spill] sm:$0xff] %v4722_v28  ;;  %v3726_v28 = vld [vmem:[%s6294_s5 + $0x1c0] sm:$0xff] }
 0x120   : > { %3676 = vmatmul.msk.f32.gmra.mxu0 %vm683_vm2, %v3651_v25 }
 0x121   : > { %3701 = vmatmul.msk.f32.gmra.mxu1 %vm683_vm2, %v3651_v25 }
 0x122   : > { %3607 = vmatmul.msk.f32.gmra.mxu2 %vm939_vm3, %v638_v26 }
 0x123   : > { %3631 = vmatmul.msk.f32.gmra.mxu3 %vm939_vm3, %v638_v26  ;;  %v4739_v33 = vpop.f32.mrf.mxu0 }
 0x124   : > { %6321 = vst [vmem:[#allocation15_spill] sm:$0xff] %v4739_v33  ;;  %v3725_v33 = vld [vmem:[%s6294_s5 + $0x1b8] sm:$0xff] }
 0x125   : > { %v4742_v34 = vpop.f32.mrf.mxu1 }
 0x126   : > { %6322 = vst [vmem:[#allocation16_spill] sm:$0xff] %v4742_v34 }
 0x128   : > { %3677 = vmatmul.msk.f32.gmra.mxu0 %vm683_vm2, %v3652_v29 }
 0x129   : > { %3702 = vmatmul.msk.f32.gmra.mxu1 %vm683_vm2, %v3652_v29 }
 0x12a   : > { %3608 = vmatmul.msk.f32.gmra.mxu2 %vm939_vm3, %v639_v32 }
 0x12b   : > { %3632 = vmatmul.msk.f32.gmra.mxu3 %vm939_vm3, %v639_v32  ;;  %v4759_v39 = vpop.f32.mrf.mxu0  ;;  %v3659_v32 = vld [vmem:[%s6294_s5 + $0x138] sm:$0xff] }
 0x12c   : > { %6325 = vst [vmem:[#allocation19_spill] sm:$0xff] %v4759_v39  ;;  %v3793_v39 = vld [vmem:[%s6294_s5 + $0x248] sm:$0xff] }
 0x12d   : > { %v4761_v40 = vpop.f32.mrf.mxu1 }
 0x12e   : > { %6326 = vst [vmem:[#allocation20_spill] sm:$0xff] %v4761_v40 }
 0x130   : > { %3678 = vmatmul.msk.f32.gmra.mxu0 %vm683_vm2, %v3653_v35 }
 0x131   : > { %3703 = vmatmul.msk.f32.gmra.mxu1 %vm683_vm2, %v3653_v35 }
 0x132   : > { %3609 = vmatmul.msk.f32.gmra.mxu2 %vm939_vm3, %v640_v36 }
 0x133   : > { %3633 = vmatmul.msk.f32.gmra.mxu3 %vm939_vm3, %v640_v36  ;;  %v4780_v48 = vpop.f32.mrf.mxu0  ;;  %v646_v36 = vld [vmem:[%s6293_s4 + $0x98] sm:$0xff] }
 0x134   : > { %6329 = vst [vmem:[#allocation23_spill] sm:$0xff] %v4780_v48 }
 0x135   : > { %v4782_v51 = vpop.f32.mrf.mxu1 }
 0x136   : > { %6330 = vst [vmem:[#allocation24_spill] sm:$0xff] %v4782_v51 }
 0x138   : > { %3679 = vmatmul.msk.f32.gmra.mxu0 %vm683_vm2, %v3654_v41 }
 0x139   : > { %3704 = vmatmul.msk.f32.gmra.mxu1 %vm683_vm2, %v3654_v41  ;;  %v1552_v41 = vld.sshfl [vmem:[#allocation1] sm:$0xff pattern:$0x75316420] }
 0x13a   : > { %3610 = vmatmul.msk.f32.gmra.mxu2 %vm939_vm3, %v641_v43 }
 0x13b   : > { %3634 = vmatmul.msk.f32.gmra.mxu3 %vm939_vm3, %v641_v43  ;;  %v1856_v43 = vand.u32 3, %v4268_v24  ;;  %3742 = vmatpush.msk.msra.mxu2 %vm756_vm1, %v1552_v41 }
 0x13d   : > { %v4801_v61 = vpop.f32.mrf.mxu0 }
 0x13e   : > { %6333 = vst [vmem:[#allocation27_spill] sm:$0xff] %v4801_v61  ;;  %v4804_v0 = vpop.f32.mrf.mxu1  ;;  %v3792_v61 = vld [vmem:[%s6294_s5 + $0x240] sm:$0xff] }
 0x13f   : > { %6334 = vst [vmem:[#allocation28_spill] sm:$0xff] %v4804_v0 }
 0x140   : > { %3680 = vmatmul.msk.f32.gmra.mxu0 %vm683_vm2, %v3655_v47 }
 0x141   : > { %3705 = vmatmul.msk.f32.gmra.mxu1 %vm683_vm2, %v3655_v47 }
 0x142   : > { %3611 = vmatmul.msk.f32.gmra.mxu2 %vm939_vm3, %v642_v52 }
 0x143   : > { %3635 = vmatmul.msk.f32.gmra.mxu3 %vm939_vm3, %v642_v52  ;;  %v3660_v52 = vld [vmem:[%s6294_s5 + $0x140] sm:$0xff] }
 0x145   : > { %v4821_v9 = vpop.f32.mrf.mxu0 }
 0x146   : > { %6335 = vst [vmem:[#allocation29_spill] sm:$0xff] %v4821_v9  ;;  %v4824_v12 = vpop.f32.mrf.mxu1  ;;  %v3721_v9 = vld [vmem:[%s6294_s5 + $0x198] sm:$0xff] }
 0x147   : > { %6336 = vst [vmem:[#allocation30_spill] sm:$0xff] %v4824_v12 }
 0x148   : > { %3681 = vmatmul.msk.f32.gmra.mxu0 %vm683_vm2, %v3656_v57 }
 0x149   : > { %3706 = vmatmul.msk.f32.gmra.mxu1 %vm683_vm2, %v3656_v57  ;;  %v1857_v57 = vcvt.s32.f32 %v1856_v43 }
 0x14a   : > { %3612 = vmatmul.msk.f32.gmra.mxu2 %vm939_vm3, %v643_v60 }
 0x14b   : > { %3636 = vmatmul.msk.f32.gmra.mxu3 %vm939_vm3, %v643_v60  ;;  %1884 = vst [vmem:[#allocation1] ss:$2 sm:$0xff] %v1857_v57  ;;  %v3662_v57 = vld [vmem:[%s6294_s5 + $0x150] sm:$0xff] }
 0x14d   : > { %v4809_v1 = vpop.f32.mrf.mxu2  ;;  %v4841_v25 = vpop.f32.mrf.mxu0 }
 0x14e   : > { %v4814_v5 = vpop.f32.mrf.mxu3  ;;  %6337 = vst [vmem:[#allocation31_spill] sm:$0xff] %v4841_v25  ;;  %v4844_v26 = vpop.f32.mrf.mxu1  ;;  %v3667_v25 = vld [vmem:[%s6294_s5 + $0x178] sm:$0xff] }
 0x14f   : > { %6338 = vst [vmem:[#allocation32_spill] sm:$0xff] %v4844_v26 }
 0x150   : > { %3682 = vmatmul.msk.f32.gmra.mxu0 %vm683_vm2, %v3657_v4 }
 0x151   : > { %3707 = vmatmul.msk.f32.gmra.mxu1 %vm683_vm2, %v3657_v4 }
 0x152   : > { %3613 = vmatmul.msk.f32.gmra.mxu2 %vm939_vm3, %v644_v8  ;;  %v1885_v22 = vld.sshfl [vmem:[#allocation1] sm:$0xff pattern:$0x75316420] }
 0x153   : > { %3637 = vmatmul.msk.f32.gmra.mxu3 %vm939_vm3, %v644_v8  ;;  %3816 = vmatpush.msk.msra.mxu0 %vm756_vm1, %v1885_v22  ;;  %v3719_v22 = vld [vmem:[%s6294_s5 + $0x188] sm:$0xff] }
 0x155   : > { %v4827_v13 = vpop.f32.mrf.mxu2  ;;  %v4867_v60 = vpop.f32.mrf.mxu0 }
 0x156   : > { %v4832_v17 = vpop.f32.mrf.mxu3  ;;  %6339 = vst [vmem:[#allocation33_spill] sm:$0xff] %v4867_v60  ;;  %v4871_v8 = vpop.f32.mrf.mxu1  ;;  %v3720_v60 = vld [vmem:[%s6294_s5 + $0x190] sm:$0xff] }
 0x157   : > { %6340 = vst [vmem:[#allocation34_spill] sm:$0xff] %v4871_v8 }
 0x158   : > { %3683 = vmatmul.msk.f32.gmra.mxu0 %vm683_vm2, %v3658_v16 }
 0x159   : > { %3708 = vmatmul.msk.f32.gmra.mxu1 %vm683_vm2, %v3658_v16  ;;  %v647_v16 = vld [vmem:[%s6293_s4 + $0xa0] sm:$0xff] }
 0x15a   : > { %3614 = vmatmul.msk.f32.gmra.mxu2 %vm939_vm3, %v645_v18 }
 0x15b   : > { %3638 = vmatmul.msk.f32.gmra.mxu3 %vm939_vm3, %v645_v18 }
 0x15d   : > { %v4846_v29 = vpop.f32.mrf.mxu2  ;;  %v4890_v41 = vpop.f32.mrf.mxu0 }
 0x15e   : > { %v4851_v35 = vpop.f32.mrf.mxu3  ;;  %6341 = vst [vmem:[#allocation35_spill] sm:$0xff] %v4890_v41  ;;  %v4893_v43 = vpop.f32.mrf.mxu1 }
 0x15f   : > { %6342 = vst [vmem:[#allocation36_spill] sm:$0xff] %v4893_v43  ;;  %v1886_v43 = vld.sshfl [vmem:[#allocation1 + $0x8] sm:$0xff pattern:$0x75316420] }
 0x160   : > { %3684 = vmatmul.msk.f32.gmra.mxu0 %vm683_vm2, %v3659_v32  ;;  %3841 = vmatpush.msk.msra.mxu1 %vm756_vm1, %v1886_v43 }
 0x161   : > { %3709 = vmatmul.msk.f32.gmra.mxu1 %vm683_vm2, %v3659_v32 }
 0x162   : > { %3615 = vmatmul.msk.f32.gmra.mxu2 %vm939_vm3, %v646_v36 }
 0x163   : > { %3639 = vmatmul.msk.f32.gmra.mxu3 %vm939_vm3, %v646_v36  ;;  %v648_v36 = vld [vmem:[%s6293_s4 + $0xa8] sm:$0xff] }
 0x165   : > { %v4862_v47 = vpop.f32.mrf.mxu2 }
 0x166   : > { %v4869_v4 = vpop.f32.mrf.mxu3 }
 0x168   : > { %3685 = vmatmul.msk.f32.gmra.mxu0 %vm683_vm2, %v3660_v52 }
 0x169   : > { %3710 = vmatmul.msk.f32.gmra.mxu1 %vm683_vm2, %v3660_v52 }
 0x16a   : > { %3616 = vmatmul.msk.f32.gmra.mxu2 %vm939_vm3, %v647_v16 }
 0x16b   : > { %3640 = vmatmul.msk.f32.gmra.mxu3 %vm939_vm3, %v647_v16 }
 0x16d   : > { %v4880_v18 = vpop.f32.mrf.mxu2 }
 0x16e   : > { %v4885_v32 = vpop.f32.mrf.mxu3 }
 0x170   : > { %3686 = vmatmul.msk.f32.gmra.mxu0 %vm683_vm2, %v3661_v21 }
 0x171   : > { %3711 = vmatmul.msk.f32.gmra.mxu1 %vm683_vm2, %v3661_v21  ;;  %v4910_v21 = vpop.f32.mrf.mxu0 }
 0x172   : > { %3617 = vmatmul.msk.f32.gmra.mxu2 %vm939_vm3, %v648_v36 }
 0x173   : > { %3641 = vmatmul.msk.f32.gmra.mxu3 %vm939_vm3, %v648_v36  ;;  %v4913_v36 = vpop.f32.mrf.mxu1 }
 0x175   : > { %v4898_v52 = vpop.f32.mrf.mxu2 }
 0x176   : > { %v4903_v16 = vpop.f32.mrf.mxu3 }
 0x178   : > { %3687 = vmatmul.msk.f32.gmra.mxu0 %vm683_vm2, %v3662_v57 }
 0x179   : > { %3712 = vmatmul.msk.f32.gmra.mxu1 %vm683_vm2, %v3662_v57  ;;  %v650_v57 = vld [vmem:[%s6293_s4 + $0xb8] sm:$0xff]  ;;  %v4931_v37 = vpop.f32.mrf.mxu0 }
 0x17a   : > { %3618 = vmatmul.msk.f32.gmra.mxu2 %vm939_vm3, %v649_v56 }
 0x17b   : > { %3642 = vmatmul.msk.f32.gmra.mxu3 %vm939_vm3, %v649_v56  ;;  %v2190_v56 = vcvt.s32.f32 %v2189_v38  ;;  %v4933_v31 = vpop.f32.mrf.mxu1 }
 0x17d   : > { %v4916_v53 = vpop.f32.mrf.mxu2  ;;  %2217 = vst [vmem:[#allocation1] ss:$2 sm:$0xff] %v2190_v56  ;;  %v3666_v56 = vld [vmem:[%s6294_s5 + $0x170] sm:$0xff] }
 0x17e   : > { %v4921_v44 = vpop.f32.mrf.mxu3 }
 0x180   : > { %3688 = vmatmul.msk.f32.gmra.mxu0 %vm683_vm2, %v3663_v46 }
 0x181   : > { %3713 = vmatmul.msk.f32.gmra.mxu1 %vm683_vm2, %v3663_v46  ;;  %v3718_v46 = vld [vmem:[%s6294_s5 + $0x180] sm:$0xff]  ;;  %v4956_v41 = vpop.f32.mrf.mxu0 }
 0x182   : > { %3619 = vmatmul.msk.f32.gmra.mxu2 %vm939_vm3, %v650_v57 }
 0x183   : > { %3643 = vmatmul.msk.f32.gmra.mxu3 %vm939_vm3, %v650_v57  ;;  %v3665_v57 = vld [vmem:[%s6294_s5 + $0x168] sm:$0xff]  ;;  %v4960_v43 = vpop.f32.mrf.mxu1 }
 0x185   : > { %v4935_v30 = vpop.f32.mrf.mxu2 }
 0x186   : > { %v4940_v24 = vpop.f32.mrf.mxu3 }
 0x188   : > { %3689 = vmatmul.msk.f32.gmra.mxu0 %vm683_vm2, %v3664_v23 }
 0x189   : > { %3714 = vmatmul.msk.f32.gmra.mxu1 %vm683_vm2, %v3664_v23  ;;  %v4979_v26 = vpop.f32.mrf.mxu0 }
 0x18a   : > { %3743 = vmatmul.msk.f32.vlgmr.msra.gmra.mxu2 %vm683_vm2, %v3718_v46 }
 0x18b   : > { %3768 = vmatmul.msk.f32.vlgmr.msra.gmra.mxu3 %vm683_vm2, %v3718_v46 }
 0x18d   : > { %v4951_v38 = vpop.f32.mrf.mxu2 }
 0x18e   : > { %v4958_v8 = vpop.f32.mrf.mxu3 }
 0x190   : > { %3690 = vmatmul.msk.f32.gmra.mxu0 %vm683_vm2, %v3665_v57 }
 0x191   : > { %3715 = vmatmul.msk.f32.gmra.mxu1 %vm683_vm2, %v3665_v57  ;;  %v4982_v57 = vpop.f32.mrf.mxu1 }
 0x192   : > { %3744 = vmatmul.msk.f32.gmra.mxu2 %vm683_vm2, %v3719_v22 }
 0x193   : > { %3769 = vmatmul.msk.f32.gmra.mxu3 %vm683_vm2, %v3719_v22 }
 0x195   : > { %v4969_v23 = vpop.f32.mrf.mxu2 }
 0x196   : > { %6343 = vst [vmem:[#allocation37_spill] sm:$0xff] %v4969_v23  ;;  %v4974_v46 = vpop.f32.mrf.mxu3 }
 0x197   : > { %6344 = vst [vmem:[#allocation38_spill] sm:$0xff] %v4974_v46 }
 0x198   : > { %3691 = vmatmul.msk.f32.gmra.mxu0 %vm683_vm2, %v3666_v56 }
 0x199   : > { %3716 = vmatmul.msk.f32.gmra.mxu1 %vm683_vm2, %v3666_v56  ;;  %v4999_v56 = vpop.f32.mrf.mxu0 }
 0x19a   : > { %3745 = vmatmul.msk.f32.gmra.mxu2 %vm683_vm2, %v3720_v60 }
 0x19b   : > { %3770 = vmatmul.msk.f32.gmra.mxu3 %vm683_vm2, %v3720_v60  ;;  %v5002_v60 = vpop.f32.mrf.mxu1 }
 0x19d   : > { %v4987_v22 = vpop.f32.mrf.mxu2 }
 0x19e   : > { %6345 = vst [vmem:[#allocation39_spill] sm:$0xff] %v4987_v22  ;;  %v4992_v12 = vpop.f32.mrf.mxu3 }
 0x19f   : > { %6346 = vst [vmem:[#allocation40_spill] sm:$0xff] %v4992_v12 }
 0x1a0   : > { %3692 = vmatmul.msk.f32.gmra.mxu0 %vm683_vm2, %v3667_v25 }
 0x1a1   : > { %3717 = vmatmul.msk.f32.gmra.mxu1 %vm683_vm2, %v3667_v25  ;;  %v3722_v25 = vld [vmem:[%s6294_s5 + $0x1a0] sm:$0xff] }
 0x1a2   : > { %3746 = vmatmul.msk.f32.gmra.mxu2 %vm683_vm2, %v3721_v9 }
 0x1a3   : > { %3771 = vmatmul.msk.f32.gmra.mxu3 %vm683_vm2, %v3721_v9  ;;  %v5019_v9 = vpop.f32.mrf.mxu0  ;;  %v5021_v48 = vpop.f32.mrf.mxu1 }
 0x1a5   : > { %v5005_v0 = vpop.f32.mrf.mxu2 }
 0x1a6   : > { %6347 = vst [vmem:[#allocation41_spill] sm:$0xff] %v5005_v0  ;;  %v5010_v51 = vpop.f32.mrf.mxu3 }
 0x1a7   : > { %6348 = vst [vmem:[#allocation42_spill] sm:$0xff] %v5010_v51 }
 0x1a8   : > { %3817 = vmatmul.msk.f32.vlgmr.msra.gmra.mxu0 %vm683_vm2, %v3792_v61 }
 0x1a9   : > { %3842 = vmatmul.msk.f32.vlgmr.msra.gmra.mxu1 %vm683_vm2, %v3792_v61  ;;  %v3723_v61 = vld [vmem:[%s6294_s5 + $0x1a8] sm:$0xff] }
 0x1aa   : > { %3747 = vmatmul.msk.f32.gmra.mxu2 %vm683_vm2, %v3722_v25 }
 0x1ab   : > { %3772 = vmatmul.msk.f32.gmra.mxu3 %vm683_vm2, %v3722_v25  ;;  %v5042_v34 = vpop.f32.mrf.mxu0  ;;  %v5046_v0 = vpop.f32.mrf.mxu1 }
 0x1ad   : > { %v5023_v40 = vpop.f32.mrf.mxu2 }
 0x1ae   : > { %6349 = vst [vmem:[#allocation43_spill] sm:$0xff] %v5023_v40  ;;  %v5028_v51 = vpop.f32.mrf.mxu3  ;;  %v3794_v40 = vld [vmem:[%s6294_s5 + $0x250] sm:$0xff] }
 0x1af   : > { %6350 = vst [vmem:[#allocation44_spill] sm:$0xff] %v5028_v51 }
 0x1b0   : > { %3818 = vmatmul.msk.f32.gmra.mxu0 %vm683_vm2, %v3793_v39 }
 0x1b1   : > { %3843 = vmatmul.msk.f32.gmra.mxu1 %vm683_vm2, %v3793_v39  ;;  %v3724_v39 = vld [vmem:[%s6294_s5 + $0x1b0] sm:$0xff] }
 0x1b2   : > { %3748 = vmatmul.msk.f32.gmra.mxu2 %vm683_vm2, %v3723_v61 }
 0x1b3   : > { %3773 = vmatmul.msk.f32.gmra.mxu3 %vm683_vm2, %v3723_v61  ;;  %v5065_v12 = vpop.f32.mrf.mxu0 }
 0x1b5   : > { %v5037_v25 = vpop.f32.mrf.mxu2 }
 0x1b6   : > { %6351 = vst [vmem:[#allocation45_spill] sm:$0xff] %v5037_v25  ;;  %v5044_v51 = vpop.f32.mrf.mxu3 }
 0x1b7   : > { %6352 = vst [vmem:[#allocation46_spill] sm:$0xff] %v5044_v51  ;;  %v3795_v51 = vld [vmem:[%s6294_s5 + $0x258] sm:$0xff] }
 0x1b8   : > { %3819 = vmatmul.msk.f32.gmra.mxu0 %vm683_vm2, %v3794_v40 }
 0x1b9   : > { %3844 = vmatmul.msk.f32.gmra.mxu1 %vm683_vm2, %v3794_v40  ;;  %v5068_v40 = vpop.f32.mrf.mxu1 }
 0x1ba   : > { %3749 = vmatmul.msk.f32.gmra.mxu2 %vm683_vm2, %v3724_v39 }
 0x1bb   : > { %3774 = vmatmul.msk.f32.gmra.mxu3 %vm683_vm2, %v3724_v39 }
 0x1bd   : > { %v5055_v61 = vpop.f32.mrf.mxu2 }
 0x1be   : > { %6353 = vst [vmem:[#allocation47_spill] sm:$0xff] %v5055_v61  ;;  %v5060_v25 = vpop.f32.mrf.mxu3 }
 0x1bf   : > { %6354 = vst [vmem:[#allocation48_spill] sm:$0xff] %v5060_v25  ;;  %v3796_v25 = vld [vmem:[%s6294_s5 + $0x260] sm:$0xff] }
 0x1c0   : > { %3820 = vmatmul.msk.f32.gmra.mxu0 %vm683_vm2, %v3795_v51 }
 0x1c1   : > { %3845 = vmatmul.msk.f32.gmra.mxu1 %vm683_vm2, %v3795_v51  ;;  %v5085_v51 = vpop.f32.mrf.mxu0 }
 0x1c2   : > { %3750 = vmatmul.msk.f32.gmra.mxu2 %vm683_vm2, %v3725_v33 }
 0x1c3   : > { %3775 = vmatmul.msk.f32.gmra.mxu3 %vm683_vm2, %v3725_v33  ;;  %v5088_v33 = vpop.f32.mrf.mxu1 }
 0x1c5   : > { %v5073_v39 = vpop.f32.mrf.mxu2 }
 0x1c6   : > { %6355 = vst [vmem:[#allocation49_spill] sm:$0xff] %v5073_v39  ;;  %v5078_v61 = vpop.f32.mrf.mxu3 }
 0x1c7   : > { %6356 = vst [vmem:[#allocation50_spill] sm:$0xff] %v5078_v61  ;;  %v3797_v61 = vld [vmem:[%s6294_s5 + $0x268] sm:$0xff] }
 0x1c8   : > { %3821 = vmatmul.msk.f32.gmra.mxu0 %vm683_vm2, %v3796_v25 }
 0x1c9   : > { %3846 = vmatmul.msk.f32.gmra.mxu1 %vm683_vm2, %v3796_v25  ;;  %v3727_v25 = vld [vmem:[%s6294_s5 + $0x1c8] sm:$0xff] }
 0x1ca   : > { %3751 = vmatmul.msk.f32.gmra.mxu2 %vm683_vm2, %v3726_v28 }
 0x1cb   : > { %3776 = vmatmul.msk.f32.gmra.mxu3 %vm683_vm2, %v3726_v28  ;;  %v5105_v28 = vpop.f32.mrf.mxu0 }
 0x1cc   : > { %6359 = vst [vmem:[#allocation53_spill] sm:$0xff] %v5105_v28 }
 0x1cd   : > { %v5091_v39 = vpop.f32.mrf.mxu2 }
 0x1ce   : > { %6357 = vst [vmem:[#allocation51_spill] sm:$0xff] %v5091_v39  ;;  %v5096_v22 = vpop.f32.mrf.mxu3  ;;  %v5107_v39 = vpop.f32.mrf.mxu1 }
 0x1cf   : > { %6358 = vst [vmem:[#allocation52_spill] sm:$0xff] %v5096_v22  ;;  %v3798_v22 = vld [vmem:[%s6294_s5 + $0x270] sm:$0xff] }
 0x1d0   : > { %3822 = vmatmul.msk.f32.gmra.mxu0 %vm683_vm2, %v3797_v61  ;;  %6360 = vst [vmem:[#allocation54_spill] sm:$0xff] %v5107_v39 }
 0x1d1   : > { %3847 = vmatmul.msk.f32.gmra.mxu1 %vm683_vm2, %v3797_v61  ;;  %v3728_v61 = vld [vmem:[%s6294_s5 + $0x1d0] sm:$0xff] }
 0x1d2   : > { %3752 = vmatmul.msk.f32.gmra.mxu2 %vm683_vm2, %v3727_v25 }
 0x1d3   : > { %3777 = vmatmul.msk.f32.gmra.mxu3 %vm683_vm2, %v3727_v25  ;;  %v5128_v39 = vpop.f32.mrf.mxu0 }
 0x1d4   : > { %6364 = vst [vmem:[#allocation58_spill] sm:$0xff] %v5128_v39 }
 0x1d5   : > { %v5109_v27 = vpop.f32.mrf.mxu2 }
 0x1d6   : > { %6361 = vst [vmem:[#allocation55_spill] sm:$0xff] %v5109_v27  ;;  %v5114_v46 = vpop.f32.mrf.mxu3  ;;  %v3799_v27 = vld [vmem:[%s6294_s5 + $0x278] sm:$0xff]  ;;  %v5132_v28 = vpop.f32.mrf.mxu1 }
 0x1d7   : > { %6362 = vst [vmem:[#allocation56_spill] sm:$0xff] %v5114_v46 }
 0x1d8   : > { %3823 = vmatmul.msk.f32.gmra.mxu0 %vm683_vm2, %v3798_v22  ;;  %6366 = vst [vmem:[#allocation60_spill] sm:$0xff] %v5132_v28  ;;  %v3730_v28 = vld [vmem:[%s6294_s5 + $0x1e0] sm:$0xff] }
 0x1d9   : > { %3848 = vmatmul.msk.f32.gmra.mxu1 %vm683_vm2, %v3798_v22  ;;  %v3729_v22 = vld [vmem:[%s6294_s5 + $0x1d8] sm:$0xff] }
 0x1da   : > { %3753 = vmatmul.msk.f32.gmra.mxu2 %vm683_vm2, %v3728_v61 }
 0x1db   : > { %3778 = vmatmul.msk.f32.gmra.mxu3 %vm683_vm2, %v3728_v61  ;;  %v5151_v39 = vpop.f32.mrf.mxu0 }
 0x1dc   : > { %6369 = vst [vmem:[#allocation63_spill] sm:$0xff] %v5151_v39  ;;  %v3731_v39 = vld [vmem:[%s6294_s5 + $0x1e8] sm:$0xff] }
 0x1dd   : > { %v5123_v25 = vpop.f32.mrf.mxu2 }
 0x1de   : > { %6363 = vst [vmem:[#allocation57_spill] sm:$0xff] %v5123_v25  ;;  %v5130_v46 = vpop.f32.mrf.mxu3 }
 0x1df   : > { %6365 = vst [vmem:[#allocation59_spill] sm:$0xff] %v5130_v46  ;;  %v3800_v46 = vld [vmem:[%s6294_s5 + $0x280] sm:$0xff] }
 0x1e0   : > { %3824 = vmatmul.msk.f32.gmra.mxu0 %vm683_vm2, %v3799_v27 }
 0x1e1   : > { %3849 = vmatmul.msk.f32.gmra.mxu1 %vm683_vm2, %v3799_v27  ;;  %v5154_v27 = vpop.f32.mrf.mxu1 }
 0x1e2   : > { %3754 = vmatmul.msk.f32.gmra.mxu2 %vm683_vm2, %v3729_v22  ;;  %6370 = vst [vmem:[#allocation64_spill] sm:$0xff] %v5154_v27 }
 0x1e3   : > { %3779 = vmatmul.msk.f32.gmra.mxu3 %vm683_vm2, %v3729_v22 }
 0x1e5   : > { %v5141_v61 = vpop.f32.mrf.mxu2 }
 0x1e6   : > { %6367 = vst [vmem:[#allocation61_spill] sm:$0xff] %v5141_v61  ;;  %v5146_v25 = vpop.f32.mrf.mxu3 }
 0x1e7   : > { %6368 = vst [vmem:[#allocation62_spill] sm:$0xff] %v5146_v25  ;;  %v3801_v25 = vld [vmem:[%s6294_s5 + $0x288] sm:$0xff] }
 0x1e8   : > { %3825 = vmatmul.msk.f32.gmra.mxu0 %vm683_vm2, %v3800_v46 }
 0x1e9   : > { %3850 = vmatmul.msk.f32.gmra.mxu1 %vm683_vm2, %v3800_v46  ;;  %v5171_v46 = vpop.f32.mrf.mxu0 }
 0x1ea   : > { %3755 = vmatmul.msk.f32.gmra.mxu2 %vm683_vm2, %v3730_v28  ;;  %6373 = vst [vmem:[#allocation67_spill] sm:$0xff] %v5171_v46 }
 0x1eb   : > { %3780 = vmatmul.msk.f32.gmra.mxu3 %vm683_vm2, %v3730_v28  ;;  %v5174_v28 = vpop.f32.mrf.mxu1 }
 0x1ec   : > { %6374 = vst [vmem:[#allocation68_spill] sm:$0xff] %v5174_v28 }
 0x1ed   : > { %v5159_v22 = vpop.f32.mrf.mxu2 }
 0x1ee   : > { %6371 = vst [vmem:[#allocation65_spill] sm:$0xff] %v5159_v22  ;;  %v5164_v61 = vpop.f32.mrf.mxu3 }
 0x1ef   : > { %6372 = vst [vmem:[#allocation66_spill] sm:$0xff] %v5164_v61  ;;  %v3802_v61 = vld [vmem:[%s6294_s5 + $0x290] sm:$0xff] }
 0x1f0   : > { %3826 = vmatmul.msk.f32.gmra.mxu0 %vm683_vm2, %v3801_v25 }
 0x1f1   : > { %3851 = vmatmul.msk.f32.gmra.mxu1 %vm683_vm2, %v3801_v25  ;;  %v3732_v25 = vld [vmem:[%s6294_s5 + $0x1f0] sm:$0xff] }
 0x1f2   : > { %3756 = vmatmul.msk.f32.gmra.mxu2 %vm683_vm2, %v3731_v39 }
 0x1f3   : > { %3781 = vmatmul.msk.f32.gmra.mxu3 %vm683_vm2, %v3731_v39  ;;  %v5191_v39 = vpop.f32.mrf.mxu0 }
 0x1f4   : > { %6377 = vst [vmem:[#allocation71_spill] sm:$0xff] %v5191_v39 }
 0x1f5   : > { %v5177_v22 = vpop.f32.mrf.mxu2 }
 0x1f6   : > { %6375 = vst [vmem:[#allocation69_spill] sm:$0xff] %v5177_v22  ;;  %v5182_v27 = vpop.f32.mrf.mxu3  ;;  %v5193_v22 = vpop.f32.mrf.mxu1 }
 0x1f7   : > { %6376 = vst [vmem:[#allocation70_spill] sm:$0xff] %v5182_v27  ;;  %v3803_v27 = vld [vmem:[%s6294_s5 + $0x298] sm:$0xff] }
 0x1f8   : > { %3827 = vmatmul.msk.f32.gmra.mxu0 %vm683_vm2, %v3802_v61  ;;  %6378 = vst [vmem:[#allocation72_spill] sm:$0xff] %v5193_v22 }
 0x1f9   : > { %3852 = vmatmul.msk.f32.gmra.mxu1 %vm683_vm2, %v3802_v61  ;;  %v3733_v61 = vld [vmem:[%s6294_s5 + $0x1f8] sm:$0xff] }
 0x1fa   : > { %3757 = vmatmul.msk.f32.gmra.mxu2 %vm683_vm2, %v3732_v25 }
 0x1fb   : > { %3782 = vmatmul.msk.f32.gmra.mxu3 %vm683_vm2, %v3732_v25  ;;  %v5214_v22 = vpop.f32.mrf.mxu0 }
 0x1fc   : > { %6382 = vst [vmem:[#allocation76_spill] sm:$0xff] %v5214_v22 }
 0x1fd   : > { %v5195_v28 = vpop.f32.mrf.mxu2 }
 0x1fe   : > { %6379 = vst [vmem:[#allocation73_spill] sm:$0xff] %v5195_v28  ;;  %v5200_v46 = vpop.f32.mrf.mxu3  ;;  %v3804_v28 = vld [vmem:[%s6294_s5 + $0x2a0] sm:$0xff]  ;;  %v5218_v39 = vpop.f32.mrf.mxu1 }
 0x1ff   : > { %6380 = vst [vmem:[#allocation74_spill] sm:$0xff] %v5200_v46 }
 0x200   : > { %3828 = vmatmul.msk.f32.gmra.mxu0 %vm683_vm2, %v3803_v27  ;;  %6384 = vst [vmem:[#allocation78_spill] sm:$0xff] %v5218_v39 }
 0x201   : > { %3853 = vmatmul.msk.f32.gmra.mxu1 %vm683_vm2, %v3803_v27  ;;  %v3734_v27 = vld [vmem:[%s6294_s5 + $0x200] sm:$0xff] }
 0x202   : > { %3758 = vmatmul.msk.f32.gmra.mxu2 %vm683_vm2, %v3733_v61 }
 0x203   : > { %3783 = vmatmul.msk.f32.gmra.mxu3 %vm683_vm2, %v3733_v61  ;;  %v1030_v61 = vadd.f32 %v4809_v1, %v4558_v42  ;;  %v5243_v1 = vpop.f32.mrf.mxu0 }
 0x205   : > { %v5209_v25 = vpop.f32.mrf.mxu2 }
 0x206   : > { %6381 = vst [vmem:[#allocation75_spill] sm:$0xff] %v5209_v25  ;;  %v5216_v46 = vpop.f32.mrf.mxu3  ;;  %v1119_v25 = vadd.f32 %v4814_v5, %v4568_v45  ;;  %v3735_v45 = vld [vmem:[%s6294_s5 + $0x208] sm:$0xff]  ;;  %v5246_v5 = vpop.f32.mrf.mxu1 }
 0x207   : > { %6383 = vst [vmem:[#allocation77_spill] sm:$0xff] %v5216_v46  ;;  %v1475_v46 = vadd.f32 %v4910_v21, %v1030_v61  ;;  %v1033_v21 = vadd.f32 %v4827_v13, %v4583_v49  ;;  %v1125_v13 = vadd.f32 %v4851_v35, %v4599_v55  ;;  %v3737_v35 = vld [vmem:[%s6294_s5 + $0x218] sm:$0xff] }
 0x208   : > { %3829 = vmatmul.msk.f32.gmra.mxu0 %vm683_vm2, %v3804_v28  ;;  %v1476_v39 = vadd.f32 %v4913_v36, %v1119_v25  ;;  %v1122_v36 = vadd.f32 %v4832_v17, %v4585_v50  ;;  %v3736_v50 = vld [vmem:[%s6294_s5 + $0x210] sm:$0xff] }
 0x209   : > { %3854 = vmatmul.msk.f32.gmra.mxu1 %vm683_vm2, %v3804_v28 }
 0x20a   : > { %3759 = vmatmul.msk.f32.gmra.mxu2 %vm683_vm2, %v3734_v27 }
 0x20b   : > { %3784 = vmatmul.msk.f32.gmra.mxu3 %vm683_vm2, %v3734_v27  ;;  %v2219_v27 = vld.sshfl [vmem:[#allocation1 + $0x8] sm:$0xff pattern:$0x75316420] }
 0x20c   : > { %3915 = vmatpush.msk.msrb.mxu3 %vm756_vm1, %v2219_v27 }
 0x20d   : > { %v1647_v22 = vpop.f32.mrf.mxu2 }
 0x20e   : > { %v5236_v28 = vadd.f32 %v1647_v22, %v1475_v46  ;;  %v1736_v23 = vpop.f32.mrf.mxu3  ;;  %v1478_v22 = vadd.f32 %v4933_v31, %v1122_v36  ;;  %v1036_v31 = vadd.f32 %v4846_v29, %v4597_v54  ;;  %v5276_v17 = vpop.f32.mrf.mxu1  ;;  %v3807_v54 = vld [vmem:[%s6294_s5 + $0x2b8] sm:$0xff] }
 0x20f   : > { %v5238_v42 = vadd.f32 %v1736_v23, %v1476_v39  ;;  %v1477_v23 = vadd.f32 %v4931_v37, %v1033_v21  ;;  %v3806_v39 = vld [vmem:[%s6294_s5 + $0x2b0] sm:$0xff]  ;;  %v5271_v37 = vpop.f32.mrf.mxu0 }
 0x210   : > { %6385 = vst [vmem:[#allocation79_spill] sm:$0xff] %v5236_v28  ;;  %3830 = vmatmul.msk.f32.gmra.mxu0 %vm683_vm2, %v3805_v20  ;;  %v1479_v61 = vadd.f32 %v4956_v41, %v1036_v31  ;;  %v1039_v41 = vadd.f32 %v4862_v47, %v4611_v58  ;;  %v3808_v58 = vld [vmem:[%s6294_s5 + $0x2c0] sm:$0xff]  ;;  %v1131_v31 = vadd.f32 %v4885_v32, %v4627_v63  ;;  %v3739_v63 = vld [vmem:[%s6294_s5 + $0x228] sm:$0xff] }
 0x211   : > { %6386 = vst [vmem:[#allocation80_spill] sm:$0xff] %v5238_v42  ;;  %3855 = vmatmul.msk.f32.gmra.mxu1 %vm683_vm2, %v3805_v20  ;;  %v1045_v32 = vadd.f32 %v4898_v52, %v4639_v2 }
 0x212   : > { %3760 = vmatmul.msk.f32.gmra.mxu2 %vm683_vm2, %v3735_v45  ;;  %v1484_v27 = vadd.f32 %v5002_v60, %v1131_v31 }
 0x213   : > { %3785 = vmatmul.msk.f32.gmra.mxu3 %vm683_vm2, %v3735_v45  ;;  %v1480_v45 = vadd.f32 %v4960_v43, %v1125_v13  ;;  %v1128_v43 = vadd.f32 %v4869_v4, %v4613_v59  ;;  %v1485_v60 = vadd.f32 %v5019_v9, %v1045_v32  ;;  %v1137_v9 = vadd.f32 %v4921_v44, %v4655_v7  ;;  %v3741_v7 = vld [vmem:[%s6294_s5 + $0x238] sm:$0xff] }
 0x215   : > { %v1650_v46 = vpop.f32.mrf.mxu2 }
 0x216   : > { %v5260_v20 = vadd.f32 %v1650_v46, %v1477_v23  ;;  %v1739_v25 = vpop.f32.mrf.mxu3  ;;  %v2218_v23 = vld.sshfl [vmem:[#allocation1] sm:$0xff pattern:$0x75316420] }
 0x217   : > { %v5262_v49 = vadd.f32 %v1739_v25, %v1478_v22  ;;  %v1481_v22 = vadd.f32 %v4979_v26, %v1039_v41  ;;  %v5301_v46 = vpop.f32.mrf.mxu0  ;;  %3890 = vmatpush.msk.msrb.mxu2 %vm756_vm1, %v2218_v23  ;;  %v5305_v25 = vpop.f32.mrf.mxu1  ;;  %v3738_v26 = vld [vmem:[%s6294_s5 + $0x220] sm:$0xff] }
 0x218   : > { %6387 = vst [vmem:[#allocation81_spill] sm:$0xff] %v5260_v20  ;;  %3831 = vmatmul.msk.f32.gmra.mxu0 %vm683_vm2, %v3806_v39 }
 0x219   : > { %6388 = vst [vmem:[#allocation82_spill] sm:$0xff] %v5262_v49  ;;  %3856 = vmatmul.msk.f32.gmra.mxu1 %vm683_vm2, %v3806_v39  ;;  %v1482_v39 = vadd.f32 %v4982_v57, %v1128_v43  ;;  %v1042_v57 = vadd.f32 %v4880_v18, %v4625_v62  ;;  %v3810_v43 = vld [vmem:[%s6294_s5 + $0x2d0] sm:$0xff] }
 0x21a   : > { %3761 = vmatmul.msk.f32.gmra.mxu2 %vm683_vm2, %v3736_v50 }
 0x21b   : > { %3786 = vmatmul.msk.f32.gmra.mxu3 %vm683_vm2, %v3736_v50  ;;  %v1483_v13 = vadd.f32 %v4999_v56, %v1042_v57  ;;  %v1134_v56 = vadd.f32 %v4903_v16, %v4641_v3  ;;  %v3740_v3 = vld [vmem:[%s6294_s5 + $0x230] sm:$0xff] }
 0x21d   : > { %v1653_v21 = vpop.f32.mrf.mxu2 }
 0x21e   : > { %v5285_v29 = vadd.f32 %v1653_v21, %v1479_v61  ;;  %v1742_v36 = vpop.f32.mrf.mxu3 }
 0x21f   : > { %v5287_v55 = vadd.f32 %v1742_v36, %v1480_v45  ;;  %v3809_v45 = vld [vmem:[%s6294_s5 + $0x2c8] sm:$0xff]  ;;  %v5330_v21 = vpop.f32.mrf.mxu0  ;;  %v5334_v18 = vpop.f32.mrf.mxu1 }
 0x220   : > { %6389 = vst [vmem:[#allocation83_spill] sm:$0xff] %v5285_v29  ;;  %3832 = vmatmul.msk.f32.gmra.mxu0 %vm683_vm2, %v3807_v54 }
 0x221   : > { %6390 = vst [vmem:[#allocation84_spill] sm:$0xff] %v5287_v55  ;;  %3857 = vmatmul.msk.f32.gmra.mxu1 %vm683_vm2, %v3807_v54 }
 0x222   : > { %3762 = vmatmul.msk.f32.gmra.mxu2 %vm683_vm2, %v3737_v35 }
 0x223   : > { %3787 = vmatmul.msk.f32.gmra.mxu3 %vm683_vm2, %v3737_v35  ;;  %v1486_v35 = vadd.f32 %v5021_v48, %v1134_v56  ;;  %v1048_v48 = vadd.f32 %v4916_v53, %v4653_v6  ;;  %v1140_v53 = vadd.f32 %v4940_v24, %v4669_v11  ;;  %v3866_v11 = vld [vmem:[%s6294_s5 + $0x300] sm:$0xff]  ;;  %v1143_v24 = vadd.f32 %v4958_v8, %v4683_v15  ;;  %v3867_v15 = vld [vmem:[%s6294_s5 + $0x308] sm:$0xff]  ;;  %v6400_v8 = vld [vmem:[#allocation37_spill] sm:$0xff] }
 0x225   : > { %v1656_v50 = vpop.f32.mrf.mxu2 }
 0x226   : > { %v5310_v47 = vadd.f32 %v1656_v50, %v1481_v22  ;;  %v1745_v59 = vpop.f32.mrf.mxu3  ;;  %v1488_v50 = vadd.f32 %v5046_v0, %v1137_v9 }
 0x227   : > { %v5312_v4 = vadd.f32 %v1745_v59, %v1482_v39  ;;  %v5361_v52 = vpop.f32.mrf.mxu0  ;;  %v5364_v16 = vpop.f32.mrf.mxu1  ;;  %v1487_v39 = vadd.f32 %v5042_v34, %v1048_v48  ;;  %v3811_v59 = vld [vmem:[%s6294_s5 + $0x2d8] sm:$0xff]  ;;  %v1051_v34 = vadd.f32 %v4935_v30, %v4667_v10  ;;  %v3812_v10 = vld [vmem:[%s6294_s5 + $0x2e0] sm:$0xff] }
 0x228   : > { %6391 = vst [vmem:[#allocation85_spill] sm:$0xff] %v5310_v47  ;;  %3833 = vmatmul.msk.f32.gmra.mxu0 %vm683_vm2, %v3808_v58  ;;  %v6404_v48 = vld [vmem:[#allocation54_spill] sm:$0xff] }
 0x229   : > { %6392 = vst [vmem:[#allocation86_spill] sm:$0xff] %v5312_v4  ;;  %3858 = vmatmul.msk.f32.gmra.mxu1 %vm683_vm2, %v3808_v58  ;;  %v1489_v31 = vadd.f32 %v5065_v12, %v1051_v34  ;;  %v1054_v12 = vadd.f32 %v4951_v38, %v4681_v14  ;;  %v3813_v14 = vld [vmem:[%s6294_s5 + $0x2e8] sm:$0xff]  ;;  %v3868_v34 = vld [vmem:[%s6294_s5 + $0x310] sm:$0xff] }
 0x22a   : > { %3763 = vmatmul.msk.f32.gmra.mxu2 %vm683_vm2, %v3738_v26 }
 0x22b   : > { %3788 = vmatmul.msk.f32.gmra.mxu3 %vm683_vm2, %v3738_v26 }
 0x22d   : > { %v1659_v61 = vpop.f32.mrf.mxu2 }
 0x22e   : > { %v5332_v54 = vadd.f32 %v1659_v61, %v1483_v13  ;;  %v1748_v62 = vpop.f32.mrf.mxu3  ;;  %v1490_v13 = vadd.f32 %v5068_v40, %v1140_v53  ;;  %v1491_v40 = vadd.f32 %v5085_v51, %v1054_v12  ;;  %v1057_v51 = vadd.f32 %v6400_v8, %v4698_v19  ;;  %v6405_v53 = vld [vmem:[#allocation11_spill] sm:$0xff]  ;;  %v3869_v8 = vld [vmem:[%s6294_s5 + $0x318] sm:$0xff] }
 0x22f   : > { %v5336_v36 = vadd.f32 %v1748_v62, %v1484_v27  ;;  %v5389_v44 = vpop.f32.mrf.mxu0  ;;  %v5394_v0 = vpop.f32.mrf.mxu1 }
 0x230   : > { %6393 = vst [vmem:[#allocation87_spill] sm:$0xff] %v5332_v54  ;;  %3834 = vmatmul.msk.f32.gmra.mxu0 %vm683_vm2, %v3809_v45 }
 0x231   : > { %6394 = vst [vmem:[#allocation88_spill] sm:$0xff] %v5336_v36  ;;  %3859 = vmatmul.msk.f32.gmra.mxu1 %vm683_vm2, %v3809_v45 }
 0x232   : > { %3764 = vmatmul.msk.f32.gmra.mxu2 %vm683_vm2, %v3739_v63 }
 0x233   : > { %3789 = vmatmul.msk.f32.gmra.mxu3 %vm683_vm2, %v3739_v63  ;;  %v1492_v63 = vadd.f32 %v5088_v33, %v1143_v24  ;;  %v6401_v33 = vld [vmem:[#allocation8_spill] sm:$0xff] }
 0x234   : > { %v6410_v24 = vld [vmem:[#allocation60_spill] sm:$0xff] }
 0x235   : > { %v1662_v41 = vpop.f32.mrf.mxu2 }
 0x236   : > { %v5354_v23 = vadd.f32 %v1662_v41, %v1485_v60  ;;  %v1751_v22 = vpop.f32.mrf.mxu3  ;;  %v6402_v41 = vld [vmem:[#allocation38_spill] sm:$0xff] }
 0x237   : > { %v5356_v2 = vadd.f32 %v1751_v22, %v1486_v35  ;;  %v5418_v62 = vpop.f32.mrf.mxu0  ;;  %v5421_v32 = vpop.f32.mrf.mxu1  ;;  %v6403_v22 = vld [vmem:[#allocation53_spill] sm:$0xff] }
 0x238   : > { %6395 = vst [vmem:[#allocation89_spill] sm:$0xff] %v5354_v23  ;;  %3835 = vmatmul.msk.f32.gmra.mxu0 %vm683_vm2, %v3810_v43 }
 0x239   : > { %6396 = vst [vmem:[#allocation90_spill] sm:$0xff] %v5356_v2  ;;  %3860 = vmatmul.msk.f32.gmra.mxu1 %vm683_vm2, %v3810_v43  ;;  %v1146_v43 = vadd.f32 %v6402_v41, %v6401_v33  ;;  %v6411_v41 = vld [vmem:[#allocation15_spill] sm:$0xff] }
 0x23a   : > { %3765 = vmatmul.msk.f32.gmra.mxu2 %vm683_vm2, %v3740_v3 }
 0x23b   : > { %3790 = vmatmul.msk.f32.gmra.mxu3 %vm683_vm2, %v3740_v3  ;;  %v1493_v3 = vadd.f32 %v6403_v22, %v1057_v51  ;;  %v1494_v9 = vadd.f32 %v6404_v48, %v1146_v43  ;;  %v6412_v43 = vld [vmem:[#allocation41_spill] sm:$0xff]  ;;  %v6414_v48 = vld [vmem:[#allocation42_spill] sm:$0xff] }
 0x23c   : > { %v1063_v22 = vadd.f32 %v6412_v43, %v6411_v41 }
 0x23d   : > { %v1665_v58 = vpop.f32.mrf.mxu2 }
 0x23e   : > { %v5378_v26 = vadd.f32 %v1665_v58, %v1487_v39  ;;  %v1754_v57 = vpop.f32.mrf.mxu3 }
 0x23f   : > { %v5380_v6 = vadd.f32 %v1754_v57, %v1488_v50  ;;  %v3814_v50 = vld [vmem:[%s6294_s5 + $0x2f0] sm:$0xff]  ;;  %v5446_v58 = vpop.f32.mrf.mxu0  ;;  %v5450_v57 = vpop.f32.mrf.mxu1 }
 0x240   : > { %6397 = vst [vmem:[#allocation91_spill] sm:$0xff] %v5378_v26  ;;  %3836 = vmatmul.msk.f32.gmra.mxu0 %vm683_vm2, %v3811_v59 }
 0x241   : > { %6398 = vst [vmem:[#allocation92_spill] sm:$0xff] %v5380_v6  ;;  %3861 = vmatmul.msk.f32.gmra.mxu1 %vm683_vm2, %v3811_v59 }
 0x242   : > { %3766 = vmatmul.msk.f32.gmra.mxu2 %vm683_vm2, %v3741_v7 }
 0x243   : > { %3791 = vmatmul.msk.f32.gmra.mxu3 %vm683_vm2, %v3741_v7 }
 0x245   : > { %v1668_v27 = vpop.f32.mrf.mxu2 }
 0x246   : > { %v5402_v30 = vadd.f32 %v1668_v27, %v1489_v31  ;;  %v1757_v61 = vpop.f32.mrf.mxu3  ;;  %v6406_v31 = vld [vmem:[#allocation39_spill] sm:$0xff]  ;;  %v6407_v27 = vld [vmem:[#allocation12_spill] sm:$0xff] }
 0x247   : > { %v5404_v45 = vadd.f32 %v1757_v61, %v1490_v13  ;;  %v1060_v13 = vadd.f32 %v6406_v31, %v6405_v53  ;;  %v5477_v51 = vpop.f32.mrf.mxu0  ;;  %v5480_v33 = vpop.f32.mrf.mxu1 }
 0x248   : > { %3837 = vmatmul.msk.f32.gmra.mxu0 %vm683_vm2, %v3812_v10 }
 0x249   : > { %6399 = vst [vmem:[#allocation93_spill] sm:$0xff] %v5404_v45  ;;  %3862 = vmatmul.msk.f32.gmra.mxu1 %vm683_vm2, %v3812_v10  ;;  %v6408_v10 = vld [vmem:[#allocation40_spill] sm:$0xff] }
 0x24a   : > { %3891 = vmatmul.msk.f32.vlgmr.msrb.gmra.mxu2 %vm683_vm2, %v3866_v11  ;;  %v1149_v61 = vadd.f32 %v6408_v10, %v6407_v27  ;;  %v3870_v10 = vld [vmem:[%s6294_s5 + $0x320] sm:$0xff] }
 0x24b   : > { %3916 = vmatmul.msk.f32.vlgmr.msrb.gmra.mxu3 %vm683_vm2, %v3866_v11  ;;  %v6409_v11 = vld [vmem:[#allocation58_spill] sm:$0xff] }
 0x24c   : > { %v1495_v12 = vadd.f32 %v6409_v11, %v1060_v13  ;;  %v6418_v11 = vld [vmem:[#allocation43_spill] sm:$0xff] }
 0x24d   : > { %v1671_v56 = vpop.f32.mrf.mxu2 }
 0x24e   : > { %v5426_v38 = vadd.f32 %v1671_v56, %v1491_v40  ;;  %v1760_v60 = vpop.f32.mrf.mxu3  ;;  %v1496_v40 = vadd.f32 %v6410_v24, %v1149_v61  ;;  %v3815_v56 = vld [vmem:[%s6294_s5 + $0x2f8] sm:$0xff]  ;;  %v6417_v61 = vld [vmem:[#allocation19_spill] sm:$0xff]  ;;  %v6419_v24 = vld [vmem:[#allocation20_spill] sm:$0xff] }
 0x24f   : > { %v5428_v35 = vadd.f32 %v1760_v60, %v1492_v63 }
 0x250   : > { %3838 = vmatmul.msk.f32.gmra.mxu0 %vm683_vm2, %v3813_v14 }
 0x251   : > { %3863 = vmatmul.msk.f32.gmra.mxu1 %vm683_vm2, %v3813_v14 }
 0x252   : > { %3892 = vmatmul.msk.f32.gmra.mxu2 %vm683_vm2, %v3867_v15 }
 0x253   : > { %3917 = vmatmul.msk.f32.gmra.mxu3 %vm683_vm2, %v3867_v15 }
 0x255   : > { %v1674_v39 = vpop.f32.mrf.mxu2 }
 0x256   : > { %v5448_v59 = vadd.f32 %v1674_v39, %v1493_v3  ;;  %v1763_v19 = vpop.f32.mrf.mxu3  ;;  %v6413_v3 = vld [vmem:[#allocation16_spill] sm:$0xff]  ;;  %v6415_v39 = vld [vmem:[#allocation63_spill] sm:$0xff] }
 0x257   : > { %v5452_v7 = vadd.f32 %v1763_v19, %v1494_v9  ;;  %v1152_v9 = vadd.f32 %v6414_v48, %v6413_v3  ;;  %v6416_v19 = vld [vmem:[#allocation64_spill] sm:$0xff] }
 0x258   : > { %3839 = vmatmul.msk.f32.gmra.mxu0 %vm683_vm2, %v3814_v50 }
 0x259   : > { %3864 = vmatmul.msk.f32.gmra.mxu1 %vm683_vm2, %v3814_v50  ;;  %v1497_v50 = vadd.f32 %v6415_v39, %v1063_v22  ;;  %v6423_v39 = vld [vmem:[#allocation23_spill] sm:$0xff] }
 0x25a   : > { %3893 = vmatmul.msk.f32.gmra.mxu2 %vm683_vm2, %v3868_v34 }
 0x25b   : > { %3918 = vmatmul.msk.f32.gmra.mxu3 %vm683_vm2, %v3868_v34  ;;  %v1498_v34 = vadd.f32 %v6416_v19, %v1152_v9  ;;  %v3871_v9 = vld [vmem:[%s6294_s5 + $0x328] sm:$0xff] }
 0x25d   : > { %v1677_v63 = vpop.f32.mrf.mxu2 }
 0x25e   : > { %v5470_v14 = vadd.f32 %v1677_v63, %v1495_v12  ;;  %v1766_v60 = vpop.f32.mrf.mxu3  ;;  %v1066_v12 = vadd.f32 %v6418_v11, %v6417_v61  ;;  %v6428_v11 = vld [vmem:[#allocation72_spill] sm:$0xff] }
 0x25f   : > { %v5472_v15 = vadd.f32 %v1766_v60, %v1496_v40  ;;  %v6420_v40 = vld [vmem:[#allocation44_spill] sm:$0xff] }
 0x260   : > { %3840 = vmatmul.msk.f32.gmra.mxu0 %vm683_vm2, %v3815_v56  ;;  %v1155_v63 = vadd.f32 %v6420_v40, %v6419_v24 }
 0x261   : > { %3865 = vmatmul.msk.f32.gmra.mxu1 %vm683_vm2, %v3815_v56  ;;  %v6421_v56 = vld [vmem:[#allocation67_spill] sm:$0xff] }
 0x262   : > { %3894 = vmatmul.msk.f32.gmra.mxu2 %vm683_vm2, %v3869_v8  ;;  %v1499_v60 = vadd.f32 %v6421_v56, %v1066_v12 }
 0x263   : > { %3919 = vmatmul.msk.f32.gmra.mxu3 %vm683_vm2, %v3869_v8  ;;  %v6422_v8 = vld [vmem:[#allocation68_spill] sm:$0xff] }
 0x264   : > { %v1500_v41 = vadd.f32 %v6422_v8, %v1155_v63  ;;  %v6429_v8 = vld [vmem:[#allocation27_spill] sm:$0xff] }
 0x265   : > { %v1680_v53 = vpop.f32.mrf.mxu2 }
 0x266   : > { %v5491_v31 = vadd.f32 %v1680_v53, %v1497_v50  ;;  %v1769_v13 = vpop.f32.mrf.mxu3  ;;  %v6424_v50 = vld [vmem:[#allocation45_spill] sm:$0xff]  ;;  %v6426_v53 = vld [vmem:[#allocation46_spill] sm:$0xff] }
 0x267   : > { %v5493_v27 = vadd.f32 %v1769_v13, %v1498_v34  ;;  %v1069_v19 = vadd.f32 %v6424_v50, %v6423_v39  ;;  %v6425_v34 = vld [vmem:[#allocation24_spill] sm:$0xff] }
 0x268   : > { %v1158_v13 = vadd.f32 %v6426_v53, %v6425_v34  ;;  %v6433_v50 = vld [vmem:[#allocation76_spill] sm:$0xff]  ;;  %v6434_v34 = vld [vmem:[#allocation78_spill] sm:$0xff] }
 0x26a   : > { %3895 = vmatmul.msk.f32.gmra.mxu2 %vm683_vm2, %v3870_v10  ;;  %v1502_v12 = vadd.f32 %v6428_v11, %v1158_v13 }
 0x26b   : > { %3920 = vmatmul.msk.f32.gmra.mxu3 %vm683_vm2, %v3870_v10  ;;  %v6427_v10 = vld [vmem:[#allocation71_spill] sm:$0xff] }
 0x26c   : > { %v1501_v61 = vadd.f32 %v6427_v10, %v1069_v19 }
 0x26d   : > { %v1683_v43 = vpop.f32.mrf.mxu2 }
 0x26e   : > { %v5506_v22 = vadd.f32 %v1683_v43, %v1499_v60  ;;  %v1772_v3 = vpop.f32.mrf.mxu3  ;;  %v3872_v60 = vld [vmem:[%s6294_s5 + $0x330] sm:$0xff] }
 0x26f   : > { %v5508_v48 = vadd.f32 %v1772_v3, %v1500_v41  ;;  %v6430_v41 = vld [vmem:[#allocation47_spill] sm:$0xff]  ;;  %v6431_v3 = vld [vmem:[#allocation28_spill] sm:$0xff] }
 0x270   : > { %v1072_v43 = vadd.f32 %v6430_v41, %v6429_v8  ;;  %v6438_v41 = vld [vmem:[#allocation50_spill] sm:$0xff] }
 0x272   : > { %3896 = vmatmul.msk.f32.gmra.mxu2 %vm683_vm2, %v3871_v9  ;;  %v1503_v19 = vadd.f32 %v6433_v50, %v1072_v43 }
 0x273   : > { %3921 = vmatmul.msk.f32.gmra.mxu3 %vm683_vm2, %v3871_v9  ;;  %v6432_v9 = vld [vmem:[#allocation48_spill] sm:$0xff] }
 0x274   : > { %v1161_v39 = vadd.f32 %v6432_v9, %v6431_v3 }
 0x275   : > { %v1686_v24 = vpop.f32.mrf.mxu2 }
 0x276   : > { %v5521_v40 = vadd.f32 %v1686_v24, %v1501_v61  ;;  %v1775_v63 = vpop.f32.mrf.mxu3  ;;  %v1504_v53 = vadd.f32 %v6434_v34, %v1161_v39  ;;  %v6435_v24 = vld [vmem:[#allocation29_spill] sm:$0xff] }
 0x277   : > { %v5523_v56 = vadd.f32 %v1775_v63, %v1502_v12  ;;  %v3873_v12 = vld [vmem:[%s6294_s5 + $0x338] sm:$0xff] }
 0x278   : > { %v6436_v63 = vld [vmem:[#allocation49_spill] sm:$0xff] }
 0x279   : > { %v1075_v8 = vadd.f32 %v6436_v63, %v6435_v24  ;;  %v6442_v63 = vld [vmem:[#allocation52_spill] sm:$0xff] }
 0x27a   : > { %3897 = vmatmul.msk.f32.gmra.mxu2 %vm683_vm2, %v3872_v60 }
 0x27b   : > { %3922 = vmatmul.msk.f32.gmra.mxu3 %vm683_vm2, %v3872_v60  ;;  %v6437_v60 = vld [vmem:[#allocation30_spill] sm:$0xff]  ;;  %v1505_v3 = vadd.f32 %v5243_v1, %v1075_v8 }
 0x27c   : > { %v1164_v43 = vadd.f32 %v6438_v41, %v6437_v60 }
 0x27d   : > { %v1689_v13 = vpop.f32.mrf.mxu2 }
 0x27e   : > { %v5536_v10 = vadd.f32 %v1689_v13, %v1503_v19  ;;  %v1778_v61 = vpop.f32.mrf.mxu3  ;;  %v1506_v9 = vadd.f32 %v5246_v5, %v1164_v43  ;;  %v6439_v13 = vld [vmem:[#allocation31_spill] sm:$0xff] }
 0x27f   : > { %v5538_v11 = vadd.f32 %v1778_v61, %v1504_v53  ;;  %v3874_v53 = vld [vmem:[%s6294_s5 + $0x340] sm:$0xff] }
 0x280   : > { %v6440_v61 = vld [vmem:[#allocation51_spill] sm:$0xff] }
 0x281   : > { %v1078_v24 = vadd.f32 %v6440_v61, %v6439_v13  ;;  %v6446_v61 = vld [vmem:[#allocation56_spill] sm:$0xff] }
 0x282   : > { %3898 = vmatmul.msk.f32.gmra.mxu2 %vm683_vm2, %v3873_v12 }
 0x283   : > { %3923 = vmatmul.msk.f32.gmra.mxu3 %vm683_vm2, %v3873_v12  ;;  %v6441_v12 = vld [vmem:[#allocation32_spill] sm:$0xff]  ;;  %v1507_v5 = vadd.f32 %v5271_v37, %v1078_v24 }
 0x284   : > { %v1167_v1 = vadd.f32 %v6442_v63, %v6441_v12 }
 0x285   : > { %v1692_v39 = vpop.f32.mrf.mxu2 }
 0x286   : > { %v5551_v50 = vadd.f32 %v1692_v39, %v1505_v3  ;;  %v1781_v19 = vpop.f32.mrf.mxu3  ;;  %v1508_v8 = vadd.f32 %v5276_v17, %v1167_v1  ;;  %v6443_v39 = vld [vmem:[#allocation33_spill] sm:$0xff] }
 0x287   : > { %v5553_v34 = vadd.f32 %v1781_v19, %v1506_v9  ;;  %v3875_v9 = vld [vmem:[%s6294_s5 + $0x348] sm:$0xff] }
 0x288   : > { %v6444_v19 = vld [vmem:[#allocation55_spill] sm:$0xff] }
 0x289   : > { %v1081_v13 = vadd.f32 %v6444_v19, %v6443_v39  ;;  %v6452_v19 = vld [vmem:[#allocation59_spill] sm:$0xff] }
 0x28a   : > { %3899 = vmatmul.msk.f32.gmra.mxu2 %vm683_vm2, %v3874_v53 }
 0x28b   : > { %3924 = vmatmul.msk.f32.gmra.mxu3 %vm683_vm2, %v3874_v53  ;;  %v6445_v53 = vld [vmem:[#allocation34_spill] sm:$0xff]  ;;  %v1509_v17 = vadd.f32 %v5301_v46, %v1081_v13  ;;  %v5593_v13 = vpop.f32.mrf.mxu0 }
 0x28c   : > { %v1170_v37 = vadd.f32 %v6446_v61, %v6445_v53  ;;  %6453 = vst [vmem:[#allocation38_spill] sm:$0xff] %v5593_v13  ;;  %v5597_v53 = vpop.f32.mrf.mxu1  ;;  %v3889_v13 = vld [vmem:[%s6294_s5 + $0x3b8] sm:$0xff] }
 0x28d   : > { %v1695_v60 = vpop.f32.mrf.mxu2  ;;  %6454 = vst [vmem:[#allocation53_spill] sm:$0xff] %v5597_v53  ;;  %v3888_v53 = vld [vmem:[%s6294_s5 + $0x3b0] sm:$0xff] }
 0x28e   : > { %v5566_v41 = vadd.f32 %v1695_v60, %v1507_v5  ;;  %v1784_v43 = vpop.f32.mrf.mxu3  ;;  %v1510_v24 = vadd.f32 %v5305_v25, %v1170_v37  ;;  %v6449_v60 = vld [vmem:[#allocation35_spill] sm:$0xff] }
 0x28f   : > { %v5568_v3 = vadd.f32 %v1784_v43, %v1508_v8  ;;  %v3876_v8 = vld [vmem:[%s6294_s5 + $0x350] sm:$0xff] }
 0x290   : > { %v6450_v43 = vld [vmem:[#allocation57_spill] sm:$0xff] }
 0x291   : > { %v1084_v39 = vadd.f32 %v6450_v43, %v6449_v60  ;;  %v6457_v60 = vld [vmem:[#allocation9_spill] sm:$0xff] }
 0x292   : > { %3900 = vmatmul.msk.f32.gmra.mxu2 %vm683_vm2, %v3875_v9  ;;  %v6458_v43 = vld [vmem:[#allocation61_spill] sm:$0xff] }
 0x293   : > { %3925 = vmatmul.msk.f32.gmra.mxu3 %vm683_vm2, %v3875_v9  ;;  %v6451_v9 = vld [vmem:[#allocation36_spill] sm:$0xff]  ;;  %v1511_v25 = vadd.f32 %v5330_v21, %v1084_v39  ;;  %v6459_v21 = vld [vmem:[#allocation10_spill] sm:$0xff] }
 0x294   : > { %v1173_v46 = vadd.f32 %v6452_v19, %v6451_v9  ;;  %v1087_v9 = vadd.f32 %v6458_v43, %v6457_v60  ;;  %v3878_v43 = vld [vmem:[%s6294_s5 + $0x360] sm:$0xff] }
 0x295   : > { %v1698_v12 = vpop.f32.mrf.mxu2 }
 0x296   : > { %v5581_v63 = vadd.f32 %v1698_v12, %v1509_v17  ;;  %v1787_v1 = vpop.f32.mrf.mxu3  ;;  %v1512_v61 = vadd.f32 %v5334_v18, %v1173_v46  ;;  %v1513_v18 = vadd.f32 %v5361_v52, %v1087_v9  ;;  %v5615_v46 = vpop.f32.mrf.mxu0  ;;  %v6467_v52 = vld [vmem:[#allocation14_spill] sm:$0xff] }
 0x297   : > { %v5583_v5 = vadd.f32 %v1787_v1, %v1510_v24  ;;  %v3877_v1 = vld [vmem:[%s6294_s5 + $0x358] sm:$0xff]  ;;  %6461 = vst [vmem:[#allocation39_spill] sm:$0xff] %v5615_v46 }
 0x298   : > { %6447 = vst [vmem:[#allocation37_spill] sm:$0xff] %v5581_v63 }
 0x299   : > { %6448 = vst [vmem:[#allocation8_spill] sm:$0xff] %v5583_v5 }
 0x29a   : > { %3901 = vmatmul.msk.f32.gmra.mxu2 %vm683_vm2, %v3876_v8 }
 0x29b   : > { %3926 = vmatmul.msk.f32.gmra.mxu3 %vm683_vm2, %v3876_v8  ;;  %v6460_v8 = vld [vmem:[#allocation62_spill] sm:$0xff] }
 0x29c   : > { %v1176_v39 = vadd.f32 %v6460_v8, %v6459_v21  ;;  %v6465_v21 = vld [vmem:[#allocation13_spill] sm:$0xff] }
 0x29d   : > { %v1701_v37 = vpop.f32.mrf.mxu2 }
 0x29e   : > { %v5600_v17 = vadd.f32 %v1701_v37, %v1511_v25  ;;  %v1790_v24 = vpop.f32.mrf.mxu3  ;;  %v1514_v19 = vadd.f32 %v5364_v16, %v1176_v39  ;;  %v6468_v16 = vld [vmem:[#allocation66_spill] sm:$0xff]  ;;  %v5636_v5 = vpop.f32.mrf.mxu0 }
 0x29f   : > { %v5602_v12 = vadd.f32 %v1790_v24, %v1512_v61  ;;  %v5617_v61 = vpop.f32.mrf.mxu1  ;;  %v1179_v9 = vadd.f32 %v6468_v16, %v6467_v52  ;;  %6470 = vst [vmem:[#allocation15_spill] sm:$0xff] %v5636_v5  ;;  %v6473_v52 = vld [vmem:[#allocation17_spill] sm:$0xff] }
 0x2a0   : > { %6455 = vst [vmem:[#allocation54_spill] sm:$0xff] %v5600_v17  ;;  %v6480_v17 = vld [vmem:[#allocation21_spill] sm:$0xff] }
 0x2a1   : > { %6456 = vst [vmem:[#allocation11_spill] sm:$0xff] %v5602_v12 }
 0x2a2   : > { %3902 = vmatmul.msk.f32.gmra.mxu2 %vm683_vm2, %v3877_v1  ;;  %6462 = vst [vmem:[#allocation12_spill] sm:$0xff] %v5617_v61 }
 0x2a3   : > { %3927 = vmatmul.msk.f32.gmra.mxu3 %vm683_vm2, %v3877_v1  ;;  %v6466_v1 = vld [vmem:[#allocation65_spill] sm:$0xff] }
 0x2a4   : > { %v1090_v8 = vadd.f32 %v6466_v1, %v6465_v21  ;;  %v3879_v21 = vld [vmem:[%s6294_s5 + $0x368] sm:$0xff] }
 0x2a5   : > { %v1704_v25 = vpop.f32.mrf.mxu2 }
 0x2a6   : > { %v5619_v37 = vadd.f32 %v1704_v25, %v1513_v18  ;;  %v1793_v24 = vpop.f32.mrf.mxu3  ;;  %v1515_v39 = vadd.f32 %v5389_v44, %v1090_v8  ;;  %v1516_v18 = vadd.f32 %v5394_v0, %v1179_v9  ;;  %v6475_v44 = vld [vmem:[#allocation18_spill] sm:$0xff] }
 0x2a7   : > { %v5621_v60 = vadd.f32 %v1793_v24, %v1514_v19  ;;  %v5643_v1 = vpop.f32.mrf.mxu1  ;;  %v6476_v0 = vld [vmem:[#allocation70_spill] sm:$0xff] }
 0x2a8   : > { %6463 = vst [vmem:[#allocation40_spill] sm:$0xff] %v5619_v37  ;;  %v1182_v8 = vadd.f32 %v6476_v0, %v6475_v44  ;;  %v6481_v44 = vld [vmem:[#allocation73_spill] sm:$0xff]  ;;  %v6488_v37 = vld [vmem:[#allocation75_spill] sm:$0xff] }
 0x2a9   : > { %6464 = vst [vmem:[#allocation58_spill] sm:$0xff] %v5621_v60  ;;  %v1096_v0 = vadd.f32 %v6481_v44, %v6480_v17  ;;  %v3881_v17 = vld [vmem:[%s6294_s5 + $0x378] sm:$0xff] }
 0x2aa   : > { %3903 = vmatmul.msk.f32.gmra.mxu2 %vm683_vm2, %v3878_v43  ;;  %6472 = vst [vmem:[#allocation16_spill] sm:$0xff] %v5643_v1  ;;  %v6487_v44 = vld [vmem:[#allocation25_spill] sm:$0xff] }
 0x2ab   : > { %3928 = vmatmul.msk.f32.gmra.mxu3 %vm683_vm2, %v3878_v43  ;;  %v6474_v43 = vld [vmem:[#allocation69_spill] sm:$0xff] }
 0x2ac   : > { %v1093_v16 = vadd.f32 %v6474_v43, %v6473_v52  ;;  %v3880_v52 = vld [vmem:[%s6294_s5 + $0x370] sm:$0xff]  ;;  %v5660_v43 = vpop.f32.mrf.mxu0 }
 0x2ad   : > { %v1707_v19 = vpop.f32.mrf.mxu2  ;;  %6479 = vst [vmem:[#allocation64_spill] sm:$0xff] %v5660_v43 }
 0x2ae   : > { %v5634_v25 = vadd.f32 %v1707_v19, %v1515_v39  ;;  %v1796_v24 = vpop.f32.mrf.mxu3  ;;  %v1517_v9 = vadd.f32 %v5418_v62, %v1093_v16  ;;  %v1518_v39 = vadd.f32 %v5421_v32, %v1182_v8  ;;  %v6483_v62 = vld [vmem:[#allocation22_spill] sm:$0xff]  ;;  %v1519_v8 = vadd.f32 %v5446_v58, %v1096_v0 }
 0x2af   : > { %v5638_v63 = vadd.f32 %v1796_v24, %v1516_v18  ;;  %v6484_v32 = vld [vmem:[#allocation74_spill] sm:$0xff] }
 0x2b0   : > { %6469 = vst [vmem:[#allocation60_spill] sm:$0xff] %v5634_v25  ;;  %v1185_v16 = vadd.f32 %v6484_v32, %v6483_v62  ;;  %v6490_v62 = vld [vmem:[#allocation77_spill] sm:$0xff] }
 0x2b1   : > { %6471 = vst [vmem:[#allocation41_spill] sm:$0xff] %v5638_v63  ;;  %v1099_v63 = vadd.f32 %v6488_v37, %v6487_v44  ;;  %v3883_v44 = vld [vmem:[%s6294_s5 + $0x388] sm:$0xff] }
 0x2b2   : > { %3904 = vmatmul.msk.f32.gmra.mxu2 %vm683_vm2, %v3879_v21 }
 0x2b3   : > { %3929 = vmatmul.msk.f32.gmra.mxu3 %vm683_vm2, %v3879_v21  ;;  %v5664_v21 = vpop.f32.mrf.mxu1 }
 0x2b4   : > { %6482 = vst [vmem:[#allocation19_spill] sm:$0xff] %v5664_v21  ;;  %v5684_v0 = vpop.f32.mrf.mxu0  ;;  %v2619_v21 = vpop.permute.xlu1 %2618 }
 0x2b5   : > { %v1710_v18 = vpop.f32.mrf.mxu2  ;;  %6491 = vst [vmem:[#allocation44_spill] sm:$0xff] %v5684_v0 }
 0x2b6   : > { %v5653_v19 = vadd.f32 %v1710_v18, %v1517_v9  ;;  %v1799_v24 = vpop.f32.mrf.mxu3  ;;  %v1520_v9 = vadd.f32 %v5450_v57, %v1185_v16  ;;  %v1521_v57 = vadd.f32 %v5477_v51, %v1099_v63 }
 0x2b7   : > { %v5655_v12 = vadd.f32 %v1799_v24, %v1518_v39 }
 0x2b8   : > { %6477 = vst [vmem:[#allocation42_spill] sm:$0xff] %v5653_v19 }
 0x2b9   : > { %6478 = vst [vmem:[#allocation63_spill] sm:$0xff] %v5655_v12 }
 0x2ba   : > { %3905 = vmatmul.msk.f32.gmra.mxu2 %vm683_vm2, %v3880_v52 }
 0x2bb   : > { %3930 = vmatmul.msk.f32.gmra.mxu3 %vm683_vm2, %v3880_v52  ;;  %v6489_v52 = vld [vmem:[#allocation26_spill] sm:$0xff]  ;;  %v5688_v32 = vpop.f32.mrf.mxu1 }
 0x2bc   : > { %v1188_v58 = vadd.f32 %v6490_v62, %v6489_v52  ;;  %6492 = vst [vmem:[#allocation67_spill] sm:$0xff] %v5688_v32  ;;  %v2614_v32 = vpop.permute.xlu2 %2613  ;;  %v5807_v0 = vpop.permute.xlu1 %2603 }
 0x2bd   : > { %v1713_v39 = vpop.f32.mrf.mxu2 }
 0x2be   : > { %v5672_v18 = vadd.f32 %v1713_v39, %v1519_v8  ;;  %v1802_v24 = vpop.f32.mrf.mxu3  ;;  %v1522_v16 = vadd.f32 %v5480_v33, %v1188_v58 }
 0x2bf   : > { %v5674_v60 = vadd.f32 %v1802_v24, %v1520_v9  ;;  %v3882_v24 = vld [vmem:[%s6294_s5 + $0x380] sm:$0xff] }
 0x2c0   : > { %6485 = vst [vmem:[#allocation43_spill] sm:$0xff] %v5672_v18 }
 0x2c1   : > { %6486 = vst [vmem:[#allocation20_spill] sm:$0xff] %v5674_v60 }
 0x2c2   : > { %3906 = vmatmul.msk.f32.gmra.mxu2 %vm683_vm2, %v3881_v17 }
 0x2c3   : > { %3931 = vmatmul.msk.f32.gmra.mxu3 %vm683_vm2, %v3881_v17  ;;  %v5700_v17 = vpop.f32.mrf.mxu0  ;;  %v5704_v63 = vpop.f32.mrf.mxu1 }
 0x2c4   : > { %6495 = vst [vmem:[#allocation45_spill] sm:$0xff] %v5700_v17  ;;  %v5811_v17 = vpop.permute.xlu2 %2598  ;;  %v5813_v23 = vpop.permute.xlu1 %2588 }
 0x2c5   : > { %v1716_v8 = vpop.f32.mrf.mxu2  ;;  %6497 = vst [vmem:[#allocation46_spill] sm:$0xff] %v5704_v63 }
 0x2c6   : > { %v5691_v9 = vadd.f32 %v1716_v8, %v1521_v57  ;;  %v1805_v39 = vpop.f32.mrf.mxu3  ;;  %v3884_v57 = vld [vmem:[%s6294_s5 + $0x390] sm:$0xff]  ;;  %6519 = vst [vmem:[#allocation57_spill] sm:$0xff] %v5811_v17 }
 0x2c7   : > { %v5693_v37 = vadd.f32 %v1805_v39, %v1522_v16  ;;  %6520 = vst [vmem:[#allocation36_spill] sm:$0xff] %v5813_v23 }
 0x2c8   : > { %6493 = vst [vmem:[#allocation68_spill] sm:$0xff] %v5691_v9 }
 0x2c9   : > { %6494 = vst [vmem:[#allocation23_spill] sm:$0xff] %v5693_v37 }
 0x2ca   : > { %3907 = vmatmul.msk.f32.gmra.mxu2 %vm683_vm2, %v3882_v24 }
 0x2cb   : > { %3932 = vmatmul.msk.f32.gmra.mxu3 %vm683_vm2, %v3882_v24  ;;  %v5717_v58 = vpop.f32.mrf.mxu0  ;;  %v5722_v16 = vpop.f32.mrf.mxu1  ;;  %v3885_v24 = vld [vmem:[%s6294_s5 + $0x398] sm:$0xff] }
 0x2cc   : > { %6501 = vst [vmem:[#allocation47_spill] sm:$0xff] %v5717_v58  ;;  %v5817_v26 = vpop.permute.xlu2 %2583 }
 0x2cd   : > { %v5702_v51 = vpop.f32.mrf.mxu2  ;;  %6502 = vst [vmem:[#allocation28_spill] sm:$0xff] %v5722_v16 }
 0x2ce   : > { %6496 = vst [vmem:[#allocation24_spill] sm:$0xff] %v5702_v51  ;;  %v5706_v33 = vpop.f32.mrf.mxu3 }
 0x2cf   : > { %6498 = vst [vmem:[#allocation71_spill] sm:$0xff] %v5706_v33 }
 0x2d0   : > { %6522 = vst [vmem:[#allocation9_spill] sm:$0xff] %v5817_v26 }
 0x2d2   : > { %3908 = vmatmul.msk.f32.gmra.mxu2 %vm683_vm2, %v3883_v44 }
 0x2d3   : > { %3933 = vmatmul.msk.f32.gmra.mxu3 %vm683_vm2, %v3883_v44  ;;  %v5733_v44 = vpop.f32.mrf.mxu0  ;;  %v5735_v25 = vpop.f32.mrf.mxu1 }
 0x2d4   : > { %6505 = vst [vmem:[#allocation78_spill] sm:$0xff] %v5735_v25  ;;  %v5820_v25 = vpop.permute.xlu1 %2663 }
 0x2d5   : > { %v5713_v52 = vpop.f32.mrf.mxu2  ;;  %6523 = vst [vmem:[#allocation61_spill] sm:$0xff] %v5820_v25 }
 0x2d6   : > { %6499 = vst [vmem:[#allocation72_spill] sm:$0xff] %v5713_v52  ;;  %v5715_v62 = vpop.f32.mrf.mxu3 }
 0x2d7   : > { %6500 = vst [vmem:[#allocation27_spill] sm:$0xff] %v5715_v62 }
 0x2da   : > { %3909 = vmatmul.msk.f32.gmra.mxu2 %vm683_vm2, %v3884_v57 }
 0x2db   : > { %3934 = vmatmul.msk.f32.gmra.mxu3 %vm683_vm2, %v3884_v57  ;;  %v3886_v57 = vld [vmem:[%s6294_s5 + $0x3a0] sm:$0xff]  ;;  %v5747_v9 = vpop.f32.mrf.mxu0  ;;  %v5750_v19 = vpop.f32.mrf.mxu1 }
 0x2dc   : > { %v5827_v17 = vadd.f32 %v5747_v9, %v5426_v38  ;;  %v5833_v26 = vadd.f32 %v5750_v19, %v5428_v35 }
 0x2dd   : > { %v5726_v8 = vpop.f32.mrf.mxu2 }
 0x2de   : > { %6503 = vst [vmem:[#allocation48_spill] sm:$0xff] %v5726_v8  ;;  %v5728_v39 = vpop.f32.mrf.mxu3 }
 0x2df   : > { %6504 = vst [vmem:[#allocation76_spill] sm:$0xff] %v5728_v39 }
 0x2e2   : > { %3910 = vmatmul.msk.f32.gmra.mxu2 %vm683_vm2, %v3885_v24 }
 0x2e3   : > { %3935 = vmatmul.msk.f32.gmra.mxu3 %vm683_vm2, %v3885_v24  ;;  %v3887_v24 = vld [vmem:[%s6294_s5 + $0x3a8] sm:$0xff]  ;;  %v5761_v33 = vpop.f32.mrf.mxu0  ;;  %v5765_v62 = vpop.f32.mrf.mxu1 }
 0x2e4   : > { %v2159_v38 = vadd.f32 %v5761_v33, %v5448_v59  ;;  %v2160_v35 = vadd.f32 %v5765_v62, %v5452_v7 }
 0x2e5   : > { %v5739_v37 = vpop.f32.mrf.mxu2 }
 0x2e6   : > { %6506 = vst [vmem:[#allocation29_spill] sm:$0xff] %v5739_v37  ;;  %v5741_v12 = vpop.f32.mrf.mxu3  ;;  %v2624_v37 = vpop.permute.xlu0 %2623 }
 0x2e7   : > { %6507 = vst [vmem:[#allocation49_spill] sm:$0xff] %v5741_v12 }
 0x2ea   : > { %3911 = vmatmul.msk.f32.gmra.mxu2 %vm683_vm2, %v3886_v57 }
 0x2eb   : > { %3936 = vmatmul.msk.f32.gmra.mxu3 %vm683_vm2, %v3886_v57  ;;  %v5783_v28 = vpop.f32.mrf.mxu1 }
 0x2ed   : > { %v5752_v60 = vpop.f32.mrf.mxu2 }
 0x2ee   : > { %6508 = vst [vmem:[#allocation30_spill] sm:$0xff] %v5752_v60  ;;  %v5754_v18 = vpop.f32.mrf.mxu3  ;;  %v5805_v60 = vpop.permute.xlu0 %2608 }
 0x2ef   : > { %6509 = vst [vmem:[#allocation50_spill] sm:$0xff] %v5754_v18 }
 0x2f2   : > { %3912 = vmatmul.msk.f32.gmra.mxu2 %vm683_vm2, %v3887_v24 }
 0x2f3   : > { %3937 = vmatmul.msk.f32.gmra.mxu3 %vm683_vm2, %v3887_v24  ;;  %v5778_v24 = vpop.f32.mrf.mxu0  ;;  %v5791_v49 = vpop.f32.mrf.mxu1 }
 0x2f5   : > { %v5763_v51 = vpop.f32.mrf.mxu2 }
 0x2f6   : > { %6510 = vst [vmem:[#allocation31_spill] sm:$0xff] %v5763_v51  ;;  %v5767_v57 = vpop.f32.mrf.mxu3  ;;  %v5809_v54 = vpop.permute.xlu0 %2593 }
 0x2f7   : > { %6511 = vst [vmem:[#allocation51_spill] sm:$0xff] %v5767_v57 }
 0x2f8   : > { %6518 = vst [vmem:[#allocation35_spill] sm:$0xff] %v5809_v54 }
 0x2fa   : > { %3913 = vmatmul.msk.f32.gmra.mxu2 %vm683_vm2, %v3888_v53 }
 0x2fb   : > { %3938 = vmatmul.msk.f32.gmra.mxu3 %vm683_vm2, %v3888_v53  ;;  %v2013_v53 = vpop.f32.mrf.mxu0  ;;  %v2105_v12 = vpop.f32.mrf.mxu1 }
 0x2fd   : > { %v5774_v42 = vpop.f32.mrf.mxu2 }
 0x2fe   : > { %6512 = vst [vmem:[#allocation32_spill] sm:$0xff] %v5774_v42  ;;  %v5776_v52 = vpop.f32.mrf.mxu3 }
 0x2ff   : > { %6513 = vst [vmem:[#allocation52_spill] sm:$0xff] %v5776_v52 }
 0x302   : > { %3914 = vmatmul.msk.f32.gmra.mxu2 %vm683_vm2, %v3889_v13 }
 0x303   : > { %3939 = vmatmul.msk.f32.gmra.mxu3 %vm683_vm2, %v3889_v13  ;;  %v2016_v20 = vpop.f32.mrf.mxu0  ;;  %v2108_v29 = vpop.f32.mrf.mxu1 }
 0x305   : > { %v5787_v39 = vpop.f32.mrf.mxu2 }
 0x306   : > { %6514 = vst [vmem:[#allocation33_spill] sm:$0xff] %v5787_v39  ;;  %v5789_v61 = vpop.f32.mrf.mxu3 }
 0x307   : > { %6515 = vst [vmem:[#allocation55_spill] sm:$0xff] %v5789_v61  ;;  %v5815_v61 = vpop.permute.xlu0 %2578 }
 0x308   : > { %6521 = vst [vmem:[#allocation59_spill] sm:$0xff] %v5815_v61 }
 0x30b   : > { %v2019_v5 = vpop.f32.mrf.mxu0  ;;  %v2111_v57 = vpop.f32.mrf.mxu1 }
 0x30c   : > { %v2170_v54 = vadd.f32 %v2111_v57, %v5538_v11  ;;  %v2167_v61 = vadd.f32 %v2019_v5, %v5521_v40  ;;  %v2165_v40 = vadd.f32 %v2016_v20, %v5506_v22  ;;  %v2164_v20 = vadd.f32 %v5791_v49, %v5493_v27 }
 0x30d   : > { %v5793_v8 = vpop.f32.mrf.mxu2 }
 0x30e   : > { %6516 = vst [vmem:[#allocation34_spill] sm:$0xff] %v5793_v8  ;;  %v5795_v46 = vpop.f32.mrf.mxu3 }
 0x30f   : > { %6517 = vst [vmem:[#allocation56_spill] sm:$0xff] %v5795_v46  ;;  %v5823_v45 = vpop.permute.xlu0 %2658 }
 0x313   : > { %v2022_v47 = vpop.f32.mrf.mxu0  ;;  %v2114_v63 = vpop.f32.mrf.mxu1 }
 0x314   : > { %v2169_v46 = vadd.f32 %v2022_v47, %v5536_v10  ;;  %v2168_v47 = vadd.f32 %v2108_v29, %v5523_v56  ;;  %v2172_v10 = vadd.f32 %v2114_v63, %v5553_v34  ;;  %v2166_v29 = vadd.f32 %v2105_v12, %v5508_v48  ;;  %v5852_v48 = vpop.permute.xlu2 %2573 }
 0x315   : > { %v5797_v1 = vpop.f32.mrf.mxu2 }
 0x316   : > { %v5799_v55 = vpop.f32.mrf.mxu3 }
 0x31b   : > { %v2025_v52 = vpop.f32.mrf.mxu0  ;;  %v2117_v6 = vpop.f32.mrf.mxu1 }
 0x31c   : > { %v2171_v23 = vadd.f32 %v2025_v52, %v5551_v50 }
 0x31d   : > { %v5801_v13 = vpop.f32.mrf.mxu2 }
 0x31e   : > { %v5803_v18 = vpop.f32.mrf.mxu3 }
 0x323   : > { %v2028_v16 = vpop.f32.mrf.mxu0  ;;  %v5842_v5 = vpop.f32.mrf.mxu1 }
 0x324   : > { %v2173_v33 = vadd.f32 %v2028_v16, %v5566_v41  ;;  %v5868_v16 = vpop.permute.xlu0 %2563 }
 0x325   : > { %v2346_v4 = vpop.f32.mrf.mxu2 }
 0x326   : > { %v2435_v43 = vpop.f32.mrf.mxu3 }
 0x32b   : > { %v5837_v11 = vpop.f32.mrf.mxu0 }
 0x32d   : > { %v2349_v36 = vpop.f32.mrf.mxu2 }
 0x32e   : > { %v2438_v51 = vpop.f32.mrf.mxu3  ;;  %v2498_v19 = vadd.f32 %v2349_v36, %v2165_v40  ;;  %v2497_v36 = vadd.f32 %v2435_v43, %v2164_v20  ;;  %v2492_v43 = vadd.f32 %v5797_v1, %v2159_v38  ;;  %v2155_v1 = vadd.f32 %v5733_v44, %v5402_v30  ;;  %v6529_v30 = vld [vmem:[#allocation91_spill] sm:$0xff] }
 0x32f   : > { %v2499_v59 = vadd.f32 %v2438_v51, %v2166_v29  ;;  %v6530_v44 = vld [vmem:[#allocation47_spill] sm:$0xff] }
 0x330   : > { %v2690_v27 = vadd.f32 %v5805_v60, %v2498_v19  ;;  %v6534_v19 = vld [vmem:[#allocation28_spill] sm:$0xff] }
 0x331   : > { %v2691_v51 = vadd.f32 %v5805_v60, %v2499_v59 }
 0x335   : > { %v2352_v2 = vpop.f32.mrf.mxu2 }
 0x336   : > { %v2441_v42 = vpop.f32.mrf.mxu3  ;;  %v2500_v50 = vadd.f32 %v2352_v2, %v2167_v61 }
 0x337   : > { %v2501_v56 = vadd.f32 %v2441_v42, %v2168_v47  ;;  %v2162_v42 = vadd.f32 %v5783_v28, %v5472_v15 }
 0x338   : > { %v2692_v7 = vadd.f32 %v2614_v32, %v2500_v50 }
 0x33d   : > { %v2355_v39 = vpop.f32.mrf.mxu2 }
 0x33e   : > { %v2444_v58 = vpop.f32.mrf.mxu3  ;;  %v2502_v8 = vadd.f32 %v2355_v39, %v2169_v46  ;;  %v5878_v39 = vpop.f32.mrf.mxu1 }
 0x33f   : > { %v2503_v57 = vadd.f32 %v2444_v58, %v2170_v54  ;;  %v2163_v54 = vadd.f32 %v2013_v53, %v5491_v31  ;;  %v2693_v31 = vadd.f32 %v2614_v32, %v2501_v56  ;;  %v2740_v32 = vmax.f32 %v2692_v7, 0.0 }
 0x340   : > { %v2694_v63 = vadd.f32 %v2619_v21, %v2502_v8  ;;  %v5870_v8 = vpop.f32.mrf.mxu0 }
 0x341   : > { %v2695_v22 = vadd.f32 %v2619_v21, %v2503_v57  ;;  %v2496_v61 = vadd.f32 %v2346_v4, %v2163_v54  ;;  %v2174_v4 = vadd.f32 %v2117_v6, %v5568_v3  ;;  %v2493_v6 = vadd.f32 %v5799_v55, %v2160_v35  ;;  %v6526_v57 = vld [vmem:[#allocation93_spill] sm:$0xff]  ;;  %v6527_v55 = vld [vmem:[#allocation78_spill] sm:$0xff]  ;;  %v6533_v54 = vld [vmem:[#allocation92_spill] sm:$0xff] }
 0x342   : > { %v2742_v21 = vmax.f32 %v2694_v63, 0.0  ;;  %v2689_v3 = vadd.f32 %v5807_v0, %v2497_v36  ;;  %v2741_v60 = vmax.f32 %v2693_v31, 0.0  ;;  %v2156_v38 = vadd.f32 %v6527_v55, %v6526_v57  ;;  %v6531_v35 = vld [vmem:[#allocation33_spill] sm:$0xff]  ;;  %v5900_v31 = vpop.permute.xlu2 %2653 }
 0x343   : > { %v2743_v28 = vmax.f32 %v2695_v22, 0.0  ;;  %v2688_v41 = vadd.f32 %v5807_v0, %v2496_v61  ;;  %v6528_v0 = vld [vmem:[#allocation56_spill] sm:$0xff]  ;;  %v2488_v29 = vadd.f32 %v6531_v35, %v2155_v1  ;;  %v2154_v63 = vadd.f32 %v6534_v19, %v6533_v54  ;;  %v6536_v22 = vld [vmem:[#allocation89_spill] sm:$0xff]  ;;  %v5924_v35 = vpop.permute.xlu0 %2643  ;;  %v6556_v54 = vld [vmem:[#allocation50_spill] sm:$0xff] }
 0x344   : > { %v2491_v40 = vadd.f32 %v6528_v0, %v5833_v26  ;;  %v2737_v59 = vmax.f32 %v2689_v3, 0.0  ;;  %v6538_v61 = vld [vmem:[#allocation32_spill] sm:$0xff] }
 0x345   : > { %v2358_v25 = vpop.f32.mrf.mxu2  ;;  %v6551_v0 = vld [vmem:[#allocation64_spill] sm:$0xff] }
 0x346   : > { %v2504_v46 = vadd.f32 %v2358_v25, %v2171_v23  ;;  %v2447_v9 = vpop.f32.mrf.mxu3  ;;  %v2161_v23 = vadd.f32 %v5778_v24, %v5470_v14  ;;  %v5859_v14 = vpop.permute.xlu1 %2568  ;;  %v6524_v24 = vld [vmem:[#allocation34_spill] sm:$0xff] }
 0x347   : > { %v2505_v34 = vadd.f32 %v2447_v9, %v2172_v10  ;;  %v2490_v53 = vadd.f32 %v6524_v24, %v5827_v17  ;;  %v2738_v10 = vmax.f32 %v2690_v27, 0.0  ;;  %v2153_v9 = vadd.f32 %v6530_v44, %v6529_v30  ;;  %v6532_v17 = vld [vmem:[#allocation35_spill] sm:$0xff]  ;;  %v6542_v27 = vld [vmem:[#allocation52_spill] sm:$0xff] }
 0x348   : > { %v2696_v52 = vadd.f32 %v2624_v37, %v2504_v46  ;;  %v2494_v49 = vadd.f32 %v5801_v13, %v2161_v23  ;;  %v6525_v13 = vld [vmem:[#allocation57_spill] sm:$0xff]  ;;  %v2739_v46 = vmax.f32 %v2691_v51, 0.0  ;;  %v2684_v56 = vadd.f32 %v6532_v17, %v2492_v43  ;;  %v6547_v24 = vld [vmem:[#allocation88_spill] sm:$0xff]  ;;  %v6553_v30 = vld [vmem:[#allocation59_spill] sm:$0xff] }
 0x349   : > { %v2697_v2 = vadd.f32 %v2624_v37, %v2505_v34  ;;  %v2495_v37 = vadd.f32 %v5803_v18, %v2162_v42  ;;  %v2736_v34 = vmax.f32 %v2688_v41, 0.0  ;;  %v2685_v26 = vadd.f32 %v6532_v17, %v2493_v6  ;;  %v6545_v41 = vld [vmem:[#allocation31_spill] sm:$0xff] }
 0x34a   : > { %v2744_v25 = vmax.f32 %v2696_v52, 0.0  ;;  %v2686_v47 = vadd.f32 %v6525_v13, %v2494_v49  ;;  %v6535_v52 = vld [vmem:[#allocation55_spill] sm:$0xff]  ;;  %v2486_v7 = vadd.f32 %v6538_v61, %v2153_v9 }
 0x34b   : > { %v2745_v12 = vmax.f32 %v2697_v2, 0.0  ;;  %v2687_v50 = vadd.f32 %v6525_v13, %v2495_v37  ;;  %v2489_v20 = vadd.f32 %v6535_v52, %v2156_v38  ;;  %v6537_v2 = vld [vmem:[#allocation45_spill] sm:$0xff]  ;;  %v2733_v55 = vmax.f32 %v2685_v26, 0.0  ;;  %v6555_v17 = vld [vmem:[#allocation19_spill] sm:$0xff] }
 0x34c   : > { %2895 = vmatpush.msrb.mxu0 %v2744_v25  ;;  %v2151_v23 = vadd.f32 %v6537_v2, %v6536_v22  ;;  %v6539_v25 = vld [vmem:[#allocation36_spill] sm:$0xff]  ;;  %v2734_v36 = vmax.f32 %v2686_v47, 0.0  ;;  %v6549_v47 = vld [vmem:[#allocation51_spill] sm:$0xff]  ;;  %v6550_v38 = vld [vmem:[#allocation85_spill] sm:$0xff]  ;;  %v2678_v44 = vadd.f32 %v6553_v30, %v2486_v7  ;;  %v5934_v22 = vpop.f32.mrf.mxu1 }
 0x34d   : > { %3001 = vmatpush.msra.mxu2 %v2745_v12  ;;  %v2361_v15 = vpop.f32.mrf.mxu2  ;;  %v2682_v42 = vadd.f32 %v6539_v25, %v2490_v53  ;;  %v6540_v12 = vld [vmem:[#allocation90_spill] sm:$0xff]  ;;  %v2735_v51 = vmax.f32 %v2687_v50, 0.0  ;;  %v6548_v53 = vld [vmem:[#allocation67_spill] sm:$0xff]  ;;  %v6559_v2 = vld [vmem:[#allocation29_spill] sm:$0xff] }
 0x34e   : > { %v5866_v62 = vadd.f32 %v2361_v15, %v2173_v33  ;;  %v2450_v58 = vpop.f32.mrf.mxu3  ;;  %2896 = vmatpush.msrb.mxu0 %v2742_v21  ;;  %v6541_v33 = vld [vmem:[#allocation46_spill] sm:$0xff]  ;;  %v2487_v21 = vadd.f32 %v6542_v27, %v2154_v63  ;;  %v6544_v15 = vld [vmem:[#allocation44_spill] sm:$0xff]  ;;  %v5914_v1 = vpop.permute.xlu1 %2648  ;;  %v2150_v13 = vadd.f32 %v6548_v53, %v6547_v24  ;;  %v6558_v26 = vld [vmem:[#allocation15_spill] sm:$0xff] }
 0x34f   : > { %v5874_v18 = vadd.f32 %v2450_v58, %v2174_v4  ;;  %3002 = vmatpush.msra.mxu2 %v2743_v28  ;;  %v2152_v49 = vadd.f32 %v6541_v33, %v6540_v12  ;;  %v2683_v4 = vadd.f32 %v6539_v25, %v2491_v40  ;;  %v6543_v28 = vld [vmem:[#allocation87_spill] sm:$0xff]  ;;  %v6546_v58 = vld [vmem:[#allocation9_spill] sm:$0xff]  ;;  %v2147_v40 = vadd.f32 %v6551_v0, %v6550_v38  ;;  %v6552_v50 = vld [vmem:[#allocation30_spill] sm:$0xff] }
 0x350   : > { %2897 = vmatpush.msrb.mxu0 %v2740_v32  ;;  %v2149_v43 = vadd.f32 %v6544_v15, %v6543_v28  ;;  %v2484_v32 = vadd.f32 %v6545_v41, %v2151_v23  ;;  %v2680_v6 = vadd.f32 %v6546_v58, %v2488_v29  ;;  %v2681_v57 = vadd.f32 %v6546_v58, %v2489_v20  ;;  %v6554_v29 = vld [vmem:[#allocation86_spill] sm:$0xff]  ;;  %v6557_v20 = vld [vmem:[#allocation83_spill] sm:$0xff]  ;;  %v6560_v25 = vld [vmem:[#allocation84_spill] sm:$0xff] }
 0x351   : > { %3003 = vmatpush.msra.mxu2 %v2741_v60  ;;  %v2732_v60 = vmax.f32 %v2684_v56, 0.0  ;;  %v2730_v9 = vmax.f32 %v2682_v42, 0.0  ;;  %v2148_v56 = vadd.f32 %v6555_v17, %v6554_v29  ;;  %v2483_v19 = vadd.f32 %v6556_v54, %v2150_v13  ;;  %v6561_v42 = vld [vmem:[#allocation16_spill] sm:$0xff]  ;;  %v6562_v12 = vld [vmem:[#allocation49_spill] sm:$0xff] }
 0x352   : > { %2898 = vmatpush.msrb.mxu0 %v2738_v10  ;;  %v2485_v10 = vadd.f32 %v6549_v47, %v2152_v49  ;;  %v2679_v63 = vadd.f32 %v6553_v30, %v2487_v21  ;;  %v2731_v52 = vmax.f32 %v2683_v4, 0.0  ;;  %v2480_v23 = vadd.f32 %v6559_v2, %v2147_v40  ;;  %v6563_v21 = vld [vmem:[#allocation81_spill] sm:$0xff]  ;;  %v6564_v4 = vld [vmem:[#allocation39_spill] sm:$0xff]  ;;  %v6565_v28 = vld [vmem:[#allocation48_spill] sm:$0xff] }
 0x353   : > { %3004 = vmatpush.msra.mxu2 %v2739_v46  ;;  %v2482_v46 = vadd.f32 %v6552_v50, %v2149_v43  ;;  %v2676_v61 = vadd.f32 %v5852_v48, %v2484_v32  ;;  %v2728_v7 = vmax.f32 %v2680_v6, 0.0  ;;  %v2481_v33 = vadd.f32 %v6562_v12, %v2148_v56  ;;  %v6566_v32 = vld [vmem:[#allocation82_spill] sm:$0xff]  ;;  %v6567_v58 = vld [vmem:[#allocation12_spill] sm:$0xff]  ;;  %v6569_v47 = vld [vmem:[#allocation79_spill] sm:$0xff] }
 0x354   : > { %2899 = vmatpush.msrb.mxu0 %v2736_v34  ;;  %v5928_v34 = vpop.f32.mrf.mxu0  ;;  %v2677_v49 = vadd.f32 %v5852_v48, %v2485_v10  ;;  %v2729_v27 = vmax.f32 %v2681_v57, 0.0  ;;  %v2726_v41 = vmax.f32 %v2678_v44, 0.0  ;;  %v2144_v6 = vadd.f32 %v6567_v58, %v6566_v32  ;;  %v6570_v10 = vld [vmem:[#allocation38_spill] sm:$0xff]  ;;  %v6572_v30 = vld [vmem:[#allocation80_spill] sm:$0xff]  ;;  %v6573_v44 = vld [vmem:[#allocation53_spill] sm:$0xff]  ;;  %v2129_v12 = vpop.f32.mrf.mxu1 }
 0x355   : > { %3005 = vmatpush.msra.mxu2 %v2737_v59  ;;  %v5906_v37 = vpop.f32.mrf.mxu2  ;;  %v2145_v59 = vadd.f32 %v6558_v26, %v6557_v20  ;;  %v2674_v43 = vadd.f32 %v5859_v14, %v2482_v46  ;;  %v2675_v53 = vadd.f32 %v5859_v14, %v2483_v19  ;;  %v2727_v13 = vmax.f32 %v2679_v63, 0.0  ;;  %v2559_v46 = vpop.permute.xlu2 %2558  ;;  %v6574_v14 = vld [vmem:[#allocation27_spill] sm:$0xff]  ;;  %v6575_v54 = vld [vmem:[#allocation24_spill] sm:$0xff] }
 0x356   : > { %v5912_v3 = vpop.f32.mrf.mxu3  ;;  %2900 = vmatpush.msrb.mxu0 %v2734_v36  ;;  %v2146_v36 = vadd.f32 %v6561_v42, %v6560_v25  ;;  %v2141_v57 = vadd.f32 %v6570_v10, %v6569_v47  ;;  %v2672_v0 = vadd.f32 %v5868_v16, %v2480_v23  ;;  %v2724_v50 = vmax.f32 %v2676_v61, 0.0  ;;  %v2554_v20 = vpop.permute.xlu1 %2553  ;;  %v6576_v26 = vld [vmem:[#allocation71_spill] sm:$0xff] }
 0x357   : > { %3006 = vmatpush.msra.mxu2 %v2735_v51  ;;  %v2143_v51 = vadd.f32 %v6564_v4, %v6563_v21  ;;  %v2478_v15 = vadd.f32 %v6565_v28, %v2145_v59  ;;  %v2477_v29 = vadd.f32 %v6574_v14, %v2144_v6  ;;  %v2673_v17 = vadd.f32 %v5868_v16, %v2481_v33  ;;  %v2549_v25 = vpop.permute.xlu0 %2548  ;;  %v6578_v14 = vld [vmem:[#allocation20_spill] sm:$0xff] }
 0x358   : > { %2901 = vmatpush.msrb.mxu0 %v2732_v60  ;;  %v6568_v60 = vld [vmem:[#allocation76_spill] sm:$0xff]  ;;  %v2725_v56 = vmax.f32 %v2677_v49, 0.0  ;;  %v2474_v19 = vadd.f32 %v6575_v54, %v2141_v57  ;;  %v2723_v23 = vmax.f32 %v2675_v53, 0.0 }
 0x359   : > { %3007 = vmatpush.msra.mxu2 %v2733_v55  ;;  %v2479_v24 = vadd.f32 %v6568_v60, %v2146_v36  ;;  %v6571_v55 = vld [vmem:[#allocation72_spill] sm:$0xff]  ;;  %v2670_v63 = vadd.f32 %v2559_v46, %v2478_v15  ;;  %v2669_v36 = vadd.f32 %v2554_v20, %v2477_v29  ;;  %v2721_v16 = vmax.f32 %v2673_v17, 0.0  ;;  %v6579_v17 = vld [vmem:[#allocation42_spill] sm:$0xff] }
 0x35a   : > { %2902 = vmatpush.msrb.mxu0 %v2730_v9  ;;  %v2476_v38 = vadd.f32 %v6571_v55, %v2143_v51  ;;  %v2142_v9 = vadd.f32 %v6573_v44, %v6572_v30  ;;  %v2666_v33 = vadd.f32 %v2549_v25, %v2474_v19  ;;  %v2764_v53 = vld [vmem:[%s6296_s7 + $0x10] sm:$0xff]  ;;  %v2766_v55 = vld [vmem:[%s6296_s7 + $0x20] sm:$0xff] }
 0x35b   : > { %3008 = vmatpush.msra.mxu2 %v2731_v52  ;;  %v2722_v52 = vmax.f32 %v2674_v43, 0.0  ;;  %v2671_v2 = vadd.f32 %v2559_v46, %v2479_v24  ;;  %v2718_v49 = vmax.f32 %v2670_v63, 0.0  ;;  %v2717_v15 = vmax.f32 %v2669_v36, 0.0  ;;  %v6577_v30 = vld [vmem:[#allocation43_spill] sm:$0xff]  ;;  %v6580_v54 = vld [vmem:[#allocation68_spill] sm:$0xff] }
 0x35c   : > { %2903 = vmatpush.msrb.mxu0 %v2728_v7  ;;  %v2475_v59 = vadd.f32 %v6576_v26, %v2142_v9  ;;  %v2668_v61 = vadd.f32 %v2554_v20, %v2476_v38  ;;  %v2720_v7 = vmax.f32 %v2672_v0, 0.0  ;;  %v2040_v42 = vpop.f32.mrf.mxu0  ;;  %v2714_v43 = vmax.f32 %v2666_v33, 0.0  ;;  %v2132_v60 = vpop.f32.mrf.mxu1  ;;  %v6582_v26 = vld [vmem:[#allocation23_spill] sm:$0xff]  ;;  %v6584_v33 = vld [vmem:[#allocation41_spill] sm:$0xff] }
 0x35d   : > { %3009 = vmatpush.msra.mxu2 %v2729_v27  ;;  %v5950_v48 = vpop.f32.mrf.mxu2  ;;  %v2719_v4 = vmax.f32 %v2671_v2, 0.0 }
 0x35e   : > { %v5956_v40 = vpop.f32.mrf.mxu3  ;;  %2904 = vmatpush.msrb.mxu0 %v2726_v41  ;;  %v2667_v27 = vadd.f32 %v2549_v25, %v2475_v59  ;;  %v2716_v28 = vmax.f32 %v2668_v61, 0.0  ;;  %v2762_v41 = vld [vmem:[%s6296_s7] sm:$0xff]  ;;  %v6583_v61 = vld [vmem:[#allocation60_spill] sm:$0xff] }
 0x35f   : > { %3010 = vmatpush.msra.mxu2 %v2727_v13 }
 0x360   : > { %2905 = vmatpush.msrb.mxu0 %v2724_v50  ;;  %v2715_v32 = vmax.f32 %v2667_v27, 0.0  ;;  %v2768_v50 = vld [vmem:[%s6296_s7 + $0x30] sm:$0xff] }
 0x361   : > { %3011 = vmatpush.msra.mxu2 %v2725_v56 }
 0x362   : > { %2906 = vmatpush.msrb.mxu0 %v2722_v52  ;;  %v6581_v52 = vld [vmem:[#allocation63_spill] sm:$0xff] }
 0x363   : > { %3012 = vmatpush.msra.mxu2 %v2723_v23  ;;  %v2184_v20 = vadd.f32 %v2132_v60, %v6581_v52  ;;  %v2770_v60 = vld [vmem:[%s6296_s7 + $0x40] sm:$0xff] }
 0x364   : > { %2907 = vmatpush.msrb.mxu0 %v2720_v7  ;;  %v2043_v58 = vpop.f32.mrf.mxu0  ;;  %v2135_v57 = vpop.f32.mrf.mxu1  ;;  %v2181_v7 = vadd.f32 %v2040_v42, %v6583_v61 }
 0x365   : > { %3013 = vmatpush.msra.mxu2 %v2721_v16  ;;  %v5964_v21 = vpop.f32.mrf.mxu2  ;;  %v2186_v29 = vadd.f32 %v2135_v57, %v6578_v14  ;;  %v2183_v56 = vadd.f32 %v2043_v58, %v6579_v17  ;;  %v2639_v42 = vpop.permute.xlu2 %2638  ;;  %v6588_v57 = vld [vmem:[#allocation54_spill] sm:$0xff] }
 0x366   : > { %v5966_v51 = vpop.f32.mrf.mxu3  ;;  %2908 = vmatpush.msrb.mxu0 %v2718_v49  ;;  %v2182_v49 = vadd.f32 %v2129_v12, %v6584_v33 }
 0x367   : > { %3014 = vmatpush.msra.mxu2 %v2719_v4 }
 0x368   : > { %2909 = vmatpush.msrb.mxu0 %v2716_v28  ;;  %v6585_v28 = vld [vmem:[#allocation40_spill] sm:$0xff] }
 0x369   : > { %3015 = vmatpush.msra.mxu2 %v2717_v15  ;;  %v2179_v15 = vadd.f32 %v5928_v34, %v6585_v28  ;;  %v2177_v34 = vadd.f32 %v5870_v8, %v6588_v57  ;;  %v2780_v28 = vld [vmem:[%s6296_s7 + $0x90] sm:$0xff] }
 0x36a   : > { %2910 = vmatpush.msrb.mxu0 %v2714_v43 }
 0x36b   : > { %3016 = vmatpush.msra.mxu2 %v2715_v32  ;;  %2911 = vmatmul.f32.vlgmr.msrb.gmra.mxu0 %v2762_v41  ;;  %v6586_v32 = vld [vmem:[#allocation61_spill] sm:$0xff] }
 0x36c   : > { %3017 = vmatmul.f32.vlgmr.msra.gmra.mxu2 %v2762_v41  ;;  %v2046_v10 = vpop.f32.mrf.mxu0  ;;  %v2138_v9 = vpop.f32.mrf.mxu1 }
 0x36d   : > { %v2373_v6 = vpop.f32.mrf.mxu2  ;;  %v2185_v44 = vadd.f32 %v2046_v10, %v6577_v30  ;;  %v2188_v59 = vadd.f32 %v2138_v9, %v6582_v26  ;;  %v6591_v9 = vld [vmem:[#allocation8_spill] sm:$0xff]  ;;  %v2629_v26 = vpop.permute.xlu2 %2628 }
 0x36e   : > { %v2462_v24 = vpop.f32.mrf.mxu3  ;;  %v2514_v43 = vadd.f32 %v2373_v6, %v2181_v7  ;;  %v2512_v6 = vadd.f32 %v5964_v21, %v2179_v15  ;;  %v2176_v14 = vadd.f32 %v5842_v5, %v6591_v9  ;;  %v2769_v15 = vld [vmem:[%s6296_s7 + $0x38] sm:$0xff] }
 0x36f   : > { %v2515_v10 = vadd.f32 %v2462_v24, %v2182_v49  ;;  %v2765_v49 = vld [vmem:[%s6296_s7 + $0x18] sm:$0xff] }
 0x370   : > { %v2706_v8 = vadd.f32 %v5914_v1, %v2514_v43  ;;  %v2782_v43 = vld [vmem:[%s6296_s7 + $0xa0] sm:$0xff] }
 0x372   : > { %v2754_v5 = vmax.f32 %v2706_v8, 0.0 }
 0x373   : > { %2914 = vmatmul.f32.gmra.mxu0 %v2764_v53 }
 0x374   : > { %3020 = vmatmul.f32.gmra.mxu2 %v2764_v53  ;;  %v2049_v46 = vpop.f32.mrf.mxu0  ;;  %v6587_v53 = vld [vmem:[#allocation58_spill] sm:$0xff] }
 0x375   : > { %v2376_v13 = vpop.f32.mrf.mxu2  ;;  %v2187_v19 = vadd.f32 %v2049_v46, %v6580_v54 }
 0x376   : > { %v2465_v47 = vpop.f32.mrf.mxu3  ;;  %v2516_v25 = vadd.f32 %v2376_v13, %v2183_v56  ;;  %v2180_v13 = vadd.f32 %v5934_v22, %v6587_v53  ;;  %v2779_v53 = vld [vmem:[%s6296_s7 + $0x88] sm:$0xff] }
 0x377   : > { %v2517_v27 = vadd.f32 %v2465_v47, %v2184_v20 }
 0x378   : > { %v2513_v46 = vadd.f32 %v5966_v51, %v2180_v13  ;;  %v2707_v51 = vadd.f32 %v5914_v1, %v2515_v10  ;;  %v2772_v1 = vld [vmem:[%s6296_s7 + $0x50] sm:$0xff]  ;;  %v2781_v13 = vld [vmem:[%s6296_s7 + $0x98] sm:$0xff]  ;;  %v2783_v10 = vld [vmem:[%s6296_s7 + $0xa8] sm:$0xff] }
 0x379   : > { %v2709_v22 = vadd.f32 %v5900_v31, %v2517_v27  ;;  %v2778_v27 = vld [vmem:[%s6296_s7 + $0x80] sm:$0xff] }
 0x37a   : > { %v2705_v56 = vadd.f32 %v5924_v35, %v2513_v46 }
 0x37b   : > { %2917 = vmatmul.f32.gmra.mxu0 %v2766_v55  ;;  %v2757_v54 = vmax.f32 %v2709_v22, 0.0 }
 0x37c   : > { %3023 = vmatmul.f32.gmra.mxu2 %v2766_v55  ;;  %v2708_v55 = vadd.f32 %v5900_v31, %v2516_v25 }
 0x37d   : > { %v2379_v38 = vpop.f32.mrf.mxu2 }
 0x37e   : > { %v2468_v0 = vpop.f32.mrf.mxu3  ;;  %v2518_v63 = vadd.f32 %v2379_v38, %v2185_v44  ;;  %v2510_v44 = vadd.f32 %v5950_v48, %v2177_v34  ;;  %v2756_v17 = vmax.f32 %v2708_v55, 0.0  ;;  %v2509_v48 = vadd.f32 %v5912_v3, %v2176_v14 }
 0x37f   : > { %v2519_v2 = vadd.f32 %v2468_v0, %v2186_v29  ;;  %v6589_v0 = vld [vmem:[#allocation11_spill] sm:$0xff] }
 0x380   : > { %v2710_v41 = vadd.f32 %v5823_v45, %v2518_v63 }
 0x381   : > { %v2711_v12 = vadd.f32 %v5823_v45, %v2519_v2  ;;  %v6590_v45 = vld [vmem:[#allocation37_spill] sm:$0xff] }
 0x382   : > { %v2175_v30 = vadd.f32 %v5837_v11, %v6590_v45  ;;  %v2758_v21 = vmax.f32 %v2710_v41, 0.0  ;;  %v2704_v11 = vadd.f32 %v5924_v35, %v2512_v6  ;;  %v2698_v35 = vadd.f32 %v2629_v26, %v5866_v62  ;;  %v2763_v62 = vld [vmem:[%s6296_s7 + $0x8] sm:$0xff] }
 0x383   : > { %2920 = vmatmul.f32.gmra.mxu0 %v2768_v50  ;;  %v2759_v31 = vmax.f32 %v2711_v12, 0.0  ;;  %v2771_v41 = vld [vmem:[%s6296_s7 + $0x48] sm:$0xff]  ;;  %v2785_v12 = vld [vmem:[%s6296_s7 + $0xb8] sm:$0xff] }
 0x384   : > { %3026 = vmatmul.f32.gmra.mxu2 %v2768_v50  ;;  %v2178_v50 = vadd.f32 %v5878_v39, %v6589_v0  ;;  %v2508_v29 = vadd.f32 %v5906_v37, %v2175_v30  ;;  %v2755_v37 = vmax.f32 %v2707_v51, 0.0  ;;  %v2752_v20 = vmax.f32 %v2704_v11, 0.0 }
 0x385   : > { %v2382_v23 = vpop.f32.mrf.mxu2 }
 0x386   : > { %v2520_v36 = vadd.f32 %v2382_v23, %v2187_v19  ;;  %v2471_v16 = vpop.f32.mrf.mxu3  ;;  %v2511_v39 = vadd.f32 %v5956_v40, %v2178_v50  ;;  %v2702_v19 = vadd.f32 %v2639_v42, %v2510_v44  ;;  %v2634_v40 = vpop.permute.xlu1 %2633  ;;  %v2699_v23 = vadd.f32 %v2629_v26, %v5874_v18  ;;  %v2776_v18 = vld [vmem:[%s6296_s7 + $0x70] sm:$0xff] }
 0x387   : > { %v2521_v4 = vadd.f32 %v2471_v16, %v2188_v59  ;;  %v2700_v52 = vadd.f32 %v2634_v40, %v2508_v29  ;;  %v2701_v3 = vadd.f32 %v2634_v40, %v2509_v48  ;;  %v2753_v59 = vmax.f32 %v2705_v56, 0.0  ;;  %v2774_v16 = vld [vmem:[%s6296_s7 + $0x60] sm:$0xff] }
 0x388   : > { %v2712_v58 = vadd.f32 %v6586_v32, %v2520_v36  ;;  %v2703_v63 = vadd.f32 %v2639_v42, %v2511_v39  ;;  %v2750_v2 = vmax.f32 %v2702_v19, 0.0  ;;  %v2746_v36 = vmax.f32 %v2698_v35, 0.0  ;;  %v2777_v42 = vld [vmem:[%s6296_s7 + $0x78] sm:$0xff] }
 0x389   : > { %v2713_v47 = vadd.f32 %v6586_v32, %v2521_v4  ;;  %v2748_v7 = vmax.f32 %v2700_v52, 0.0  ;;  %v2749_v25 = vmax.f32 %v2701_v3, 0.0  ;;  %v2747_v33 = vmax.f32 %v2699_v23, 0.0  ;;  %v2767_v4 = vld [vmem:[%s6296_s7 + $0x28] sm:$0xff]  ;;  %v2784_v32 = vld [vmem:[%s6296_s7 + $0xb0] sm:$0xff] }
 0x38a   : > { %v2760_v38 = vmax.f32 %v2712_v58, 0.0  ;;  %v2751_v61 = vmax.f32 %v2703_v63, 0.0  ;;  %v2773_v58 = vld [vmem:[%s6296_s7 + $0x58] sm:$0xff] }
 0x38b   : > { %v2761_v24 = vmax.f32 %v2713_v47, 0.0  ;;  %2923 = vmatmul.f32.gmra.mxu0 %v2770_v60  ;;  %v6102_v47 = vpop.permute.xlu2 %2845 }
 0x38c   : > { %3029 = vmatmul.f32.gmra.mxu2 %v2770_v60  ;;  %2956 = vmatpush.msrb.mxu1 %v2760_v38  ;;  %v2775_v60 = vld [vmem:[%s6296_s7 + $0x68] sm:$0xff]  ;;  %v6108_v38 = vpop.permute.xlu0 %2855 }
 0x38d   : > { %3062 = vmatpush.msra.mxu3 %v2761_v24 }
 0x38e   : > { %2957 = vmatpush.msrb.mxu1 %v2758_v21  ;;  %v6104_v34 = vpop.permute.xlu1 %2850 }
 0x38f   : > { %3063 = vmatpush.msra.mxu3 %v2759_v31 }
 0x390   : > { %2958 = vmatpush.msrb.mxu1 %v2756_v17 }
 0x391   : > { %3064 = vmatpush.msra.mxu3 %v2757_v54 }
 0x392   : > { %2959 = vmatpush.msrb.mxu1 %v2754_v5 }
 0x393   : > { %3065 = vmatpush.msra.mxu3 %v2755_v37  ;;  %2926 = vmatmul.f32.gmra.mxu0 %v2772_v1  ;;  %v6106_v6 = vpop.permute.xlu2 %2830 }
 0x394   : > { %3032 = vmatmul.f32.gmra.mxu2 %v2772_v1  ;;  %2960 = vmatpush.msrb.mxu1 %v2752_v20  ;;  %v6112_v24 = vpop.permute.xlu0 %2840 }
 0x395   : > { %3066 = vmatpush.msra.mxu3 %v2753_v59 }
 0x396   : > { %2961 = vmatpush.msrb.mxu1 %v2750_v2  ;;  %v6110_v50 = vpop.permute.xlu1 %2835 }
 0x397   : > { %3067 = vmatpush.msra.mxu3 %v2751_v61 }
 0x398   : > { %2962 = vmatpush.msrb.mxu1 %v2748_v7 }
 0x399   : > { %3068 = vmatpush.msra.mxu3 %v2749_v25 }
 0x39a   : > { %2963 = vmatpush.msrb.mxu1 %v2746_v36 }
 0x39b   : > { %3069 = vmatpush.msra.mxu3 %v2747_v33  ;;  %2929 = vmatmul.f32.gmra.mxu0 %v2774_v16  ;;  %v2816_v46 = vpop.permute.xlu2 %2815 }
 0x39c   : > { %3940 = vmatmul.msk.f32.vlgmr.msrb.gmra.mxu1 %vm2858_vm4, %v2763_v62  ;;  %3035 = vmatmul.f32.gmra.mxu2 %v2774_v16  ;;  %v6116_v39 = vpop.permute.xlu0 %2825 }
 0x39d   : > { %3952 = vmatmul.msk.f32.vlgmr.msra.gmra.mxu3 %vm2858_vm4, %v2763_v62 }
 0x39e   : > { %v2821_v30 = vpop.permute.xlu1 %2820 }
 0x3a3   : > { %2932 = vmatmul.f32.gmra.mxu0 %v2776_v18  ;;  %v2801_v44 = vpop.permute.xlu2 %2800 }
 0x3a4   : > { %3941 = vmatmul.msk.f32.gmra.mxu1 %vm2858_vm4, %v2765_v49  ;;  %3038 = vmatmul.f32.gmra.mxu2 %v2776_v18  ;;  %v2811_v5 = vpop.permute.xlu0 %2810 }
 0x3a5   : > { %3953 = vmatmul.msk.f32.gmra.mxu3 %vm2858_vm4, %v2765_v49 }
 0x3a6   : > { %v2806_v31 = vpop.permute.xlu1 %2805 }
 0x3ab   : > { %2935 = vmatmul.f32.gmra.mxu0 %v2778_v27 }
 0x3ac   : > { %3942 = vmatmul.msk.f32.gmra.mxu1 %vm2858_vm4, %v2767_v4  ;;  %3041 = vmatmul.f32.gmra.mxu2 %v2778_v27 }
 0x3ad   : > { %3954 = vmatmul.msk.f32.gmra.mxu3 %vm2858_vm4, %v2767_v4 }
 0x3b3   : > { %2938 = vmatmul.f32.gmra.mxu0 %v2780_v28 }
 0x3b4   : > { %3943 = vmatmul.msk.f32.gmra.mxu1 %vm2858_vm4, %v2769_v15  ;;  %3044 = vmatmul.f32.gmra.mxu2 %v2780_v28 }
 0x3b5   : > { %3955 = vmatmul.msk.f32.gmra.mxu3 %vm2858_vm4, %v2769_v15 }
 0x3bb   : > { %2941 = vmatmul.f32.gmra.mxu0 %v2782_v43 }
 0x3bc   : > { %3944 = vmatmul.msk.f32.gmra.mxu1 %vm2858_vm4, %v2771_v41  ;;  %3047 = vmatmul.f32.gmra.mxu2 %v2782_v43 }
 0x3bd   : > { %3956 = vmatmul.msk.f32.gmra.mxu3 %vm2858_vm4, %v2771_v41 }
 0x3c3   : > { %2944 = vmatmul.f32.gmra.mxu0 %v2784_v32 }
 0x3c4   : > { %3945 = vmatmul.msk.f32.gmra.mxu1 %vm2858_vm4, %v2773_v58  ;;  %3050 = vmatmul.f32.gmra.mxu2 %v2784_v32 }
 0x3c5   : > { %3957 = vmatmul.msk.f32.gmra.mxu3 %vm2858_vm4, %v2773_v58 }
 0x3cc   : > { %3946 = vmatmul.msk.f32.gmra.mxu1 %vm2858_vm4, %v2775_v60 }
 0x3cd   : > { %3958 = vmatmul.msk.f32.gmra.mxu3 %vm2858_vm4, %v2775_v60 }
 0x3d4   : > { %3947 = vmatmul.msk.f32.gmra.mxu1 %vm2858_vm4, %v2777_v42 }
 0x3d5   : > { %3959 = vmatmul.msk.f32.gmra.mxu3 %vm2858_vm4, %v2777_v42 }
 0x3dc   : > { %3948 = vmatmul.msk.f32.gmra.mxu1 %vm2858_vm4, %v2779_v53 }
 0x3dd   : > { %3960 = vmatmul.msk.f32.gmra.mxu3 %vm2858_vm4, %v2779_v53 }
 0x3e4   : > { %3949 = vmatmul.msk.f32.gmra.mxu1 %vm2858_vm4, %v2781_v13 }
 0x3e5   : > { %3961 = vmatmul.msk.f32.gmra.mxu3 %vm2858_vm4, %v2781_v13 }
 0x3e8   : > { %v2912_v57 = vpop.f32.mrf.mxu0 }
 0x3e9   : > { %v2913_v8 = vadd.f32 %v2912_v57, %v2801_v44 }
 0x3ec   : > { %3950 = vmatmul.msk.f32.gmra.mxu1 %vm2858_vm4, %v2783_v10 }
 0x3ed   : > { %3962 = vmatmul.msk.f32.gmra.mxu3 %vm2858_vm4, %v2783_v10 }
 0x3ef   : > { %v3018_v55 = vpop.f32.mrf.mxu2 }
 0x3f0   : > { %v2915_v0 = vpop.f32.mrf.mxu0  ;;  %v3019_v29 = vadd.f32 %v3018_v55, %v2801_v44 }
 0x3f1   : > { %v2916_v11 = vadd.f32 %v2915_v0, %v2806_v31 }
 0x3f4   : > { %3951 = vmatmul.msk.f32.gmra.mxu1 %vm2858_vm4, %v2785_v12 }
 0x3f5   : > { %3963 = vmatmul.msk.f32.gmra.mxu3 %vm2858_vm4, %v2785_v12 }
 0x3f7   : > { %v3021_v22 = vpop.f32.mrf.mxu2 }
 0x3f8   : > { %v2918_v45 = vpop.f32.mrf.mxu0  ;;  %v3022_v1 = vadd.f32 %v3021_v22, %v2806_v31 }
 0x3f9   : > { %v2919_v63 = vadd.f32 %v2918_v45, %v2811_v5 }
 0x3ff   : > { %v3024_v9 = vpop.f32.mrf.mxu2 }
 0x400   : > { %v2921_v51 = vpop.f32.mrf.mxu0  ;;  %v3025_v59 = vadd.f32 %v3024_v9, %v2811_v5 }
 0x401   : > { %v2922_v35 = vadd.f32 %v2921_v51, %v2816_v46 }
 0x407   : > { %v3027_v19 = vpop.f32.mrf.mxu2 }
 0x408   : > { %v2924_v40 = vpop.f32.mrf.mxu0  ;;  %v3028_v36 = vadd.f32 %v3027_v19, %v2816_v46 }
 0x409   : > { %v2925_v16 = vadd.f32 %v2924_v40, %v2821_v30 }
 0x40f   : > { %v3030_v3 = vpop.f32.mrf.mxu2 }
 0x410   : > { %v2927_v23 = vpop.f32.mrf.mxu0  ;;  %v3031_v28 = vadd.f32 %v3030_v3, %v2821_v30 }
 0x417   : > { %v6130_v33 = vpop.f32.mrf.mxu2 }
 0x418   : > { %v2930_v4 = vpop.f32.mrf.mxu0 }
 0x419   : > { %v2965_v21 = vpop.f32.mrf.mxu1 }
 0x41a   : > { %v6114_v14 = vadd.f32 %v2965_v21, %v2913_v8 }
 0x41f   : > { %v3036_v32 = vpop.f32.mrf.mxu2 }
 0x420   : > { %v3071_v17 = vpop.f32.mrf.mxu3  ;;  %v2933_v58 = vpop.f32.mrf.mxu0 }
 0x421   : > { %v6118_v48 = vadd.f32 %v3071_v17, %v3019_v29  ;;  %v2968_v56 = vpop.f32.mrf.mxu1 }
 0x422   : > { %v6120_v54 = vadd.f32 %v2968_v56, %v2916_v11 }
 0x427   : > { %v3039_v53 = vpop.f32.mrf.mxu2 }
 0x428   : > { %v3074_v37 = vpop.f32.mrf.mxu3  ;;  %v2936_v13 = vpop.f32.mrf.mxu0 }
 0x429   : > { %v6122_v52 = vadd.f32 %v3074_v37, %v3022_v1  ;;  %v2971_v20 = vpop.f32.mrf.mxu1  ;;  %v2937_v1 = vadd.f32 %v2936_v13, %v6112_v24  ;;  %v2928_v13 = vadd.f32 %v2927_v23, %v6116_v39 }
 0x42a   : > { %v6124_v26 = vadd.f32 %v2971_v20, %v2919_v63  ;;  %v2934_v20 = vadd.f32 %v2933_v58, %v6110_v50 }
 0x42f   : > { %v3042_v57 = vpop.f32.mrf.mxu2 }
 0x430   : > { %v3077_v2 = vpop.f32.mrf.mxu3  ;;  %v2939_v0 = vpop.f32.mrf.mxu0 }
 0x431   : > { %v6126_v61 = vadd.f32 %v3077_v2, %v3025_v59  ;;  %v2974_v7 = vpop.f32.mrf.mxu1  ;;  %v2940_v56 = vadd.f32 %v2939_v0, %v6102_v47 }
 0x432   : > { %v6128_v25 = vadd.f32 %v2974_v7, %v2922_v35  ;;  %v2931_v7 = vadd.f32 %v2930_v4, %v6106_v6  ;;  %v3040_v4 = vadd.f32 %v3039_v53, %v6110_v50 }
 0x437   : > { %v3045_v22 = vpop.f32.mrf.mxu2 }
 0x438   : > { %v3080_v62 = vpop.f32.mrf.mxu3  ;;  %v2942_v44 = vpop.f32.mrf.mxu0 }
 0x439   : > { %v6132_v18 = vadd.f32 %v3080_v62, %v3028_v36  ;;  %v2977_v49 = vpop.f32.mrf.mxu1  ;;  %v2943_v31 = vadd.f32 %v2942_v44, %v6104_v34 }
 0x43a   : > { %v6134_v27 = vadd.f32 %v2977_v49, %v2925_v16  ;;  %v3046_v49 = vadd.f32 %v3045_v22, %v6102_v47  ;;  %v3037_v22 = vadd.f32 %v3036_v32, %v6106_v6  ;;  %v3113_v6 = vmax.f32 %v6128_v25, 0.0  ;;  %v3131_v25 = vld [vmem:[%s6298_s9] sm:$0xff] }
 0x43c   : > { %v3115_v50 = vmax.f32 %v6134_v27, 0.0  ;;  %v3107_v27 = vmax.f32 %v6114_v14, 0.0  ;;  %v3108_v14 = vmax.f32 %v6118_v48, 0.0  ;;  %v3134_v48 = vld [vmem:[%s6298_s9 + $0x18] sm:$0xff] }
 0x43f   : > { %v3048_v9 = vpop.f32.mrf.mxu2 }
 0x440   : > { %v3083_v15 = vpop.f32.mrf.mxu3  ;;  %v2945_v51 = vpop.f32.mrf.mxu0  ;;  %v3049_v35 = vadd.f32 %v3048_v9, %v6104_v34 }
 0x441   : > { %v6136_v43 = vadd.f32 %v3083_v15, %v3031_v28  ;;  %v2980_v41 = vpop.f32.mrf.mxu1  ;;  %v2946_v29 = vadd.f32 %v2945_v51, %v6108_v38  ;;  %v3138_v51 = vld [vmem:[%s6298_s9 + $0x38] sm:$0xff] }
 0x447   : > { %v3051_v40 = vpop.f32.mrf.mxu2 }
 0x448   : > { %v6138_v60 = vpop.f32.mrf.mxu3  ;;  %v3052_v2 = vadd.f32 %v3051_v40, %v6108_v38  ;;  %v2981_v38 = vadd.f32 %v2980_v41, %v2928_v13  ;;  %v3213_v13 = vpop.permute.xlu0 %3212 }
 0x449   : > { %v2983_v42 = vpop.f32.mrf.mxu1 }
 0x44a   : > { %v2984_v58 = vadd.f32 %v2983_v42, %v2931_v7  ;;  %v3117_v9 = vmax.f32 %v2981_v38, 0.0 }
 0x44c   : > { %v3119_v47 = vmax.f32 %v2984_v58, 0.0  ;;  %v3208_v58 = vpop.permute.xlu1 %3207 }
 0x450   : > { %v3089_v10 = vpop.f32.mrf.mxu3 }
 0x451   : > { %v2986_v12 = vpop.f32.mrf.mxu1  ;;  %v3090_v41 = vadd.f32 %v3089_v10, %v3037_v22  ;;  %v3137_v10 = vld [vmem:[%s6298_s9 + $0x30] sm:$0xff] }
 0x452   : > { %v2987_v36 = vadd.f32 %v2986_v12, %v2934_v20 }
 0x453   : > { %v3120_v32 = vmax.f32 %v3090_v41, 0.0 }
 0x454   : > { %v3121_v44 = vmax.f32 %v2987_v36, 0.0  ;;  %v3193_v38 = vpop.permute.xlu1 %3192 }
 0x458   : > { %v3092_v55 = vpop.f32.mrf.mxu3 }
 0x459   : > { %v2989_v46 = vpop.f32.mrf.mxu1  ;;  %v3093_v23 = vadd.f32 %v3092_v55, %v3040_v4  ;;  %v3111_v55 = vmax.f32 %v6124_v26, 0.0  ;;  %v3112_v26 = vmax.f32 %v6126_v61, 0.0  ;;  %v3133_v61 = vld [vmem:[%s6298_s9 + $0x10] sm:$0xff] }
 0x45a   : > { %v2990_v3 = vadd.f32 %v2989_v46, %v2937_v1  ;;  %v3043_v46 = vadd.f32 %v3042_v57, %v6112_v24  ;;  %v3034_v24 = vadd.f32 %v6130_v33, %v6116_v39  ;;  %v3109_v39 = vmax.f32 %v6120_v54, 0.0 }
 0x45b   : > { %v3116_v33 = vmax.f32 %v6136_v43, 0.0  ;;  %v3110_v54 = vmax.f32 %v6122_v52, 0.0  ;;  %v3132_v43 = vld [vmem:[%s6298_s9 + $0x8] sm:$0xff]  ;;  %v3135_v52 = vld [vmem:[%s6298_s9 + $0x20] sm:$0xff] }
 0x45c   : > { %v3123_v0 = vmax.f32 %v2990_v3, 0.0  ;;  %v3087_v53 = vadd.f32 %v6138_v60, %v3034_v24  ;;  %v3114_v60 = vmax.f32 %v6132_v18, 0.0  ;;  %v3136_v18 = vld [vmem:[%s6298_s9 + $0x28] sm:$0xff] }
 0x460   : > { %v3095_v45 = vpop.f32.mrf.mxu3 }
 0x461   : > { %v2992_v30 = vpop.f32.mrf.mxu1  ;;  %v3096_v12 = vadd.f32 %v3095_v45, %v3043_v46  ;;  %v3122_v45 = vmax.f32 %v3093_v23, 0.0 }
 0x462   : > { %v2993_v63 = vadd.f32 %v2992_v30, %v2940_v56 }
 0x463   : > { %v3124_v57 = vmax.f32 %v3096_v12, 0.0 }
 0x464   : > { %v3125_v16 = vmax.f32 %v2993_v63, 0.0 }
 0x468   : > { %v3098_v8 = vpop.f32.mrf.mxu3 }
 0x469   : > { %v2995_v21 = vpop.f32.mrf.mxu1  ;;  %v3099_v34 = vadd.f32 %v3098_v8, %v3046_v49  ;;  %v3118_v8 = vmax.f32 %v3087_v53, 0.0  ;;  %v3178_v53 = vpop.permute.xlu1 %3177 }
 0x46a   : > { %v2996_v19 = vadd.f32 %v2995_v21, %v2943_v31  ;;  %v3139_v31 = vld [vmem:[%s6298_s9 + $0x40] sm:$0xff] }
 0x46b   : > { %v3126_v42 = vmax.f32 %v3099_v34, 0.0 }
 0x46c   : > { %v3127_v59 = vmax.f32 %v2996_v19, 0.0 }
 0x470   : > { %v3101_v11 = vpop.f32.mrf.mxu3 }
 0x471   : > { %v2998_v17 = vpop.f32.mrf.mxu1  ;;  %v3102_v28 = vadd.f32 %v3101_v11, %v3049_v35  ;;  %v3141_v11 = vld [vmem:[%s6298_s9 + $0x50] sm:$0xff] }
 0x472   : > { %v2999_v5 = vadd.f32 %v2998_v17, %v2946_v29  ;;  %v3140_v29 = vld [vmem:[%s6298_s9 + $0x48] sm:$0xff]  ;;  %v3142_v17 = vld [vmem:[%s6298_s9 + $0x58] sm:$0xff] }
 0x473   : > { %v3128_v21 = vmax.f32 %v3102_v28, 0.0 }
 0x474   : > { %v3129_v37 = vmax.f32 %v2999_v5, 0.0 }
 0x476   : > { %3256 = vmatpush.msra.mxu0 %v3129_v37 }
 0x478   : > { %v3104_v62 = vpop.f32.mrf.mxu3  ;;  %3257 = vmatpush.msra.mxu0 %v3127_v59 }
 0x479   : > { %v3105_v15 = vadd.f32 %v3104_v62, %v3052_v2 }
 0x47a   : > { %3258 = vmatpush.msra.mxu0 %v3125_v16 }
 0x47b   : > { %v3130_v30 = vmax.f32 %v3105_v15, 0.0 }
 0x47c   : > { %3259 = vmatpush.msra.mxu0 %v3123_v0  ;;  %v3203_v0 = vpop.permute.xlu2 %3202 }
 0x47d   : > { %3309 = vmatpush.msra.mxu1 %v3130_v30  ;;  %v3198_v30 = vpop.permute.xlu0 %3197 }
 0x47e   : > { %3260 = vmatpush.msra.mxu0 %v3121_v44 }
 0x47f   : > { %3310 = vmatpush.msra.mxu1 %v3128_v21 }
 0x480   : > { %3261 = vmatpush.msra.mxu0 %v3119_v47 }
 0x481   : > { %3311 = vmatpush.msra.mxu1 %v3126_v42 }
 0x482   : > { %3262 = vmatpush.msra.mxu0 %v3117_v9 }
 0x483   : > { %3312 = vmatpush.msra.mxu1 %v3124_v57 }
 0x484   : > { %3263 = vmatpush.msra.mxu0 %v3115_v50  ;;  %v3188_v4 = vpop.permute.xlu2 %3187 }
 0x485   : > { %3313 = vmatpush.msra.mxu1 %v3122_v45  ;;  %v3183_v24 = vpop.permute.xlu0 %3182 }
 0x486   : > { %3264 = vmatpush.msra.mxu0 %v3113_v6 }
 0x487   : > { %3314 = vmatpush.msra.mxu1 %v3120_v32 }
 0x488   : > { %3265 = vmatpush.msra.mxu0 %v3111_v55 }
 0x489   : > { %3315 = vmatpush.msra.mxu1 %v3118_v8 }
 0x48a   : > { %3266 = vmatpush.msra.mxu0 %v3109_v39 }
 0x48b   : > { %3316 = vmatpush.msra.mxu1 %v3116_v33 }
 0x48c   : > { %3267 = vmatpush.msra.mxu0 %v3107_v27  ;;  %v3173_v8 = vpop.permute.xlu2 %3172 }
 0x48d   : > { %3317 = vmatpush.msra.mxu1 %v3114_v60  ;;  %3964 = vmatmul.msk.f32.vlgmr.msra.gmra.mxu0 %vm3215_vm5, %v3131_v25 }
 0x48f   : > { %3318 = vmatpush.msra.mxu1 %v3112_v26 }
 0x491   : > { %3319 = vmatpush.msra.mxu1 %v3110_v54 }
 0x493   : > { %3320 = vmatpush.msra.mxu1 %v3108_v14 }
 0x494   : > { %3976 = vmatmul.msk.f32.vlgmr.msra.gmra.mxu1 %vm3215_vm5, %v3131_v25 }
 0x495   : > { %3965 = vmatmul.msk.f32.gmra.mxu0 %vm3215_vm5, %v3132_v43 }
 0x49c   : > { %3977 = vmatmul.msk.f32.gmra.mxu1 %vm3215_vm5, %v3132_v43 }
 0x49d   : > { %3966 = vmatmul.msk.f32.gmra.mxu0 %vm3215_vm5, %v3133_v61 }
 0x4a4   : > { %3978 = vmatmul.msk.f32.gmra.mxu1 %vm3215_vm5, %v3133_v61 }
 0x4a5   : > { %3967 = vmatmul.msk.f32.gmra.mxu0 %vm3215_vm5, %v3134_v48 }
 0x4ac   : > { %3979 = vmatmul.msk.f32.gmra.mxu1 %vm3215_vm5, %v3134_v48 }
 0x4ad   : > { %3968 = vmatmul.msk.f32.gmra.mxu0 %vm3215_vm5, %v3135_v52 }
 0x4b4   : > { %3980 = vmatmul.msk.f32.gmra.mxu1 %vm3215_vm5, %v3135_v52 }
 0x4b5   : > { %3969 = vmatmul.msk.f32.gmra.mxu0 %vm3215_vm5, %v3136_v18 }
 0x4bc   : > { %3981 = vmatmul.msk.f32.gmra.mxu1 %vm3215_vm5, %v3136_v18  ;;  %v3168_v18 = vpop.permute.xlu0 %3167 }
 0x4bd   : > { %3970 = vmatmul.msk.f32.gmra.mxu0 %vm3215_vm5, %v3137_v10 }
 0x4c4   : > { %3982 = vmatmul.msk.f32.gmra.mxu1 %vm3215_vm5, %v3137_v10 }
 0x4c5   : > { %3971 = vmatmul.msk.f32.gmra.mxu0 %vm3215_vm5, %v3138_v51 }
 0x4cc   : > { %3983 = vmatmul.msk.f32.gmra.mxu1 %vm3215_vm5, %v3138_v51 }
 0x4cd   : > { %3972 = vmatmul.msk.f32.gmra.mxu0 %vm3215_vm5, %v3139_v31 }
 0x4d4   : > { %3984 = vmatmul.msk.f32.gmra.mxu1 %vm3215_vm5, %v3139_v31 }
 0x4d5   : > { %3973 = vmatmul.msk.f32.gmra.mxu0 %vm3215_vm5, %v3140_v29 }
 0x4dc   : > { %3985 = vmatmul.msk.f32.gmra.mxu1 %vm3215_vm5, %v3140_v29 }
 0x4dd   : > { %3974 = vmatmul.msk.f32.gmra.mxu0 %vm3215_vm5, %v3141_v11 }
 0x4e4   : > { %3986 = vmatmul.msk.f32.gmra.mxu1 %vm3215_vm5, %v3141_v11  ;;  %v3163_v11 = vpop.permute.xlu1 %3162 }
 0x4e5   : > { %3975 = vmatmul.msk.f32.gmra.mxu0 %vm3215_vm5, %v3142_v17 }
 0x4ec   : > { %3987 = vmatmul.msk.f32.gmra.mxu1 %vm3215_vm5, %v3142_v17 }
 0x50a   : > { %v6226_v56 = vpop.f32.mrf.mxu0 }
 0x511   : > { %v6228_v19 = vpop.f32.mrf.mxu1 }
 0x512   : > { %v6230_v5 = vpop.f32.mrf.mxu0 }
 0x519   : > { %v6232_v1 = vpop.f32.mrf.mxu1 }
 0x51a   : > { %v6234_v40 = vpop.f32.mrf.mxu0 }
 0x51b   : > { %v3276_v31 = vadd.f32 %v6234_v40, %v3168_v18 }
 0x521   : > { %v6236_v63 = vpop.f32.mrf.mxu1 }
 0x522   : > { %v3278_v37 = vpop.f32.mrf.mxu0 }
 0x523   : > { %v3279_v48 = vadd.f32 %v3278_v37, %v3173_v8 }
 0x529   : > { %v6238_v20 = vpop.f32.mrf.mxu1 }
 0x52a   : > { %v3281_v3 = vpop.f32.mrf.mxu0  ;;  %v3332_v40 = vadd.f32 %v6238_v20, %v3173_v8 }
 0x52b   : > { %v3282_v54 = vadd.f32 %v3281_v3, %v3178_v53  ;;  %v3273_v3 = vadd.f32 %v6230_v5, %v3163_v11 }
 0x52d   : > { %v3366_v29 = vmax.f32 %v3282_v54, 0.0 }
 0x531   : > { %v6240_v59 = vpop.f32.mrf.mxu1 }
 0x532   : > { %v3284_v35 = vpop.f32.mrf.mxu0  ;;  %v3335_v37 = vadd.f32 %v6240_v59, %v3178_v53  ;;  %v3382_v59 = vld [vmem:[%s6300_s11] sm:$0x1] }
 0x533   : > { %v3285_v27 = vadd.f32 %v3284_v35, %v3183_v24 }
 0x534   : > { %v3367_v5 = vmax.f32 %v3335_v37, 0.0 }
 0x535   : > { %v3368_v52 = vmax.f32 %v3285_v27, 0.0 }
 0x539   : > { %v3337_v2 = vpop.f32.mrf.mxu1 }
 0x53a   : > { %v3287_v7 = vpop.f32.mrf.mxu0  ;;  %v3338_v17 = vadd.f32 %v3337_v2, %v3183_v24  ;;  %v3360_v2 = vmax.f32 %v3273_v3, 0.0 }
 0x53b   : > { %v3288_v32 = vadd.f32 %v3287_v7, %v3188_v4  ;;  %v3364_v7 = vmax.f32 %v3279_v48, 0.0 }
 0x53d   : > { %v3370_v14 = vmax.f32 %v3288_v32, 0.0 }
 0x541   : > { %v3340_v36 = vpop.f32.mrf.mxu1 }
 0x542   : > { %v3290_v16 = vpop.f32.mrf.mxu0  ;;  %v3341_v10 = vadd.f32 %v3340_v36, %v3188_v4 }
 0x543   : > { %v3291_v41 = vadd.f32 %v3290_v16, %v3193_v38  ;;  %v3158_v16 = vpop.permute.xlu2 %3157 }
 0x544   : > { %v3270_v36 = vadd.f32 %v6226_v56, %v3158_v16  ;;  %v3326_v56 = vadd.f32 %v6232_v1, %v3163_v11  ;;  %v3323_v20 = vadd.f32 %v6228_v19, %v3158_v16  ;;  %v3439_v19 = vlaneseq }
 0x545   : > { %v3372_v25 = vmax.f32 %v3291_v41, 0.0 }
 0x546   : > { %vm3441_vm7 = vcmp.lt.s32.totalorder %v3439_v19, 256 }
 0x549   : > { %v3343_v62 = vpop.f32.mrf.mxu1 }
 0x54a   : > { %v3293_v49 = vpop.f32.mrf.mxu0  ;;  %v3344_v43 = vadd.f32 %v3343_v62, %v3193_v38  ;;  %v3371_v62 = vmax.f32 %v3341_v10, 0.0 }
 0x54b   : > { %v3294_v42 = vadd.f32 %v3293_v49, %v3198_v30  ;;  %v3362_v49 = vmax.f32 %v3276_v31, 0.0 }
 0x54c   : > { %v3373_v35 = vmax.f32 %v3344_v43, 0.0 }
 0x54d   : > { %v3374_v55 = vmax.f32 %v3294_v42, 0.0 }
 0x551   : > { %v3346_v28 = vpop.f32.mrf.mxu1 }
 0x552   : > { %v3296_v15 = vpop.f32.mrf.mxu0  ;;  %v3347_v60 = vadd.f32 %v3346_v28, %v3198_v30  ;;  %v3369_v28 = vmax.f32 %v3338_v17, 0.0 }
 0x553   : > { %v3297_v22 = vadd.f32 %v3296_v15, %v3203_v0  ;;  %v3329_v15 = vadd.f32 %v6236_v63, %v3168_v18  ;;  %v3361_v63 = vmax.f32 %v3326_v56, 0.0 }
 0x554   : > { %v3375_v51 = vmax.f32 %v3347_v60, 0.0 }
 0x555   : > { %v3376_v57 = vmax.f32 %v3297_v22, 0.0 }
 0x559   : > { %v3349_v46 = vpop.f32.mrf.mxu1 }
 0x55a   : > { %v3299_v34 = vpop.f32.mrf.mxu0  ;;  %v3350_v39 = vadd.f32 %v3349_v46, %v3203_v0  ;;  %v3363_v0 = vmax.f32 %v3329_v15, 0.0  ;;  %v3359_v46 = vmax.f32 %v3323_v20, 0.0 }
 0x55b   : > { %v3300_v21 = vadd.f32 %v3299_v34, %v3208_v58  ;;  %v3387_v34 = vpop.permute.xlu0 %3386 }
 0x55c   : > { %v3377_v61 = vmax.f32 %v3350_v39, 0.0  ;;  %v3389_v1 = vperm.slane %v3387_v34, 0 }
 0x55d   : > { %v3378_v9 = vmax.f32 %v3300_v21, 0.0 }
 0x561   : > { %v3352_v44 = vpop.f32.mrf.mxu1 }
 0x562   : > { %v3302_v12 = vpop.f32.mrf.mxu0  ;;  %v3353_v45 = vadd.f32 %v3352_v44, %v3208_v58  ;;  %v3365_v58 = vmax.f32 %v3332_v40, 0.0 }
 0x563   : > { %v3303_v47 = vadd.f32 %v3302_v12, %v3213_v13 }
 0x564   : > { %v3379_v26 = vmax.f32 %v3353_v45, 0.0 }
 0x565   : > { %v3380_v23 = vmax.f32 %v3303_v47, 0.0 }
 0x567   : > { %3397 = vmatpush.msrb.mxu2 %v3380_v23 }
 0x569   : > { %v3355_v50 = vpop.f32.mrf.mxu1  ;;  %3398 = vmatpush.msrb.mxu2 %v3378_v9 }
 0x56a   : > { %v3356_v6 = vadd.f32 %v3355_v50, %v3213_v13  ;;  %v3358_v13 = vmax.f32 %v3270_v36, 0.0 }
 0x56b   : > { %3399 = vmatpush.msrb.mxu2 %v3376_v57 }
 0x56c   : > { %v3381_v33 = vmax.f32 %v3356_v6, 0.0 }
 0x56d   : > { %3400 = vmatpush.msrb.mxu2 %v3374_v55 }
 0x56e   : > { %3417 = vmatpush.msrb.mxu3 %v3381_v33 }
 0x56f   : > { %3401 = vmatpush.msrb.mxu2 %v3372_v25 }
 0x570   : > { %3418 = vmatpush.msrb.mxu3 %v3379_v26 }
 0x571   : > { %3402 = vmatpush.msrb.mxu2 %v3370_v14 }
 0x572   : > { %3419 = vmatpush.msrb.mxu3 %v3377_v61 }
 0x573   : > { %3403 = vmatpush.msrb.mxu2 %v3368_v52 }
 0x574   : > { %3420 = vmatpush.msrb.mxu3 %v3375_v51 }
 0x575   : > { %3404 = vmatpush.msrb.mxu2 %v3366_v29 }
 0x576   : > { %3421 = vmatpush.msrb.mxu3 %v3373_v35 }
 0x577   : > { %3405 = vmatpush.msrb.mxu2 %v3364_v7 }
 0x578   : > { %3422 = vmatpush.msrb.mxu3 %v3371_v62 }
 0x579   : > { %3406 = vmatpush.msrb.mxu2 %v3362_v49 }
 0x57a   : > { %3423 = vmatpush.msrb.mxu3 %v3369_v28 }
 0x57b   : > { %3407 = vmatpush.msrb.mxu2 %v3360_v2 }
 0x57c   : > { %3424 = vmatpush.msrb.mxu3 %v3367_v5 }
 0x57d   : > { %3408 = vmatpush.msrb.mxu2 %v3358_v13 }
 0x57e   : > { %3425 = vmatpush.msrb.mxu3 %v3365_v58  ;;  %3988 = vmatmul.msk.f32.vlgmr.msrb.gmra.mxu2 %vm3215_vm5, %v3382_v59 }
 0x580   : > { %3426 = vmatpush.msrb.mxu3 %v3363_v0 }
 0x582   : > { %3427 = vmatpush.msrb.mxu3 %v3361_v63 }
 0x584   : > { %3428 = vmatpush.msrb.mxu3 %v3359_v46 }
 0x585   : > { %3989 = vmatmul.msk.f32.vlgmr.msrb.gmra.mxu3 %vm3215_vm5, %v3382_v59 }
 0x601   : > { %v3410_v30 = vpop.f32.mrf.mxu2 }
 0x602   : > { %v3411_v4 = vadd.f32 %v3410_v30, %v3389_v1 }
 0x608   : > { %v3430_v38 = vpop.f32.mrf.mxu3 }
 0x609   : > { %v3431_v44 = vadd.f32 %v3430_v38, %v3389_v1 }
 0x60b   : > { %v3435_v12 = vrot.slane %v3431_v44, 7 }
 0x60d   : > { %v3437_v21 = vsel %vm3436_vm6, %v3411_v4, %v3435_v12 }
 0x60e   : > { %3443 = vst.msk [vmem:[%s498_s1] sm:$0x3] %vm3441_vm7, %v3437_v21 }
 0x60f   : > { %4074 = shalt.err (!%p4071_p7)
}
 0x610   : > { %4004 = dma.vmem_to_hbm [thread:$0]  (%p4223_p6), %s3458_s26, 32, %s3460_s21, %s3445_s14  }
 0x611 PF: > { %s3471_s17 = sand.u32 1, %s4097_s27   ;;  %p4007_p10 = pnand %p3539_p9, %p4227_p8 }
 0x612   : > { %s3472_s1 = scalar_lea.sflag [#allocation5], %s3471_s17 }
 0x613   : > { %p4008_p11 = pneg %p4007_p10 }
 0x615   : > { %4092 = dma.done.wait (%p4008_p11), %s3472_s1, 32  }
 0x616   : > { %4094 = vsyncadd (%p4008_p11), %s3472_s1, 4294967264  ;;  %s6592_s25 = sld [smem:[#allocation7_spill]]  ;;  %p25_p12 = scmp.ge.s32.totalorder %s4208_s15, 4  }
 0x617   : > { %s6593_s27 = smov %s4101_s28  ;;  %s6594_s28 = smov %s4105_s29 }
 0x618   : > { %s6596_s30 = smov %s4208_s15  ;;  %27 = sbr.rel (!%p25_p12) target bundleno = 6 (0x6), region = 142 }
 0x61c   : > { %s6595_s29 = smov %s6592_s25 }
 0x61d   :  { %3478 = vsyncpa [#allocation5], 1 }
 0x61e   :  { %3480 = vsyncpa [#allocation5 + $0x1], 1 }

</bundles_post_ra>
